<compile_context>
chip_gen: v6e
topology: v6e:2x2x1
jax: 0.10.0
libtpu: 0.0.40
codegen_flags: <defaults>
</compile_context>

<pallas_src>
import functools
import math

import jax
import jax.numpy as jnp
from jax.experimental import pallas as pl
from jax.experimental.pallas import tpu as pltpu


# ------------------------------ small helpers -------------------------------


def _softplus(y):
    # matches torch.nn.functional.softplus (threshold=20) for moderate inputs
    return jnp.where(y > 20.0, y, jnp.log(1.0 + jnp.exp(jnp.minimum(y, 20.0))))


def _sigmoid(y):
    return 1.0 / (1.0 + jnp.exp(-y))


def _pick_tile(dim, target, align):
    """Largest tile <= target that divides dim and is a multiple of align,
    else the full dim (a block equal to the full dim is always legal)."""
    if dim <= target:
        return dim
    t = (target // align) * align
    while t >= align:
        if dim % t == 0:
            return t
        t -= align
    return dim


# ------------------------------ Pallas kernels ------------------------------


def _linear_kernel(x_ref, w_ref, b_ref, o_ref, acc_ref, *, activation):
    # grid = (M//tm, N//tn, K//tk); K axis is the (innermost) reduction axis.
    @pl.when(pl.program_id(2) == 0)
    def _init():
        acc_ref[...] = jnp.zeros_like(acc_ref)

    acc_ref[...] += jnp.dot(
        x_ref[...], w_ref[...], preferred_element_type=jnp.float32
    )

    @pl.when(pl.program_id(2) == pl.num_programs(2) - 1)
    def _finalize():
        y = acc_ref[...] + b_ref[...].astype(jnp.float32)   # bias folded here
        if activation == "relu":
            y = jnp.maximum(y, 0.0)
        elif activation == "softplus":
            y = _softplus(y)
        elif activation == "sigmoid":
            y = _sigmoid(y)
        o_ref[...] = y.astype(o_ref.dtype)


def linear(x, w, b, activation=None, tm=256, tn=256, tk=512):
    """x: (M, K) @ w: (K, N) + b: (N,) with optional fused activation.

    Tiled for auto-pipelining; tile caps (256/256/512 f32) keep
    2 inputs x 2 buffers x tile + accumulator well inside v7x's 64 MiB VMEM.
    """
    M, K = x.shape
    K2, N = w.shape
    assert K == K2
    tm = _pick_tile(M, tm, 8)
    tn = _pick_tile(N, tn, 128)
    tk = _pick_tile(K, tk, 128)
    kernel = functools.partial(_linear_kernel, activation=activation)
    return pl.pallas_call(
        kernel,
        out_shape=jax.ShapeDtypeStruct((M, N), x.dtype),
        grid=(M // tm, N // tn, K // tk),
        in_specs=[
            pl.BlockSpec((tm, tk), lambda i, j, k: (i, k)),
            pl.BlockSpec((tk, tn), lambda i, j, k: (k, j)),
            pl.BlockSpec((1, tn), lambda i, j, k: (0, j)),
        ],
        out_specs=pl.BlockSpec((tm, tn), lambda i, j, k: (i, j)),
        scratch_shapes=[pltpu.VMEM((tm, tn), jnp.float32)],
        compiler_params=pltpu.CompilerParams(
            dimension_semantics=("parallel", "parallel", "arbitrary"),
            vmem_limit_bytes=32 * 1024 * 1024,
        ),
    )(x, w, b.reshape(1, N))


def _attention_kernel(q_ref, k_ref, v_ref, o_ref, *, num_heads, scale):
    # One batch element per grid step; all heads processed here so the
    # input/output blocks stay lane-dense (last dim = d_model) and the
    # per-step work amortizes the fixed grid-step overhead.
    q = q_ref[0].astype(jnp.float32)      # (S, D)
    k = k_ref[0].astype(jnp.float32)
    v = v_ref[0].astype(jnp.float32)
    S, D = q.shape
    dk = D // num_heads

    lane = jax.lax.broadcasted_iota(jnp.int32, (S, D), 1)   # column index
    acc = jnp.zeros((S, D), jnp.float32)
    for h in range(num_heads):            # static unroll over heads
        sel = (lane >= h * dk) & (lane < (h + 1) * dk)
        m_h = sel.astype(jnp.float32)
        qh = q * m_h
        kh = k * m_h
        # scores_h = q_h @ k_h^T (masked-out columns contribute zero)
        s = jax.lax.dot_general(
            qh, kh, (((1,), (1,)), ((), ())), preferred_element_type=jnp.float32
        ) * scale
        mx = jnp.max(s, axis=-1, keepdims=True)
        e = jnp.exp(s - mx)
        denom = jnp.sum(e, axis=-1, keepdims=True)
        p = e * pl.reciprocal(denom, approx=True)            # EUP, frees VALU
        # context_h lands only in head h's columns (v masked the same way)
        acc = acc + jnp.dot(p, v * m_h, preferred_element_type=jnp.float32)
    o_ref[0] = acc.astype(o_ref.dtype)    # single lane-dense (S, D) store


def attention(q, k, v, num_heads):
    """q/k/v: (B, S, D) in d_model layout (no head split).  Returns (B, S, D)
    laid out exactly like PyTorch's context.transpose(1,2).view(B, S, D)."""
    B, S, D = q.shape
    scale = 1.0 / math.sqrt(D // num_heads)
    spec = pl.BlockSpec((1, S, D), lambda b: (b, 0, 0))
    kernel = functools.partial(_attention_kernel, num_heads=num_heads, scale=scale)
    return pl.pallas_call(
        kernel,
        out_shape=jax.ShapeDtypeStruct((B, S, D), q.dtype),
        grid=(B,),
        in_specs=[spec, spec, spec],
        out_specs=spec,
        compiler_params=pltpu.CompilerParams(
            dimension_semantics=("parallel",)),
    )(q, k, v)


def _add_layernorm_kernel(x_ref, y_ref, g_ref, b_ref, o_ref, *, eps):
    z = x_ref[...].astype(jnp.float32) + y_ref[...].astype(jnp.float32)
    mu = jnp.mean(z, axis=-1, keepdims=True)
    c = z - mu
    var = jnp.mean(c * c, axis=-1, keepdims=True)
    inv = jax.lax.rsqrt(var + eps)
    o_ref[...] = (c * inv * g_ref[...] + b_ref[...]).astype(o_ref.dtype)


def add_layernorm(x, y, gamma, beta, eps=1e-5, tm=256):
    """LayerNorm(x + y) over the last dim, fused in one kernel.  x,y: (M, D)."""
    M, D = x.shape
    tm = _pick_tile(M, tm, 8)
    return pl.pallas_call(
        functools.partial(_add_layernorm_kernel, eps=eps),
        out_shape=jax.ShapeDtypeStruct((M, D), x.dtype),
        grid=(M // tm,),
        in_specs=[
            pl.BlockSpec((tm, D), lambda i: (i, 0)),
            pl.BlockSpec((tm, D), lambda i: (i, 0)),
            pl.BlockSpec((1, D), lambda i: (0, 0)),
            pl.BlockSpec((1, D), lambda i: (0, 0)),
        ],
        out_specs=pl.BlockSpec((tm, D), lambda i: (i, 0)),
        compiler_params=pltpu.CompilerParams(
            dimension_semantics=("parallel",)),
    )(x, y, gamma.reshape(1, D), beta.reshape(1, D))


# ------------------------- parameters (pre-transposed) ----------------------


def _linear_init(key, d_in, d_out):
    """nn.Linear-style init, weight stored pre-transposed as (in, out)."""
    kw, kb = jax.random.split(key)
    bound = 1.0 / math.sqrt(d_in)
    w = jax.random.uniform(kw, (d_in, d_out), jnp.float32, -bound, bound)
    b = jax.random.uniform(kb, (d_out,), jnp.float32, -bound, bound)
    return w, b


def _block_init(key, d_model, d_ff):
    ks = jax.random.split(key, 6)
    wq, bq = _linear_init(ks[0], d_model, d_model)
    wk, bk = _linear_init(ks[1], d_model, d_model)
    wv, bv = _linear_init(ks[2], d_model, d_model)
    wo, bo = _linear_init(ks[3], d_model, d_model)
    w1, b1 = _linear_init(ks[4], d_model, d_ff)
    w2, b2 = _linear_init(ks[5], d_ff, d_model)
    return dict(
        w_qkv=jnp.concatenate([wq, wk, wv], axis=1),   # fused QKV weight (D, 3D)
        b_qkv=jnp.concatenate([bq, bk, bv], axis=0),
        w_o=wo, b_o=bo,
        ln1_g=jnp.ones((d_model,), jnp.float32), ln1_b=jnp.zeros((d_model,), jnp.float32),
        ln2_g=jnp.ones((d_model,), jnp.float32), ln2_b=jnp.zeros((d_model,), jnp.float32),
        w_ff1=w1, b_ff1=b1, w_ff2=w2, b_ff2=b2,
    )


def make_positional_encoding(max_len, d_model):
    position = jnp.arange(max_len, dtype=jnp.float32)[:, None]
    div_term = jnp.exp(
        jnp.arange(0, d_model, 2, dtype=jnp.float32) * (-math.log(10000.0) / d_model)
    )
    angles = position * div_term
    pe = jnp.zeros((max_len, d_model), jnp.float32)
    pe = pe.at[:, 0::2].set(jnp.sin(angles))
    pe = pe.at[:, 1::2].set(jnp.cos(angles))
    return pe


def init_tts_params(key, cfg):
    D, dff = cfg["d_model"], cfg["d_ff"]
    mel, spk = cfg["mel_channels"], cfg["speaker_embedding_dim"]
    n_enc, n_dec = cfg["num_encoder_layers"], cfg["num_decoder_layers"]
    keys = iter(jax.random.split(key, 9 + n_enc + n_dec))
    p = {}
    p["text_emb"] = jax.random.normal(next(keys), (cfg["vocab_size"], D), jnp.float32)
    p["pe"] = make_positional_encoding(cfg["max_seq_length"], D)
    p["spk_enc_w"], p["spk_enc_b"] = _linear_init(next(keys), 256, spk)
    p["spk_proj_w"], p["spk_proj_b"] = _linear_init(next(keys), spk, D)
    p["encoder_layers"] = [_block_init(next(keys), D, dff) for _ in range(n_enc)]
    p["decoder_layers"] = [_block_init(next(keys), D, dff) for _ in range(n_dec)]
    p["mel_w"], p["mel_b"] = _linear_init(next(keys), D, mel)
    p["dur_w"], p["dur_b"] = _linear_init(next(keys), D, 1)
    p["stop_w"], p["stop_b"] = _linear_init(next(keys), D, 1)
    p["pre1_w"], p["pre1_b"] = _linear_init(next(keys), mel, D // 2)
    p["pre2_w"], p["pre2_b"] = _linear_init(next(keys), D // 2, D)
    return p


# ------------------------------- forward pass -------------------------------


def _transformer_block(lp, x, num_heads):
    B, S, D = x.shape
    x2d = x.reshape(B * S, D)
    qkv = linear(x2d, lp["w_qkv"], lp["b_qkv"])            # fused QKV GEMM: x read once
    q = qkv[:, :D].reshape(B, S, D)
    k = qkv[:, D:2 * D].reshape(B, S, D)
    v = qkv[:, 2 * D:].reshape(B, S, D)
    ctx = attention(q, k, v, num_heads)                    # (B, S, D), no transposes
    attn_out = linear(ctx.reshape(B * S, D), lp["w_o"], lp["b_o"])
    x1 = add_layernorm(x2d, attn_out, lp["ln1_g"], lp["ln1_b"])
    h = linear(x1, lp["w_ff1"], lp["b_ff1"], activation="relu")
    ff = linear(h, lp["w_ff2"], lp["b_ff2"])
    x2 = add_layernorm(x1, ff, lp["ln2_g"], lp["ln2_b"])
    return x2.reshape(B, S, D)


def _encode_text(params, tokens, spk_emb, num_heads):
    B, S = tokens.shape
    D = params["text_emb"].shape[1]
    x = jnp.take(params["text_emb"], tokens, axis=0) * math.sqrt(D)
    x = x + params["pe"][None, :S, :]
    spk = linear(spk_emb, params["spk_enc_w"], params["spk_enc_b"])
    spk = linear(spk, params["spk_proj_w"], params["spk_proj_b"])
    x = x + spk[:, None, :]
    # dropout: identity (inference)
    for lp in params["encoder_layers"]:
        x = _transformer_block(lp, x, num_heads)
    return x


def _decode_mel(params, enc_out, prev_mel, num_heads):
    B, S_enc, D = enc_out.shape
    if prev_mel is None:
        mel_c = params["mel_b"].shape[0]
        prev_mel = jnp.zeros((B, 1, mel_c), jnp.float32)
    Sd, mel_c = prev_mel.shape[1], prev_mel.shape[2]
    # prenet (dropout identity)
    h = linear(prev_mel.reshape(B * Sd, mel_c), params["pre1_w"], params["pre1_b"],
               activation="relu")
    h = linear(h, params["pre2_w"], params["pre2_b"], activation="relu")
    dec = h.reshape(B, Sd, D) + params["pe"][None, :Sd, :]
    for lp in params["decoder_layers"]:
        dec = _transformer_block(lp, dec, num_heads)
    dec2d = dec.reshape(B * Sd, D)
    mel_out = linear(dec2d, params["mel_w"], params["mel_b"]).reshape(B, Sd, mel_c)
    dur = linear(enc_out.reshape(B * S_enc, D), params["dur_w"], params["dur_b"],
                 activation="softplus").reshape(B, S_enc, 1)
    stop = linear(dec2d, params["stop_w"], params["stop_b"],
                  activation="sigmoid").reshape(B, Sd, 1)
    return mel_out, dur, stop


def _forward(params, text_tokens, speaker_embeddings, mel_targets=None, *, num_heads):
    enc = _encode_text(params, text_tokens, speaker_embeddings, num_heads)
    if mel_targets is not None:
        prev = jnp.pad(mel_targets, ((0, 0), (1, 0), (0, 0)))[:, :-1]
    else:
        prev = None
    mel_out, dur, stop = _decode_mel(params, enc, prev, num_heads)
    return {"mel_output": mel_out, "duration_output": dur,
            "stop_output": stop, "encoder_output": enc}


tts_forward = jax.jit(_forward, static_argnames=("num_heads",))


# ---------------------------- pure-JAX reference ----------------------------


def tts_forward_reference(params, tokens, spk_emb, mel_targets, num_heads):
    D = params["text_emb"].shape[1]

    def lin(x, w, b):
        return x @ w + b

    def layer_norm(x, g, b, eps=1e-5):
        mu = x.mean(-1, keepdims=True)
        var = ((x - mu) ** 2).mean(-1, keepdims=True)
        return (x - mu) / jnp.sqrt(var + eps) * g + b

    def mha(lp, x):
        B, S, D = x.shape
        dk = D // num_heads
        qkv = lin(x.reshape(B * S, D), lp["w_qkv"], lp["b_qkv"])
        q, k, v = jnp.split(qkv, 3, axis=1)

        def split(t):
            return t.reshape(B, S, num_heads, dk).transpose(0, 2, 1, 3)

        Q, K, V = split(q), split(k), split(v)
        s = jnp.einsum("bhqd,bhkd->bhqk", Q, K) / math.sqrt(dk)
        p = jax.nn.softmax(s, axis=-1)
        c = jnp.einsum("bhqk,bhkd->bhqd", p, V).transpose(0, 2, 1, 3).reshape(B * S, D)
        return lin(c, lp["w_o"], lp["b_o"]).reshape(B, S, D)

    def block(lp, x):
        B, S, D = x.shape
        a = mha(lp, x)
        x1 = layer_norm(x + a, lp["ln1_g"], lp["ln1_b"])
        h = jnp.maximum(lin(x1.reshape(B * S, D), lp["w_ff1"], lp["b_ff1"]), 0.0)
        f = lin(h, lp["w_ff2"], lp["b_ff2"]).reshape(B, S, D)
        return layer_norm(x1 + f, lp["ln2_g"], lp["ln2_b"])

    B, S = tokens.shape
    x = jnp.take(params["text_emb"], tokens, axis=0) * math.sqrt(D)
    x = x + params["pe"][None, :S, :]
    spk = lin(lin(spk_emb, params["spk_enc_w"], params["spk_enc_b"]),
              params["spk_proj_w"], params["spk_proj_b"])
    x = x + spk[:, None, :]
    for lp in params["encoder_layers"]:
        x = block(lp, x)
    enc = x

    if mel_targets is not None:
        prev = jnp.pad(mel_targets, ((0, 0), (1, 0), (0, 0)))[:, :-1]
    else:
        prev = jnp.zeros((B, 1, params["mel_b"].shape[0]), jnp.float32)
    Sd, mel_c = prev.shape[1], prev.shape[2]
    h = jnp.maximum(lin(prev.reshape(B * Sd, mel_c), params["pre1_w"], params["pre1_b"]), 0.0)
    h = jnp.maximum(lin(h, params["pre2_w"], params["pre2_b"]), 0.0)
    dec = h.reshape(B, Sd, D) + params["pe"][None, :Sd, :]
    for lp in params["decoder_layers"]:
        dec = block(lp, dec)
    dec2d = dec.reshape(B * Sd, D)
    mel_out = lin(dec2d, params["mel_w"], params["mel_b"]).reshape(B, Sd, mel_c)
    dur = _softplus(lin(enc.reshape(B * S, D), params["dur_w"], params["dur_b"])).reshape(B, S, 1)
    stop = _sigmoid(lin(dec2d, params["stop_w"], params["stop_b"])).reshape(B, Sd, 1)
    return {"mel_output": mel_out, "duration_output": dur,
            "stop_output": stop, "encoder_output": enc}


# ----------------------------------- main -----------------------------------

if __name__ == "__main__":
    cfg = dict(
        vocab_size=50, d_model=32, num_heads=4,
        num_encoder_layers=2, num_decoder_layers=2,
        d_ff=64, max_seq_length=64, mel_channels=16,
        speaker_embedding_dim=16,
    )
    B, S_text, T_mel = 2, 8, 8

    root = jax.random.PRNGKey(0)
    kp, kt, ks, km = jax.random.split(root, 4)
    params = init_tts_params(kp, cfg)
    text_tokens = jax.random.randint(kt, (B, S_text), 0, cfg["vocab_size"])
    speaker_embeddings = jax.random.normal(ks, (B, 256), jnp.float32)
    mel_targets = jax.random.normal(km, (B, T_mel, cfg["mel_channels"]), jnp.float32)

    names = ("mel_output", "duration_output", "stop_output", "encoder_output")

    # inference path (mel_targets=None)
    out = tts_forward(params, text_tokens, speaker_embeddings, None,
                      num_heads=cfg["num_heads"])
    out = jax.tree_util.tree_map(lambda a: a.block_until_ready(), out)
    ref = tts_forward_reference(params, text_tokens, speaker_embeddings, None,
                                cfg["num_heads"])
    for n in names:
        assert out[n].shape == ref[n].shape, (n, out[n].shape, ref[n].shape)
        err = float(jnp.max(jnp.abs(out[n] - ref[n])))
        assert jnp.allclose(out[n], ref[n], atol=1e-2, rtol=1e-2), (n, err)

    # teacher-forcing path (mel_targets provided)
    out_tf = tts_forward(params, text_tokens, speaker_embeddings, mel_targets,
                         num_heads=cfg["num_heads"])
    out_tf = jax.tree_util.tree_map(lambda a: a.block_until_ready(), out_tf)
    ref_tf = tts_forward_reference(params, text_tokens, speaker_embeddings,
                                   mel_targets, cfg["num_heads"])
    for n in names:
        assert out_tf[n].shape == ref_tf[n].shape, (n, out_tf[n].shape, ref_tf[n].shape)
        err = float(jnp.max(jnp.abs(out_tf[n] - ref_tf[n])))
        assert jnp.allclose(out_tf[n], ref_tf[n], atol=1e-2, rtol=1e-2), (n, err)

    print("KERNEL_OK")
</pallas_src>

<mosaic_0001>
module attributes {stable_mosaic.version = 11 : i64} {
  func.func @_linear_kernel(%arg0: i32, %arg1: i32, %arg2: i32, %arg3: memref<2x16xf32, #tpu.memory_space<vmem>>, %arg4: memref<16x32xf32, #tpu.memory_space<vmem>>, %arg5: memref<1x32xf32, #tpu.memory_space<vmem>>, %arg6: memref<2x32xf32, #tpu.memory_space<vmem>>, %arg7: memref<2x32xf32, #tpu.memory_space<vmem>>) attributes {dimension_semantics = [#tpu.dimension_semantics<parallel>, #tpu.dimension_semantics<parallel>, #tpu.dimension_semantics<arbitrary>], iteration_bounds = array<i64: 1, 1, 1>, scalar_prefetch = 0 : i64, scratch_operands = 1 : i64, tpu.core_type = #tpu.core_type<tc>, window_params = [{transform_indices = @transform_0, window_bounds = array<i64: 2, 16>}, {transform_indices = @transform_1, window_bounds = array<i64: 16, 32>}, {transform_indices = @transform_2, window_bounds = array<i64: 1, 32>}, {transform_indices = @transform_3, window_bounds = array<i64: 2, 32>}]} {
    %c0_i32 = arith.constant 0 : i32
    %0 = arith.cmpi eq, %arg2, %c0_i32 : i32
    %1 = arith.extui %0 : i1 to i32
    %c0_i32_0 = arith.constant 0 : i32
    %2 = arith.cmpi ne, %1, %c0_i32_0 : i32
    scf.if %2 {
      %cst_10 = arith.constant 0.000000e+00 : f32
      %12 = vector.broadcast %cst_10 : f32 to vector<2x32xf32>
      %c0_11 = arith.constant 0 : index
      %c0_12 = arith.constant 0 : index
      %13 = vector.load %arg7[%c0_11, %c0_12] : memref<2x32xf32, #tpu.memory_space<vmem>>, vector<2x32xf32>
      tpu.vector_store %arg7[%c0_11, %c0_12], %12 {strides = array<i32>} : memref<2x32xf32, #tpu.memory_space<vmem>>, vector<2x32xf32>,
    } else {
    }
    %c0 = arith.constant 0 : index
    %c0_1 = arith.constant 0 : index
    %3 = vector.load %arg7[%c0, %c0_1] : memref<2x32xf32, #tpu.memory_space<vmem>>, vector<2x32xf32>
    %c0_2 = arith.constant 0 : index
    %c0_3 = arith.constant 0 : index
    %4 = vector.load %arg3[%c0_2, %c0_3] : memref<2x16xf32, #tpu.memory_space<vmem>>, vector<2x16xf32>
    %c0_4 = arith.constant 0 : index
    %c0_5 = arith.constant 0 : index
    %5 = vector.load %arg4[%c0_4, %c0_5] : memref<16x32xf32, #tpu.memory_space<vmem>>, vector<16x32xf32>
    %cst = arith.constant dense<0.000000e+00> : vector<2x32xf32>
    %6 = tpu.matmul %4, %5, %cst {dimension_numbers = #tpu.dot_dimension_numbers<[1], [0], [0], [1], [0, 0, 1, 1], [], []>} : vector<2x16xf32>, vector<16x32xf32>, vector<2x32xf32> -> vector<2x32xf32>
    %7 = arith.addf %3, %6 : vector<2x32xf32>
    %c0_6 = arith.constant 0 : index
    %c0_7 = arith.constant 0 : index
    %8 = vector.load %arg7[%c0_6, %c0_7] : memref<2x32xf32, #tpu.memory_space<vmem>>, vector<2x32xf32>
    tpu.vector_store %arg7[%c0_6, %c0_7], %7 {strides = array<i32>} : memref<2x32xf32, #tpu.memory_space<vmem>>, vector<2x32xf32>,
    %c0_i32_8 = arith.constant 0 : i32
    %9 = arith.cmpi eq, %arg2, %c0_i32_8 : i32
    %10 = arith.extui %9 : i1 to i32
    %c0_i32_9 = arith.constant 0 : i32
    %11 = arith.cmpi ne, %10, %c0_i32_9 : i32
    scf.if %11 {
      %c0_10 = arith.constant 0 : index
      %c0_11 = arith.constant 0 : index
      %12 = vector.load %arg7[%c0_10, %c0_11] : memref<2x32xf32, #tpu.memory_space<vmem>>, vector<2x32xf32>
      %c0_12 = arith.constant 0 : index
      %c0_13 = arith.constant 0 : index
      %13 = vector.load %arg5[%c0_12, %c0_13] : memref<1x32xf32, #tpu.memory_space<vmem>>, vector<1x32xf32>
      %14 = vector.broadcast %13 : vector<1x32xf32> to vector<2x32xf32>
      %15 = arith.addf %12, %14 : vector<2x32xf32>
      %cst_14 = arith.constant 0.000000e+00 : f32
      %16 = vector.broadcast %cst_14 : f32 to vector<2x32xf32>
      %17 = arith.maximumf %15, %16 : vector<2x32xf32>
      %c0_15 = arith.constant 0 : index
      %c0_16 = arith.constant 0 : index
      %18 = vector.load %arg6[%c0_15, %c0_16] : memref<2x32xf32, #tpu.memory_space<vmem>>, vector<2x32xf32>
      tpu.vector_store %arg6[%c0_15, %c0_16], %17 {strides = array<i32>} : memref<2x32xf32, #tpu.memory_space<vmem>>, vector<2x32xf32>,
    } else {
    }
    return
  }
  func.func @transform_0(%arg0: i32, %arg1: i32, %arg2: i32) -> (i32, i32) {
    %c0_i32 = arith.constant 0 : i32
    return %arg0, %arg2 : i32, i32
  }
  func.func @transform_1(%arg0: i32, %arg1: i32, %arg2: i32) -> (i32, i32) {
    %c0_i32 = arith.constant 0 : i32
    return %arg2, %arg1 : i32, i32
  }
  func.func @transform_2(%arg0: i32, %arg1: i32, %arg2: i32) -> (i32, i32) {
    %c0_i32 = arith.constant 0 : i32
    %c0_i32_0 = arith.constant 0 : i32
    return %c0_i32, %arg1 : i32, i32
  }
  func.func @transform_3(%arg0: i32, %arg1: i32, %arg2: i32) -> (i32, i32) {
    %c0_i32 = arith.constant 0 : i32
    return %arg0, %arg1 : i32, i32
  }
}

module attributes {stable_mosaic.version = 11 : i64} {
  func.func @_linear_kernel(%arg0: i32, %arg1: i32, %arg2: i32, %arg3: memref<2x16xf32, #tpu.memory_space<vmem>>, %arg4: memref<16x16xf32, #tpu.memory_space<vmem>>, %arg5: memref<1x16xf32, #tpu.memory_space<vmem>>, %arg6: memref<2x16xf32, #tpu.memory_space<vmem>>, %arg7: memref<2x16xf32, #tpu.memory_space<vmem>>) attributes {dimension_semantics = [#tpu.dimension_semantics<parallel>, #tpu.dimension_semantics<parallel>, #tpu.dimension_semantics<arbitrary>], iteration_bounds = array<i64: 1, 1, 1>, scalar_prefetch = 0 : i64, scratch_operands = 1 : i64, tpu.core_type = #tpu.core_type<tc>, window_params = [{transform_indices = @transform_0, window_bounds = array<i64: 2, 16>}, {transform_indices = @transform_1, window_bounds = array<i64: 16, 16>}, {transform_indices = @transform_2, window_bounds = array<i64: 1, 16>}, {transform_indices = @transform_3, window_bounds = array<i64: 2, 16>}]} {
    %c0_i32 = arith.constant 0 : i32
    %0 = arith.cmpi eq, %arg2, %c0_i32 : i32
    %1 = arith.extui %0 : i1 to i32
    %c0_i32_0 = arith.constant 0 : i32
    %2 = arith.cmpi ne, %1, %c0_i32_0 : i32
    scf.if %2 {
      %cst_10 = arith.constant 0.000000e+00 : f32
      %12 = vector.broadcast %cst_10 : f32 to vector<2x16xf32>
      %c0_11 = arith.constant 0 : index
      %c0_12 = arith.constant 0 : index
      %13 = vector.load %arg7[%c0_11, %c0_12] : memref<2x16xf32, #tpu.memory_space<vmem>>, vector<2x16xf32>
      tpu.vector_store %arg7[%c0_11, %c0_12], %12 {strides = array<i32>} : memref<2x16xf32, #tpu.memory_space<vmem>>, vector<2x16xf32>,
    } else {
    }
    %c0 = arith.constant 0 : index
    %c0_1 = arith.constant 0 : index
    %3 = vector.load %arg7[%c0, %c0_1] : memref<2x16xf32, #tpu.memory_space<vmem>>, vector<2x16xf32>
    %c0_2 = arith.constant 0 : index
    %c0_3 = arith.constant 0 : index
    %4 = vector.load %arg3[%c0_2, %c0_3] : memref<2x16xf32, #tpu.memory_space<vmem>>, vector<2x16xf32>
    %c0_4 = arith.constant 0 : index
    %c0_5 = arith.constant 0 : index
    %5 = vector.load %arg4[%c0_4, %c0_5] : memref<16x16xf32, #tpu.memory_space<vmem>>, vector<16x16xf32>
    %cst = arith.constant dense<0.000000e+00> : vector<2x16xf32>
    %6 = tpu.matmul %4, %5, %cst {dimension_numbers = #tpu.dot_dimension_numbers<[1], [0], [0], [1], [0, 0, 1, 1], [], []>} : vector<2x16xf32>, vector<16x16xf32>, vector<2x16xf32> -> vector<2x16xf32>
    %7 = arith.addf %3, %6 : vector<2x16xf32>
    %c0_6 = arith.constant 0 : index
    %c0_7 = arith.constant 0 : index
    %8 = vector.load %arg7[%c0_6, %c0_7] : memref<2x16xf32, #tpu.memory_space<vmem>>, vector<2x16xf32>
    tpu.vector_store %arg7[%c0_6, %c0_7], %7 {strides = array<i32>} : memref<2x16xf32, #tpu.memory_space<vmem>>, vector<2x16xf32>,
    %c0_i32_8 = arith.constant 0 : i32
    %9 = arith.cmpi eq, %arg2, %c0_i32_8 : i32
    %10 = arith.extui %9 : i1 to i32
    %c0_i32_9 = arith.constant 0 : i32
    %11 = arith.cmpi ne, %10, %c0_i32_9 : i32
    scf.if %11 {
      %c0_10 = arith.constant 0 : index
      %c0_11 = arith.constant 0 : index
      %12 = vector.load %arg7[%c0_10, %c0_11] : memref<2x16xf32, #tpu.memory_space<vmem>>, vector<2x16xf32>
      %c0_12 = arith.constant 0 : index
      %c0_13 = arith.constant 0 : index
      %13 = vector.load %arg5[%c0_12, %c0_13] : memref<1x16xf32, #tpu.memory_space<vmem>>, vector<1x16xf32>
      %14 = vector.broadcast %13 : vector<1x16xf32> to vector<2x16xf32>
      %15 = arith.addf %12, %14 : vector<2x16xf32>
      %cst_14 = arith.constant 0.000000e+00 : f32
      %16 = vector.broadcast %cst_14 : f32 to vector<2x16xf32>
      %17 = arith.maximumf %15, %16 : vector<2x16xf32>
      %c0_15 = arith.constant 0 : index
      %c0_16 = arith.constant 0 : index
      %18 = vector.load %arg6[%c0_15, %c0_16] : memref<2x16xf32, #tpu.memory_space<vmem>>, vector<2x16xf32>
      tpu.vector_store %arg6[%c0_15, %c0_16], %17 {strides = array<i32>} : memref<2x16xf32, #tpu.memory_space<vmem>>, vector<2x16xf32>,
    } else {
    }
    return
  }
  func.func @transform_0(%arg0: i32, %arg1: i32, %arg2: i32) -> (i32, i32) {
    %c0_i32 = arith.constant 0 : i32
    return %arg0, %arg2 : i32, i32
  }
  func.func @transform_1(%arg0: i32, %arg1: i32, %arg2: i32) -> (i32, i32) {
    %c0_i32 = arith.constant 0 : i32
    return %arg2, %arg1 : i32, i32
  }
  func.func @transform_2(%arg0: i32, %arg1: i32, %arg2: i32) -> (i32, i32) {
    %c0_i32 = arith.constant 0 : i32
    %c0_i32_0 = arith.constant 0 : i32
    return %c0_i32, %arg1 : i32, i32
  }
  func.func @transform_3(%arg0: i32, %arg1: i32, %arg2: i32) -> (i32, i32) {
    %c0_i32 = arith.constant 0 : i32
    return %arg0, %arg1 : i32, i32
  }
}

module attributes {stable_mosaic.version = 11 : i64} {
  func.func @_linear_kernel(%arg0: i32, %arg1: i32, %arg2: i32, %arg3: memref<2x32xf32, #tpu.memory_space<vmem>>, %arg4: memref<32x96xf32, #tpu.memory_space<vmem>>, %arg5: memref<1x96xf32, #tpu.memory_space<vmem>>, %arg6: memref<2x96xf32, #tpu.memory_space<vmem>>, %arg7: memref<2x96xf32, #tpu.memory_space<vmem>>) attributes {dimension_semantics = [#tpu.dimension_semantics<parallel>, #tpu.dimension_semantics<parallel>, #tpu.dimension_semantics<arbitrary>], iteration_bounds = array<i64: 1, 1, 1>, scalar_prefetch = 0 : i64, scratch_operands = 1 : i64, tpu.core_type = #tpu.core_type<tc>, window_params = [{transform_indices = @transform_0, window_bounds = array<i64: 2, 32>}, {transform_indices = @transform_1, window_bounds = array<i64: 32, 96>}, {transform_indices = @transform_2, window_bounds = array<i64: 1, 96>}, {transform_indices = @transform_3, window_bounds = array<i64: 2, 96>}]} {
    %c0_i32 = arith.constant 0 : i32
    %0 = arith.cmpi eq, %arg2, %c0_i32 : i32
    %1 = arith.extui %0 : i1 to i32
    %c0_i32_0 = arith.constant 0 : i32
    %2 = arith.cmpi ne, %1, %c0_i32_0 : i32
    scf.if %2 {
      %cst_10 = arith.constant 0.000000e+00 : f32
      %12 = vector.broadcast %cst_10 : f32 to vector<2x96xf32>
      %c0_11 = arith.constant 0 : index
      %c0_12 = arith.constant 0 : index
      %13 = vector.load %arg7[%c0_11, %c0_12] : memref<2x96xf32, #tpu.memory_space<vmem>>, vector<2x96xf32>
      tpu.vector_store %arg7[%c0_11, %c0_12], %12 {strides = array<i32>} : memref<2x96xf32, #tpu.memory_space<vmem>>, vector<2x96xf32>,
    } else {
    }
    %c0 = arith.constant 0 : index
    %c0_1 = arith.constant 0 : index
    %3 = vector.load %arg7[%c0, %c0_1] : memref<2x96xf32, #tpu.memory_space<vmem>>, vector<2x96xf32>
    %c0_2 = arith.constant 0 : index
    %c0_3 = arith.constant 0 : index
    %4 = vector.load %arg3[%c0_2, %c0_3] : memref<2x32xf32, #tpu.memory_space<vmem>>, vector<2x32xf32>
    %c0_4 = arith.constant 0 : index
    %c0_5 = arith.constant 0 : index
    %5 = vector.load %arg4[%c0_4, %c0_5] : memref<32x96xf32, #tpu.memory_space<vmem>>, vector<32x96xf32>
    %cst = arith.constant dense<0.000000e+00> : vector<2x96xf32>
    %6 = tpu.matmul %4, %5, %cst {dimension_numbers = #tpu.dot_dimension_numbers<[1], [0], [0], [1], [0, 0, 1, 1], [], []>} : vector<2x32xf32>, vector<32x96xf32>, vector<2x96xf32> -> vector<2x96xf32>
    %7 = arith.addf %3, %6 : vector<2x96xf32>
    %c0_6 = arith.constant 0 : index
    %c0_7 = arith.constant 0 : index
    %8 = vector.load %arg7[%c0_6, %c0_7] : memref<2x96xf32, #tpu.memory_space<vmem>>, vector<2x96xf32>
    tpu.vector_store %arg7[%c0_6, %c0_7], %7 {strides = array<i32>} : memref<2x96xf32, #tpu.memory_space<vmem>>, vector<2x96xf32>,
    %c0_i32_8 = arith.constant 0 : i32
    %9 = arith.cmpi eq, %arg2, %c0_i32_8 : i32
    %10 = arith.extui %9 : i1 to i32
    %c0_i32_9 = arith.constant 0 : i32
    %11 = arith.cmpi ne, %10, %c0_i32_9 : i32
    scf.if %11 {
      %c0_10 = arith.constant 0 : index
      %c0_11 = arith.constant 0 : index
      %12 = vector.load %arg7[%c0_10, %c0_11] : memref<2x96xf32, #tpu.memory_space<vmem>>, vector<2x96xf32>
      %c0_12 = arith.constant 0 : index
      %c0_13 = arith.constant 0 : index
      %13 = vector.load %arg5[%c0_12, %c0_13] : memref<1x96xf32, #tpu.memory_space<vmem>>, vector<1x96xf32>
      %14 = vector.broadcast %13 : vector<1x96xf32> to vector<2x96xf32>
      %15 = arith.addf %12, %14 : vector<2x96xf32>
      %c0_14 = arith.constant 0 : index
      %c0_15 = arith.constant 0 : index
      %16 = vector.load %arg6[%c0_14, %c0_15] : memref<2x96xf32, #tpu.memory_space<vmem>>, vector<2x96xf32>
      tpu.vector_store %arg6[%c0_14, %c0_15], %15 {strides = array<i32>} : memref<2x96xf32, #tpu.memory_space<vmem>>, vector<2x96xf32>,
    } else {
    }
    return
  }
  func.func @transform_0(%arg0: i32, %arg1: i32, %arg2: i32) -> (i32, i32) {
    %c0_i32 = arith.constant 0 : i32
    return %arg0, %arg2 : i32, i32
  }
  func.func @transform_1(%arg0: i32, %arg1: i32, %arg2: i32) -> (i32, i32) {
    %c0_i32 = arith.constant 0 : i32
    return %arg2, %arg1 : i32, i32
  }
  func.func @transform_2(%arg0: i32, %arg1: i32, %arg2: i32) -> (i32, i32) {
    %c0_i32 = arith.constant 0 : i32
    %c0_i32_0 = arith.constant 0 : i32
    return %c0_i32, %arg1 : i32, i32
  }
  func.func @transform_3(%arg0: i32, %arg1: i32, %arg2: i32) -> (i32, i32) {
    %c0_i32 = arith.constant 0 : i32
    return %arg0, %arg1 : i32, i32
  }
}

module attributes {stable_mosaic.version = 11 : i64} {
  func.func @_attention_kernel(%arg0: i32, %arg1: memref<1x1x32xf32, #tpu.memory_space<vmem>>, %arg2: memref<1x1x32xf32, #tpu.memory_space<vmem>>, %arg3: memref<1x1x32xf32, #tpu.memory_space<vmem>>, %arg4: memref<1x1x32xf32, #tpu.memory_space<vmem>>) attributes {dimension_semantics = [#tpu.dimension_semantics<parallel>], iteration_bounds = array<i64: 2>, scalar_prefetch = 0 : i64, scratch_operands = 0 : i64, tpu.core_type = #tpu.core_type<tc>, window_params = [{transform_indices = @transform_0, window_bounds = array<i64: 1, 1, 32>}, {transform_indices = @transform_1, window_bounds = array<i64: 1, 1, 32>}, {transform_indices = @transform_2, window_bounds = array<i64: 1, 1, 32>}, {transform_indices = @transform_3, window_bounds = array<i64: 1, 1, 32>}]} {
    %c0 = arith.constant 0 : index
    %c0_0 = arith.constant 0 : index
    %c0_1 = arith.constant 0 : index
    %0 = vector.load %arg1[%c0, %c0_0, %c0_1] : memref<1x1x32xf32, #tpu.memory_space<vmem>>, vector<1x1x32xf32>
    %1 = vector.shape_cast %0 : vector<1x1x32xf32> to vector<1x32xf32>
    %c0_2 = arith.constant 0 : index
    %c0_3 = arith.constant 0 : index
    %c0_4 = arith.constant 0 : index
    %2 = vector.load %arg2[%c0_2, %c0_3, %c0_4] : memref<1x1x32xf32, #tpu.memory_space<vmem>>, vector<1x1x32xf32>
    %3 = vector.shape_cast %2 : vector<1x1x32xf32> to vector<1x32xf32>
    %c0_5 = arith.constant 0 : index
    %c0_6 = arith.constant 0 : index
    %c0_7 = arith.constant 0 : index
    %4 = vector.load %arg3[%c0_5, %c0_6, %c0_7] : memref<1x1x32xf32, #tpu.memory_space<vmem>>, vector<1x1x32xf32>
    %5 = vector.shape_cast %4 : vector<1x1x32xf32> to vector<1x32xf32>
    %6 = tpu.iota {dimensions = array<i32: 1>} : vector<1x32xi32>
    %cst = arith.constant 0.000000e+00 : f32
    %7 = vector.broadcast %cst : f32 to vector<1x32xf32>
    %c0_i32 = arith.constant 0 : i32
    %8 = vector.broadcast %c0_i32 : i32 to vector<1x32xi32>
    %9 = arith.cmpi sge, %6, %8 : vector<1x32xi32>
    %c8_i32 = arith.constant 8 : i32
    %10 = vector.broadcast %c8_i32 : i32 to vector<1x32xi32>
    %11 = arith.cmpi slt, %6, %10 : vector<1x32xi32>
    %12 = arith.andi %9, %11 : vector<1x32xi1>
    %13 = arith.extui %12 : vector<1x32xi1> to vector<1x32xi32>
    %14 = arith.sitofp %13 : vector<1x32xi32> to vector<1x32xf32>
    %15 = arith.mulf %1, %14 : vector<1x32xf32>
    %16 = arith.mulf %3, %14 : vector<1x32xf32>
    %cst_8 = arith.constant dense<0.000000e+00> : vector<1x1xf32>
    %17 = tpu.matmul %15, %16, %cst_8 {dimension_numbers = #tpu.dot_dimension_numbers<[1], [1], [0], [0], [0, 0, 1, 0], [], []>} : vector<1x32xf32>, vector<1x32xf32>, vector<1x1xf32> -> vector<1x1xf32>
    %cst_9 = arith.constant 0.353553385 : f32
    %18 = vector.broadcast %cst_9 : f32 to vector<1x1xf32>
    %19 = arith.mulf %17, %18 : vector<1x1xf32>
    %cst_10 = arith.constant dense<0xFF800000> : vector<1xf32>
    %20 = vector.multi_reduction <maximumf>, %19, %cst_10 [1] : vector<1x1xf32> to vector<1xf32>
    %21 = vector.shape_cast %20 : vector<1xf32> to vector<1x1xf32>
    %22 = arith.subf %19, %21 : vector<1x1xf32>
    %23 = math.exp %22 : vector<1x1xf32>
    %cst_11 = arith.constant dense<0.000000e+00> : vector<1xf32>
    %24 = vector.multi_reduction <add>, %23, %cst_11 [1] : vector<1x1xf32> to vector<1xf32>
    %25 = vector.shape_cast %24 : vector<1xf32> to vector<1x1xf32>
    %26 = tpu.reciprocal %25 {approx = true} : vector<1x1xf32> -> vector<1x1xf32>
    %27 = arith.mulf %23, %26 : vector<1x1xf32>
    %28 = arith.mulf %5, %14 : vector<1x32xf32>
    %cst_12 = arith.constant dense<0.000000e+00> : vector<1x32xf32>
    %29 = tpu.matmul %27, %28, %cst_12 {dimension_numbers = #tpu.dot_dimension_numbers<[1], [0], [0], [1], [0, 0, 1, 1], [], []>} : vector<1x1xf32>, vector<1x32xf32>, vector<1x32xf32> -> vector<1x32xf32>
    %30 = arith.addf %7, %29 : vector<1x32xf32>
    %c8_i32_13 = arith.constant 8 : i32
    %31 = vector.broadcast %c8_i32_13 : i32 to vector<1x32xi32>
    %32 = arith.cmpi sge, %6, %31 : vector<1x32xi32>
    %c16_i32 = arith.constant 16 : i32
    %33 = vector.broadcast %c16_i32 : i32 to vector<1x32xi32>
    %34 = arith.cmpi slt, %6, %33 : vector<1x32xi32>
    %35 = arith.andi %32, %34 : vector<1x32xi1>
    %36 = arith.extui %35 : vector<1x32xi1> to vector<1x32xi32>
    %37 = arith.sitofp %36 : vector<1x32xi32> to vector<1x32xf32>
    %38 = arith.mulf %1, %37 : vector<1x32xf32>
    %39 = arith.mulf %3, %37 : vector<1x32xf32>
    %cst_14 = arith.constant dense<0.000000e+00> : vector<1x1xf32>
    %40 = tpu.matmul %38, %39, %cst_14 {dimension_numbers = #tpu.dot_dimension_numbers<[1], [1], [0], [0], [0, 0, 1, 0], [], []>} : vector<1x32xf32>, vector<1x32xf32>, vector<1x1xf32> -> vector<1x1xf32>
    %cst_15 = arith.constant 0.353553385 : f32
    %41 = vector.broadcast %cst_15 : f32 to vector<1x1xf32>
    %42 = arith.mulf %40, %41 : vector<1x1xf32>
    %cst_16 = arith.constant dense<0xFF800000> : vector<1xf32>
    %43 = vector.multi_reduction <maximumf>, %42, %cst_16 [1] : vector<1x1xf32> to vector<1xf32>
    %44 = vector.shape_cast %43 : vector<1xf32> to vector<1x1xf32>
    %45 = arith.subf %42, %44 : vector<1x1xf32>
    %46 = math.exp %45 : vector<1x1xf32>
    %cst_17 = arith.constant dense<0.000000e+00> : vector<1xf32>
    %47 = vector.multi_reduction <add>, %46, %cst_17 [1] : vector<1x1xf32> to vector<1xf32>
    %48 = vector.shape_cast %47 : vector<1xf32> to vector<1x1xf32>
    %49 = tpu.reciprocal %48 {approx = true} : vector<1x1xf32> -> vector<1x1xf32>
    %50 = arith.mulf %46, %49 : vector<1x1xf32>
    %51 = arith.mulf %5, %37 : vector<1x32xf32>
    %cst_18 = arith.constant dense<0.000000e+00> : vector<1x32xf32>
    %52 = tpu.matmul %50, %51, %cst_18 {dimension_numbers = #tpu.dot_dimension_numbers<[1], [0], [0], [1], [0, 0, 1, 1], [], []>} : vector<1x1xf32>, vector<1x32xf32>, vector<1x32xf32> -> vector<1x32xf32>
    %53 = arith.addf %30, %52 : vector<1x32xf32>
    %c16_i32_19 = arith.constant 16 : i32
    %54 = vector.broadcast %c16_i32_19 : i32 to vector<1x32xi32>
    %55 = arith.cmpi sge, %6, %54 : vector<1x32xi32>
    %c24_i32 = arith.constant 24 : i32
    %56 = vector.broadcast %c24_i32 : i32 to vector<1x32xi32>
    %57 = arith.cmpi slt, %6, %56 : vector<1x32xi32>
    %58 = arith.andi %55, %57 : vector<1x32xi1>
    %59 = arith.extui %58 : vector<1x32xi1> to vector<1x32xi32>
    %60 = arith.sitofp %59 : vector<1x32xi32> to vector<1x32xf32>
    %61 = arith.mulf %1, %60 : vector<1x32xf32>
    %62 = arith.mulf %3, %60 : vector<1x32xf32>
    %cst_20 = arith.constant dense<0.000000e+00> : vector<1x1xf32>
    %63 = tpu.matmul %61, %62, %cst_20 {dimension_numbers = #tpu.dot_dimension_numbers<[1], [1], [0], [0], [0, 0, 1, 0], [], []>} : vector<1x32xf32>, vector<1x32xf32>, vector<1x1xf32> -> vector<1x1xf32>
    %cst_21 = arith.constant 0.353553385 : f32
    %64 = vector.broadcast %cst_21 : f32 to vector<1x1xf32>
    %65 = arith.mulf %63, %64 : vector<1x1xf32>
    %cst_22 = arith.constant dense<0xFF800000> : vector<1xf32>
    %66 = vector.multi_reduction <maximumf>, %65, %cst_22 [1] : vector<1x1xf32> to vector<1xf32>
    %67 = vector.shape_cast %66 : vector<1xf32> to vector<1x1xf32>
    %68 = arith.subf %65, %67 : vector<1x1xf32>
    %69 = math.exp %68 : vector<1x1xf32>
    %cst_23 = arith.constant dense<0.000000e+00> : vector<1xf32>
    %70 = vector.multi_reduction <add>, %69, %cst_23 [1] : vector<1x1xf32> to vector<1xf32>
    %71 = vector.shape_cast %70 : vector<1xf32> to vector<1x1xf32>
    %72 = tpu.reciprocal %71 {approx = true} : vector<1x1xf32> -> vector<1x1xf32>
    %73 = arith.mulf %69, %72 : vector<1x1xf32>
    %74 = arith.mulf %5, %60 : vector<1x32xf32>
    %cst_24 = arith.constant dense<0.000000e+00> : vector<1x32xf32>
    %75 = tpu.matmul %73, %74, %cst_24 {dimension_numbers = #tpu.dot_dimension_numbers<[1], [0], [0], [1], [0, 0, 1, 1], [], []>} : vector<1x1xf32>, vector<1x32xf32>, vector<1x32xf32> -> vector<1x32xf32>
    %76 = arith.addf %53, %75 : vector<1x32xf32>
    %c24_i32_25 = arith.constant 24 : i32
    %77 = vector.broadcast %c24_i32_25 : i32 to vector<1x32xi32>
    %78 = arith.cmpi sge, %6, %77 : vector<1x32xi32>
    %c32_i32 = arith.constant 32 : i32
    %79 = vector.broadcast %c32_i32 : i32 to vector<1x32xi32>
    %80 = arith.cmpi slt, %6, %79 : vector<1x32xi32>
    %81 = arith.andi %78, %80 : vector<1x32xi1>
    %82 = arith.extui %81 : vector<1x32xi1> to vector<1x32xi32>
    %83 = arith.sitofp %82 : vector<1x32xi32> to vector<1x32xf32>
    %84 = arith.mulf %1, %83 : vector<1x32xf32>
    %85 = arith.mulf %3, %83 : vector<1x32xf32>
    %cst_26 = arith.constant dense<0.000000e+00> : vector<1x1xf32>
    %86 = tpu.matmul %84, %85, %cst_26 {dimension_numbers = #tpu.dot_dimension_numbers<[1], [1], [0], [0], [0, 0, 1, 0], [], []>} : vector<1x32xf32>, vector<1x32xf32>, vector<1x1xf32> -> vector<1x1xf32>
    %cst_27 = arith.constant 0.353553385 : f32
    %87 = vector.broadcast %cst_27 : f32 to vector<1x1xf32>
    %88 = arith.mulf %86, %87 : vector<1x1xf32>
    %cst_28 = arith.constant dense<0xFF800000> : vector<1xf32>
    %89 = vector.multi_reduction <maximumf>, %88, %cst_28 [1] : vector<1x1xf32> to vector<1xf32>
    %90 = vector.shape_cast %89 : vector<1xf32> to vector<1x1xf32>
    %91 = arith.subf %88, %90 : vector<1x1xf32>
    %92 = math.exp %91 : vector<1x1xf32>
    %cst_29 = arith.constant dense<0.000000e+00> : vector<1xf32>
    %93 = vector.multi_reduction <add>, %92, %cst_29 [1] : vector<1x1xf32> to vector<1xf32>
    %94 = vector.shape_cast %93 : vector<1xf32> to vector<1x1xf32>
    %95 = tpu.reciprocal %94 {approx = true} : vector<1x1xf32> -> vector<1x1xf32>
    %96 = arith.mulf %92, %95 : vector<1x1xf32>
    %97 = arith.mulf %5, %83 : vector<1x32xf32>
    %cst_30 = arith.constant dense<0.000000e+00> : vector<1x32xf32>
    %98 = tpu.matmul %96, %97, %cst_30 {dimension_numbers = #tpu.dot_dimension_numbers<[1], [0], [0], [1], [0, 0, 1, 1], [], []>} : vector<1x1xf32>, vector<1x32xf32>, vector<1x32xf32> -> vector<1x32xf32>
    %99 = arith.addf %76, %98 : vector<1x32xf32>
    %c0_31 = arith.constant 0 : index
    %c0_32 = arith.constant 0 : index
    %c0_33 = arith.constant 0 : index
    %100 = vector.load %arg4[%c0_31, %c0_32, %c0_33] : memref<1x1x32xf32, #tpu.memory_space<vmem>>, vector<1x1x32xf32>
    %101 = vector.shape_cast %100 : vector<1x1x32xf32> to vector<1x32xf32>
    %102 = vector.shape_cast %99 : vector<1x32xf32> to vector<1x1x32xf32>
    tpu.vector_store %arg4[%c0_31, %c0_32, %c0_33], %102 {strides = array<i32>} : memref<1x1x32xf32, #tpu.memory_space<vmem>>, vector<1x1x32xf32>,
    return
  }
  func.func @transform_0(%arg0: i32) -> (i32, i32, i32) {
    %c0_i32 = arith.constant 0 : i32
    %c0_i32_0 = arith.constant 0 : i32
    %c0_i32_1 = arith.constant 0 : i32
    return %arg0, %c0_i32, %c0_i32_0 : i32, i32, i32
  }
  func.func @transform_1(%arg0: i32) -> (i32, i32, i32) {
    %c0_i32 = arith.constant 0 : i32
    %c0_i32_0 = arith.constant 0 : i32
    %c0_i32_1 = arith.constant 0 : i32
    return %arg0, %c0_i32, %c0_i32_0 : i32, i32, i32
  }
  func.func @transform_2(%arg0: i32) -> (i32, i32, i32) {
    %c0_i32 = arith.constant 0 : i32
    %c0_i32_0 = arith.constant 0 : i32
    %c0_i32_1 = arith.constant 0 : i32
    return %arg0, %c0_i32, %c0_i32_0 : i32, i32, i32
  }
  func.func @transform_3(%arg0: i32) -> (i32, i32, i32) {
    %c0_i32 = arith.constant 0 : i32
    %c0_i32_0 = arith.constant 0 : i32
    %c0_i32_1 = arith.constant 0 : i32
    return %arg0, %c0_i32, %c0_i32_0 : i32, i32, i32
  }
}

module attributes {stable_mosaic.version = 11 : i64} {
  func.func @_linear_kernel(%arg0: i32, %arg1: i32, %arg2: i32, %arg3: memref<2x32xf32, #tpu.memory_space<vmem>>, %arg4: memref<32x32xf32, #tpu.memory_space<vmem>>, %arg5: memref<1x32xf32, #tpu.memory_space<vmem>>, %arg6: memref<2x32xf32, #tpu.memory_space<vmem>>, %arg7: memref<2x32xf32, #tpu.memory_space<vmem>>) attributes {dimension_semantics = [#tpu.dimension_semantics<parallel>, #tpu.dimension_semantics<parallel>, #tpu.dimension_semantics<arbitrary>], iteration_bounds = array<i64: 1, 1, 1>, scalar_prefetch = 0 : i64, scratch_operands = 1 : i64, tpu.core_type = #tpu.core_type<tc>, window_params = [{transform_indices = @transform_0, window_bounds = array<i64: 2, 32>}, {transform_indices = @transform_1, window_bounds = array<i64: 32, 32>}, {transform_indices = @transform_2, window_bounds = array<i64: 1, 32>}, {transform_indices = @transform_3, window_bounds = array<i64: 2, 32>}]} {
    %c0_i32 = arith.constant 0 : i32
    %0 = arith.cmpi eq, %arg2, %c0_i32 : i32
    %1 = arith.extui %0 : i1 to i32
    %c0_i32_0 = arith.constant 0 : i32
    %2 = arith.cmpi ne, %1, %c0_i32_0 : i32
    scf.if %2 {
      %cst_10 = arith.constant 0.000000e+00 : f32
      %12 = vector.broadcast %cst_10 : f32 to vector<2x32xf32>
      %c0_11 = arith.constant 0 : index
      %c0_12 = arith.constant 0 : index
      %13 = vector.load %arg7[%c0_11, %c0_12] : memref<2x32xf32, #tpu.memory_space<vmem>>, vector<2x32xf32>
      tpu.vector_store %arg7[%c0_11, %c0_12], %12 {strides = array<i32>} : memref<2x32xf32, #tpu.memory_space<vmem>>, vector<2x32xf32>,
    } else {
    }
    %c0 = arith.constant 0 : index
    %c0_1 = arith.constant 0 : index
    %3 = vector.load %arg7[%c0, %c0_1] : memref<2x32xf32, #tpu.memory_space<vmem>>, vector<2x32xf32>
    %c0_2 = arith.constant 0 : index
    %c0_3 = arith.constant 0 : index
    %4 = vector.load %arg3[%c0_2, %c0_3] : memref<2x32xf32, #tpu.memory_space<vmem>>, vector<2x32xf32>
    %c0_4 = arith.constant 0 : index
    %c0_5 = arith.constant 0 : index
    %5 = vector.load %arg4[%c0_4, %c0_5] : memref<32x32xf32, #tpu.memory_space<vmem>>, vector<32x32xf32>
    %cst = arith.constant dense<0.000000e+00> : vector<2x32xf32>
    %6 = tpu.matmul %4, %5, %cst {dimension_numbers = #tpu.dot_dimension_numbers<[1], [0], [0], [1], [0, 0, 1, 1], [], []>} : vector<2x32xf32>, vector<32x32xf32>, vector<2x32xf32> -> vector<2x32xf32>
    %7 = arith.addf %3, %6 : vector<2x32xf32>
    %c0_6 = arith.constant 0 : index
    %c0_7 = arith.constant 0 : index
    %8 = vector.load %arg7[%c0_6, %c0_7] : memref<2x32xf32, #tpu.memory_space<vmem>>, vector<2x32xf32>
    tpu.vector_store %arg7[%c0_6, %c0_7], %7 {strides = array<i32>} : memref<2x32xf32, #tpu.memory_space<vmem>>, vector<2x32xf32>,
    %c0_i32_8 = arith.constant 0 : i32
    %9 = arith.cmpi eq, %arg2, %c0_i32_8 : i32
    %10 = arith.extui %9 : i1 to i32
    %c0_i32_9 = arith.constant 0 : i32
    %11 = arith.cmpi ne, %10, %c0_i32_9 : i32
    scf.if %11 {
      %c0_10 = arith.constant 0 : index
      %c0_11 = arith.constant 0 : index
      %12 = vector.load %arg7[%c0_10, %c0_11] : memref<2x32xf32, #tpu.memory_space<vmem>>, vector<2x32xf32>
      %c0_12 = arith.constant 0 : index
      %c0_13 = arith.constant 0 : index
      %13 = vector.load %arg5[%c0_12, %c0_13] : memref<1x32xf32, #tpu.memory_space<vmem>>, vector<1x32xf32>
      %14 = vector.broadcast %13 : vector<1x32xf32> to vector<2x32xf32>
      %15 = arith.addf %12, %14 : vector<2x32xf32>
      %c0_14 = arith.constant 0 : index
      %c0_15 = arith.constant 0 : index
      %16 = vector.load %arg6[%c0_14, %c0_15] : memref<2x32xf32, #tpu.memory_space<vmem>>, vector<2x32xf32>
      tpu.vector_store %arg6[%c0_14, %c0_15], %15 {strides = array<i32>} : memref<2x32xf32, #tpu.memory_space<vmem>>, vector<2x32xf32>,
    } else {
    }
    return
  }
  func.func @transform_0(%arg0: i32, %arg1: i32, %arg2: i32) -> (i32, i32) {
    %c0_i32 = arith.constant 0 : i32
    return %arg0, %arg2 : i32, i32
  }
  func.func @transform_1(%arg0: i32, %arg1: i32, %arg2: i32) -> (i32, i32) {
    %c0_i32 = arith.constant 0 : i32
    return %arg2, %arg1 : i32, i32
  }
  func.func @transform_2(%arg0: i32, %arg1: i32, %arg2: i32) -> (i32, i32) {
    %c0_i32 = arith.constant 0 : i32
    %c0_i32_0 = arith.constant 0 : i32
    return %c0_i32, %arg1 : i32, i32
  }
  func.func @transform_3(%arg0: i32, %arg1: i32, %arg2: i32) -> (i32, i32) {
    %c0_i32 = arith.constant 0 : i32
    return %arg0, %arg1 : i32, i32
  }
}

module attributes {stable_mosaic.version = 11 : i64} {
  func.func @_linear_kernel(%arg0: i32, %arg1: i32, %arg2: i32, %arg3: memref<2x64xf32, #tpu.memory_space<vmem>>, %arg4: memref<64x32xf32, #tpu.memory_space<vmem>>, %arg5: memref<1x32xf32, #tpu.memory_space<vmem>>, %arg6: memref<2x32xf32, #tpu.memory_space<vmem>>, %arg7: memref<2x32xf32, #tpu.memory_space<vmem>>) attributes {dimension_semantics = [#tpu.dimension_semantics<parallel>, #tpu.dimension_semantics<parallel>, #tpu.dimension_semantics<arbitrary>], iteration_bounds = array<i64: 1, 1, 1>, scalar_prefetch = 0 : i64, scratch_operands = 1 : i64, tpu.core_type = #tpu.core_type<tc>, window_params = [{transform_indices = @transform_0, window_bounds = array<i64: 2, 64>}, {transform_indices = @transform_1, window_bounds = array<i64: 64, 32>}, {transform_indices = @transform_2, window_bounds = array<i64: 1, 32>}, {transform_indices = @transform_3, window_bounds = array<i64: 2, 32>}]} {
    %c0_i32 = arith.constant 0 : i32
    %0 = arith.cmpi eq, %arg2, %c0_i32 : i32
    %1 = arith.extui %0 : i1 to i32
    %c0_i32_0 = arith.constant 0 : i32
    %2 = arith.cmpi ne, %1, %c0_i32_0 : i32
    scf.if %2 {
      %cst_10 = arith.constant 0.000000e+00 : f32
      %12 = vector.broadcast %cst_10 : f32 to vector<2x32xf32>
      %c0_11 = arith.constant 0 : index
      %c0_12 = arith.constant 0 : index
      %13 = vector.load %arg7[%c0_11, %c0_12] : memref<2x32xf32, #tpu.memory_space<vmem>>, vector<2x32xf32>
      tpu.vector_store %arg7[%c0_11, %c0_12], %12 {strides = array<i32>} : memref<2x32xf32, #tpu.memory_space<vmem>>, vector<2x32xf32>,
    } else {
    }
    %c0 = arith.constant 0 : index
    %c0_1 = arith.constant 0 : index
    %3 = vector.load %arg7[%c0, %c0_1] : memref<2x32xf32, #tpu.memory_space<vmem>>, vector<2x32xf32>
    %c0_2 = arith.constant 0 : index
    %c0_3 = arith.constant 0 : index
    %4 = vector.load %arg3[%c0_2, %c0_3] : memref<2x64xf32, #tpu.memory_space<vmem>>, vector<2x64xf32>
    %c0_4 = arith.constant 0 : index
    %c0_5 = arith.constant 0 : index
    %5 = vector.load %arg4[%c0_4, %c0_5] : memref<64x32xf32, #tpu.memory_space<vmem>>, vector<64x32xf32>
    %cst = arith.constant dense<0.000000e+00> : vector<2x32xf32>
    %6 = tpu.matmul %4, %5, %cst {dimension_numbers = #tpu.dot_dimension_numbers<[1], [0], [0], [1], [0, 0, 1, 1], [], []>} : vector<2x64xf32>, vector<64x32xf32>, vector<2x32xf32> -> vector<2x32xf32>
    %7 = arith.addf %3, %6 : vector<2x32xf32>
    %c0_6 = arith.constant 0 : index
    %c0_7 = arith.constant 0 : index
    %8 = vector.load %arg7[%c0_6, %c0_7] : memref<2x32xf32, #tpu.memory_space<vmem>>, vector<2x32xf32>
    tpu.vector_store %arg7[%c0_6, %c0_7], %7 {strides = array<i32>} : memref<2x32xf32, #tpu.memory_space<vmem>>, vector<2x32xf32>,
    %c0_i32_8 = arith.constant 0 : i32
    %9 = arith.cmpi eq, %arg2, %c0_i32_8 : i32
    %10 = arith.extui %9 : i1 to i32
    %c0_i32_9 = arith.constant 0 : i32
    %11 = arith.cmpi ne, %10, %c0_i32_9 : i32
    scf.if %11 {
      %c0_10 = arith.constant 0 : index
      %c0_11 = arith.constant 0 : index
      %12 = vector.load %arg7[%c0_10, %c0_11] : memref<2x32xf32, #tpu.memory_space<vmem>>, vector<2x32xf32>
      %c0_12 = arith.constant 0 : index
      %c0_13 = arith.constant 0 : index
      %13 = vector.load %arg5[%c0_12, %c0_13] : memref<1x32xf32, #tpu.memory_space<vmem>>, vector<1x32xf32>
      %14 = vector.broadcast %13 : vector<1x32xf32> to vector<2x32xf32>
      %15 = arith.addf %12, %14 : vector<2x32xf32>
      %c0_14 = arith.constant 0 : index
      %c0_15 = arith.constant 0 : index
      %16 = vector.load %arg6[%c0_14, %c0_15] : memref<2x32xf32, #tpu.memory_space<vmem>>, vector<2x32xf32>
      tpu.vector_store %arg6[%c0_14, %c0_15], %15 {strides = array<i32>} : memref<2x32xf32, #tpu.memory_space<vmem>>, vector<2x32xf32>,
    } else {
    }
    return
  }
  func.func @transform_0(%arg0: i32, %arg1: i32, %arg2: i32) -> (i32, i32) {
    %c0_i32 = arith.constant 0 : i32
    return %arg0, %arg2 : i32, i32
  }
  func.func @transform_1(%arg0: i32, %arg1: i32, %arg2: i32) -> (i32, i32) {
    %c0_i32 = arith.constant 0 : i32
    return %arg2, %arg1 : i32, i32
  }
  func.func @transform_2(%arg0: i32, %arg1: i32, %arg2: i32) -> (i32, i32) {
    %c0_i32 = arith.constant 0 : i32
    %c0_i32_0 = arith.constant 0 : i32
    return %c0_i32, %arg1 : i32, i32
  }
  func.func @transform_3(%arg0: i32, %arg1: i32, %arg2: i32) -> (i32, i32) {
    %c0_i32 = arith.constant 0 : i32
    return %arg0, %arg1 : i32, i32
  }
}

module attributes {stable_mosaic.version = 11 : i64} {
  func.func @_linear_kernel(%arg0: i32, %arg1: i32, %arg2: i32, %arg3: memref<2x32xf32, #tpu.memory_space<vmem>>, %arg4: memref<32x1xf32, #tpu.memory_space<vmem>>, %arg5: memref<1x1xf32, #tpu.memory_space<vmem>>, %arg6: memref<2x1xf32, #tpu.memory_space<vmem>>, %arg7: memref<2x1xf32, #tpu.memory_space<vmem>>) attributes {dimension_semantics = [#tpu.dimension_semantics<parallel>, #tpu.dimension_semantics<parallel>, #tpu.dimension_semantics<arbitrary>], iteration_bounds = array<i64: 1, 1, 1>, scalar_prefetch = 0 : i64, scratch_operands = 1 : i64, tpu.core_type = #tpu.core_type<tc>, window_params = [{transform_indices = @transform_0, window_bounds = array<i64: 2, 32>}, {transform_indices = @transform_1, window_bounds = array<i64: 32, 1>}, {transform_indices = @transform_2, window_bounds = array<i64: 1, 1>}, {transform_indices = @transform_3, window_bounds = array<i64: 2, 1>}]} {
    %c0_i32 = arith.constant 0 : i32
    %0 = arith.cmpi eq, %arg2, %c0_i32 : i32
    %1 = arith.extui %0 : i1 to i32
    %c0_i32_0 = arith.constant 0 : i32
    %2 = arith.cmpi ne, %1, %c0_i32_0 : i32
    scf.if %2 {
      %cst_10 = arith.constant 0.000000e+00 : f32
      %12 = vector.broadcast %cst_10 : f32 to vector<2x1xf32>
      %c0_11 = arith.constant 0 : index
      %c0_12 = arith.constant 0 : index
      %13 = vector.load %arg7[%c0_11, %c0_12] : memref<2x1xf32, #tpu.memory_space<vmem>>, vector<2x1xf32>
      tpu.vector_store %arg7[%c0_11, %c0_12], %12 {strides = array<i32>} : memref<2x1xf32, #tpu.memory_space<vmem>>, vector<2x1xf32>,
    } else {
    }
    %c0 = arith.constant 0 : index
    %c0_1 = arith.constant 0 : index
    %3 = vector.load %arg7[%c0, %c0_1] : memref<2x1xf32, #tpu.memory_space<vmem>>, vector<2x1xf32>
    %c0_2 = arith.constant 0 : index
    %c0_3 = arith.constant 0 : index
    %4 = vector.load %arg3[%c0_2, %c0_3] : memref<2x32xf32, #tpu.memory_space<vmem>>, vector<2x32xf32>
    %c0_4 = arith.constant 0 : index
    %c0_5 = arith.constant 0 : index
    %5 = vector.load %arg4[%c0_4, %c0_5] : memref<32x1xf32, #tpu.memory_space<vmem>>, vector<32x1xf32>
    %cst = arith.constant dense<0.000000e+00> : vector<2x1xf32>
    %6 = tpu.matmul %4, %5, %cst {dimension_numbers = #tpu.dot_dimension_numbers<[1], [0], [0], [1], [0, 0, 1, 1], [], []>} : vector<2x32xf32>, vector<32x1xf32>, vector<2x1xf32> -> vector<2x1xf32>
    %7 = arith.addf %3, %6 : vector<2x1xf32>
    %c0_6 = arith.constant 0 : index
    %c0_7 = arith.constant 0 : index
    %8 = vector.load %arg7[%c0_6, %c0_7] : memref<2x1xf32, #tpu.memory_space<vmem>>, vector<2x1xf32>
    tpu.vector_store %arg7[%c0_6, %c0_7], %7 {strides = array<i32>} : memref<2x1xf32, #tpu.memory_space<vmem>>, vector<2x1xf32>,
    %c0_i32_8 = arith.constant 0 : i32
    %9 = arith.cmpi eq, %arg2, %c0_i32_8 : i32
    %10 = arith.extui %9 : i1 to i32
    %c0_i32_9 = arith.constant 0 : i32
    %11 = arith.cmpi ne, %10, %c0_i32_9 : i32
    scf.if %11 {
      %c0_10 = arith.constant 0 : index
      %c0_11 = arith.constant 0 : index
      %12 = vector.load %arg7[%c0_10, %c0_11] : memref<2x1xf32, #tpu.memory_space<vmem>>, vector<2x1xf32>
      %c0_12 = arith.constant 0 : index
      %c0_13 = arith.constant 0 : index
      %13 = vector.load %arg5[%c0_12, %c0_13] : memref<1x1xf32, #tpu.memory_space<vmem>>, vector<1x1xf32>
      %14 = vector.broadcast %13 : vector<1x1xf32> to vector<2x1xf32>
      %15 = arith.addf %12, %14 : vector<2x1xf32>
      %cst_14 = arith.constant 0.000000e+00 : f32
      %16 = vector.broadcast %cst_14 : f32 to vector<2x1xf32>
      %17 = arith.subf %16, %15 : vector<2x1xf32>
      %18 = math.exp %17 : vector<2x1xf32>
      %cst_15 = arith.constant 1.000000e+00 : f32
      %19 = vector.broadcast %cst_15 : f32 to vector<2x1xf32>
      %20 = arith.addf %19, %18 : vector<2x1xf32>
      %cst_16 = arith.constant 1.000000e+00 : f32
      %21 = vector.broadcast %cst_16 : f32 to vector<2x1xf32>
      %22 = arith.divf %21, %20 : vector<2x1xf32>
      %c0_17 = arith.constant 0 : index
      %c0_18 = arith.constant 0 : index
      %23 = vector.load %arg6[%c0_17, %c0_18] : memref<2x1xf32, #tpu.memory_space<vmem>>, vector<2x1xf32>
      tpu.vector_store %arg6[%c0_17, %c0_18], %22 {strides = array<i32>} : memref<2x1xf32, #tpu.memory_space<vmem>>, vector<2x1xf32>,
    } else {
    }
    return
  }
  func.func @transform_0(%arg0: i32, %arg1: i32, %arg2: i32) -> (i32, i32) {
    %c0_i32 = arith.constant 0 : i32
    return %arg0, %arg2 : i32, i32
  }
  func.func @transform_1(%arg0: i32, %arg1: i32, %arg2: i32) -> (i32, i32) {
    %c0_i32 = arith.constant 0 : i32
    return %arg2, %arg1 : i32, i32
  }
  func.func @transform_2(%arg0: i32, %arg1: i32, %arg2: i32) -> (i32, i32) {
    %c0_i32 = arith.constant 0 : i32
    %c0_i32_0 = arith.constant 0 : i32
    return %c0_i32, %arg1 : i32, i32
  }
  func.func @transform_3(%arg0: i32, %arg1: i32, %arg2: i32) -> (i32, i32) {
    %c0_i32 = arith.constant 0 : i32
    return %arg0, %arg1 : i32, i32
  }
}

module attributes {stable_mosaic.version = 11 : i64} {
  func.func @_add_layernorm_kernel(%arg0: i32, %arg1: memref<2x32xf32, #tpu.memory_space<vmem>>, %arg2: memref<2x32xf32, #tpu.memory_space<vmem>>, %arg3: memref<1x32xf32, #tpu.memory_space<vmem>>, %arg4: memref<1x32xf32, #tpu.memory_space<vmem>>, %arg5: memref<2x32xf32, #tpu.memory_space<vmem>>) attributes {dimension_semantics = [#tpu.dimension_semantics<parallel>], iteration_bounds = array<i64: 1>, scalar_prefetch = 0 : i64, scratch_operands = 0 : i64, tpu.core_type = #tpu.core_type<tc>, window_params = [{transform_indices = @transform_0, window_bounds = array<i64: 2, 32>}, {transform_indices = @transform_1, window_bounds = array<i64: 2, 32>}, {pipeline_mode = #tpu.pipeline_mode<synchronous>, transform_indices = @transform_2, window_bounds = array<i64: 1, 32>}, {pipeline_mode = #tpu.pipeline_mode<synchronous>, transform_indices = @transform_3, window_bounds = array<i64: 1, 32>}, {transform_indices = @transform_4, window_bounds = array<i64: 2, 32>}]} {
    %c0 = arith.constant 0 : index
    %c0_0 = arith.constant 0 : index
    %0 = vector.load %arg1[%c0, %c0_0] : memref<2x32xf32, #tpu.memory_space<vmem>>, vector<2x32xf32>
    %c0_1 = arith.constant 0 : index
    %c0_2 = arith.constant 0 : index
    %1 = vector.load %arg2[%c0_1, %c0_2] : memref<2x32xf32, #tpu.memory_space<vmem>>, vector<2x32xf32>
    %2 = arith.addf %0, %1 : vector<2x32xf32>
    %cst = arith.constant dense<0.000000e+00> : vector<2xf32>
    %3 = vector.multi_reduction <add>, %2, %cst [1] : vector<2x32xf32> to vector<2xf32>
    %4 = vector.shape_cast %3 : vector<2xf32> to vector<2x1xf32>
    %cst_3 = arith.constant 3.200000e+01 : f32
    %5 = vector.broadcast %cst_3 : f32 to vector<2x1xf32>
    %6 = arith.divf %4, %5 : vector<2x1xf32>
    %7 = vector.broadcast %6 : vector<2x1xf32> to vector<2x32xf32>
    %8 = arith.subf %2, %7 : vector<2x32xf32>
    %9 = arith.mulf %8, %8 : vector<2x32xf32>
    %cst_4 = arith.constant dense<0.000000e+00> : vector<2xf32>
    %10 = vector.multi_reduction <add>, %9, %cst_4 [1] : vector<2x32xf32> to vector<2xf32>
    %11 = vector.shape_cast %10 : vector<2xf32> to vector<2x1xf32>
    %cst_5 = arith.constant 3.200000e+01 : f32
    %12 = vector.broadcast %cst_5 : f32 to vector<2x1xf32>
    %13 = arith.divf %11, %12 : vector<2x1xf32>
    %cst_6 = arith.constant 9.99999974E-6 : f32
    %14 = vector.broadcast %cst_6 : f32 to vector<2x1xf32>
    %15 = arith.addf %13, %14 : vector<2x1xf32>
    %16 = math.rsqrt %15 : vector<2x1xf32>
    %17 = vector.broadcast %16 : vector<2x1xf32> to vector<2x32xf32>
    %18 = arith.mulf %8, %17 : vector<2x32xf32>
    %c0_7 = arith.constant 0 : index
    %c0_8 = arith.constant 0 : index
    %19 = vector.load %arg3[%c0_7, %c0_8] : memref<1x32xf32, #tpu.memory_space<vmem>>, vector<1x32xf32>
    %20 = vector.broadcast %19 : vector<1x32xf32> to vector<2x32xf32>
    %21 = arith.mulf %18, %20 : vector<2x32xf32>
    %c0_9 = arith.constant 0 : index
    %c0_10 = arith.constant 0 : index
    %22 = vector.load %arg4[%c0_9, %c0_10] : memref<1x32xf32, #tpu.memory_space<vmem>>, vector<1x32xf32>
    %23 = vector.broadcast %22 : vector<1x32xf32> to vector<2x32xf32>
    %24 = arith.addf %21, %23 : vector<2x32xf32>
    %c0_11 = arith.constant 0 : index
    %c0_12 = arith.constant 0 : index
    %25 = vector.load %arg5[%c0_11, %c0_12] : memref<2x32xf32, #tpu.memory_space<vmem>>, vector<2x32xf32>
    tpu.vector_store %arg5[%c0_11, %c0_12], %24 {strides = array<i32>} : memref<2x32xf32, #tpu.memory_space<vmem>>, vector<2x32xf32>,
    return
  }
  func.func @transform_0(%arg0: i32) -> (i32, i32) {
    %c0_i32 = arith.constant 0 : i32
    %c0_i32_0 = arith.constant 0 : i32
    return %arg0, %c0_i32 : i32, i32
  }
  func.func @transform_1(%arg0: i32) -> (i32, i32) {
    %c0_i32 = arith.constant 0 : i32
    %c0_i32_0 = arith.constant 0 : i32
    return %arg0, %c0_i32 : i32, i32
  }
  func.func @transform_2(%arg0: i32) -> (i32, i32) {
    %c0_i32 = arith.constant 0 : i32
    %c0_i32_0 = arith.constant 0 : i32
    %c0_i32_1 = arith.constant 0 : i32
    return %c0_i32, %c0_i32_0 : i32, i32
  }
  func.func @transform_3(%arg0: i32) -> (i32, i32) {
    %c0_i32 = arith.constant 0 : i32
    %c0_i32_0 = arith.constant 0 : i32
    %c0_i32_1 = arith.constant 0 : i32
    return %c0_i32, %c0_i32_0 : i32, i32
  }
  func.func @transform_4(%arg0: i32) -> (i32, i32) {
    %c0_i32 = arith.constant 0 : i32
    %c0_i32_0 = arith.constant 0 : i32
    return %arg0, %c0_i32 : i32, i32
  }
}

module attributes {stable_mosaic.version = 11 : i64} {
  func.func @_linear_kernel(%arg0: i32, %arg1: i32, %arg2: i32, %arg3: memref<2x32xf32, #tpu.memory_space<vmem>>, %arg4: memref<32x64xf32, #tpu.memory_space<vmem>>, %arg5: memref<1x64xf32, #tpu.memory_space<vmem>>, %arg6: memref<2x64xf32, #tpu.memory_space<vmem>>, %arg7: memref<2x64xf32, #tpu.memory_space<vmem>>) attributes {dimension_semantics = [#tpu.dimension_semantics<parallel>, #tpu.dimension_semantics<parallel>, #tpu.dimension_semantics<arbitrary>], iteration_bounds = array<i64: 1, 1, 1>, scalar_prefetch = 0 : i64, scratch_operands = 1 : i64, tpu.core_type = #tpu.core_type<tc>, window_params = [{transform_indices = @transform_0, window_bounds = array<i64: 2, 32>}, {transform_indices = @transform_1, window_bounds = array<i64: 32, 64>}, {transform_indices = @transform_2, window_bounds = array<i64: 1, 64>}, {transform_indices = @transform_3, window_bounds = array<i64: 2, 64>}]} {
    %c0_i32 = arith.constant 0 : i32
    %0 = arith.cmpi eq, %arg2, %c0_i32 : i32
    %1 = arith.extui %0 : i1 to i32
    %c0_i32_0 = arith.constant 0 : i32
    %2 = arith.cmpi ne, %1, %c0_i32_0 : i32
    scf.if %2 {
      %cst_10 = arith.constant 0.000000e+00 : f32
      %12 = vector.broadcast %cst_10 : f32 to vector<2x64xf32>
      %c0_11 = arith.constant 0 : index
      %c0_12 = arith.constant 0 : index
      %13 = vector.load %arg7[%c0_11, %c0_12] : memref<2x64xf32, #tpu.memory_space<vmem>>, vector<2x64xf32>
      tpu.vector_store %arg7[%c0_11, %c0_12], %12 {strides = array<i32>} : memref<2x64xf32, #tpu.memory_space<vmem>>, vector<2x64xf32>,
    } else {
    }
    %c0 = arith.constant 0 : index
    %c0_1 = arith.constant 0 : index
    %3 = vector.load %arg7[%c0, %c0_1] : memref<2x64xf32, #tpu.memory_space<vmem>>, vector<2x64xf32>
    %c0_2 = arith.constant 0 : index
    %c0_3 = arith.constant 0 : index
    %4 = vector.load %arg3[%c0_2, %c0_3] : memref<2x32xf32, #tpu.memory_space<vmem>>, vector<2x32xf32>
    %c0_4 = arith.constant 0 : index
    %c0_5 = arith.constant 0 : index
    %5 = vector.load %arg4[%c0_4, %c0_5] : memref<32x64xf32, #tpu.memory_space<vmem>>, vector<32x64xf32>
    %cst = arith.constant dense<0.000000e+00> : vector<2x64xf32>
    %6 = tpu.matmul %4, %5, %cst {dimension_numbers = #tpu.dot_dimension_numbers<[1], [0], [0], [1], [0, 0, 1, 1], [], []>} : vector<2x32xf32>, vector<32x64xf32>, vector<2x64xf32> -> vector<2x64xf32>
    %7 = arith.addf %3, %6 : vector<2x64xf32>
    %c0_6 = arith.constant 0 : index
    %c0_7 = arith.constant 0 : index
    %8 = vector.load %arg7[%c0_6, %c0_7] : memref<2x64xf32, #tpu.memory_space<vmem>>, vector<2x64xf32>
    tpu.vector_store %arg7[%c0_6, %c0_7], %7 {strides = array<i32>} : memref<2x64xf32, #tpu.memory_space<vmem>>, vector<2x64xf32>,
    %c0_i32_8 = arith.constant 0 : i32
    %9 = arith.cmpi eq, %arg2, %c0_i32_8 : i32
    %10 = arith.extui %9 : i1 to i32
    %c0_i32_9 = arith.constant 0 : i32
    %11 = arith.cmpi ne, %10, %c0_i32_9 : i32
    scf.if %11 {
      %c0_10 = arith.constant 0 : index
      %c0_11 = arith.constant 0 : index
      %12 = vector.load %arg7[%c0_10, %c0_11] : memref<2x64xf32, #tpu.memory_space<vmem>>, vector<2x64xf32>
      %c0_12 = arith.constant 0 : index
      %c0_13 = arith.constant 0 : index
      %13 = vector.load %arg5[%c0_12, %c0_13] : memref<1x64xf32, #tpu.memory_space<vmem>>, vector<1x64xf32>
      %14 = vector.broadcast %13 : vector<1x64xf32> to vector<2x64xf32>
      %15 = arith.addf %12, %14 : vector<2x64xf32>
      %cst_14 = arith.constant 0.000000e+00 : f32
      %16 = vector.broadcast %cst_14 : f32 to vector<2x64xf32>
      %17 = arith.maximumf %15, %16 : vector<2x64xf32>
      %c0_15 = arith.constant 0 : index
      %c0_16 = arith.constant 0 : index
      %18 = vector.load %arg6[%c0_15, %c0_16] : memref<2x64xf32, #tpu.memory_space<vmem>>, vector<2x64xf32>
      tpu.vector_store %arg6[%c0_15, %c0_16], %17 {strides = array<i32>} : memref<2x64xf32, #tpu.memory_space<vmem>>, vector<2x64xf32>,
    } else {
    }
    return
  }
  func.func @transform_0(%arg0: i32, %arg1: i32, %arg2: i32) -> (i32, i32) {
    %c0_i32 = arith.constant 0 : i32
    return %arg0, %arg2 : i32, i32
  }
  func.func @transform_1(%arg0: i32, %arg1: i32, %arg2: i32) -> (i32, i32) {
    %c0_i32 = arith.constant 0 : i32
    return %arg2, %arg1 : i32, i32
  }
  func.func @transform_2(%arg0: i32, %arg1: i32, %arg2: i32) -> (i32, i32) {
    %c0_i32 = arith.constant 0 : i32
    %c0_i32_0 = arith.constant 0 : i32
    return %c0_i32, %arg1 : i32, i32
  }
  func.func @transform_3(%arg0: i32, %arg1: i32, %arg2: i32) -> (i32, i32) {
    %c0_i32 = arith.constant 0 : i32
    return %arg0, %arg1 : i32, i32
  }
}

module attributes {stable_mosaic.version = 11 : i64} {
  func.func @_linear_kernel(%arg0: i32, %arg1: i32, %arg2: i32, %arg3: memref<2x32xf32, #tpu.memory_space<vmem>>, %arg4: memref<32x16xf32, #tpu.memory_space<vmem>>, %arg5: memref<1x16xf32, #tpu.memory_space<vmem>>, %arg6: memref<2x16xf32, #tpu.memory_space<vmem>>, %arg7: memref<2x16xf32, #tpu.memory_space<vmem>>) attributes {dimension_semantics = [#tpu.dimension_semantics<parallel>, #tpu.dimension_semantics<parallel>, #tpu.dimension_semantics<arbitrary>], iteration_bounds = array<i64: 1, 1, 1>, scalar_prefetch = 0 : i64, scratch_operands = 1 : i64, tpu.core_type = #tpu.core_type<tc>, window_params = [{transform_indices = @transform_0, window_bounds = array<i64: 2, 32>}, {transform_indices = @transform_1, window_bounds = array<i64: 32, 16>}, {transform_indices = @transform_2, window_bounds = array<i64: 1, 16>}, {transform_indices = @transform_3, window_bounds = array<i64: 2, 16>}]} {
    %c0_i32 = arith.constant 0 : i32
    %0 = arith.cmpi eq, %arg2, %c0_i32 : i32
    %1 = arith.extui %0 : i1 to i32
    %c0_i32_0 = arith.constant 0 : i32
    %2 = arith.cmpi ne, %1, %c0_i32_0 : i32
    scf.if %2 {
      %cst_10 = arith.constant 0.000000e+00 : f32
      %12 = vector.broadcast %cst_10 : f32 to vector<2x16xf32>
      %c0_11 = arith.constant 0 : index
      %c0_12 = arith.constant 0 : index
      %13 = vector.load %arg7[%c0_11, %c0_12] : memref<2x16xf32, #tpu.memory_space<vmem>>, vector<2x16xf32>
      tpu.vector_store %arg7[%c0_11, %c0_12], %12 {strides = array<i32>} : memref<2x16xf32, #tpu.memory_space<vmem>>, vector<2x16xf32>,
    } else {
    }
    %c0 = arith.constant 0 : index
    %c0_1 = arith.constant 0 : index
    %3 = vector.load %arg7[%c0, %c0_1] : memref<2x16xf32, #tpu.memory_space<vmem>>, vector<2x16xf32>
    %c0_2 = arith.constant 0 : index
    %c0_3 = arith.constant 0 : index
    %4 = vector.load %arg3[%c0_2, %c0_3] : memref<2x32xf32, #tpu.memory_space<vmem>>, vector<2x32xf32>
    %c0_4 = arith.constant 0 : index
    %c0_5 = arith.constant 0 : index
    %5 = vector.load %arg4[%c0_4, %c0_5] : memref<32x16xf32, #tpu.memory_space<vmem>>, vector<32x16xf32>
    %cst = arith.constant dense<0.000000e+00> : vector<2x16xf32>
    %6 = tpu.matmul %4, %5, %cst {dimension_numbers = #tpu.dot_dimension_numbers<[1], [0], [0], [1], [0, 0, 1, 1], [], []>} : vector<2x32xf32>, vector<32x16xf32>, vector<2x16xf32> -> vector<2x16xf32>
    %7 = arith.addf %3, %6 : vector<2x16xf32>
    %c0_6 = arith.constant 0 : index
    %c0_7 = arith.constant 0 : index
    %8 = vector.load %arg7[%c0_6, %c0_7] : memref<2x16xf32, #tpu.memory_space<vmem>>, vector<2x16xf32>
    tpu.vector_store %arg7[%c0_6, %c0_7], %7 {strides = array<i32>} : memref<2x16xf32, #tpu.memory_space<vmem>>, vector<2x16xf32>,
    %c0_i32_8 = arith.constant 0 : i32
    %9 = arith.cmpi eq, %arg2, %c0_i32_8 : i32
    %10 = arith.extui %9 : i1 to i32
    %c0_i32_9 = arith.constant 0 : i32
    %11 = arith.cmpi ne, %10, %c0_i32_9 : i32
    scf.if %11 {
      %c0_10 = arith.constant 0 : index
      %c0_11 = arith.constant 0 : index
      %12 = vector.load %arg7[%c0_10, %c0_11] : memref<2x16xf32, #tpu.memory_space<vmem>>, vector<2x16xf32>
      %c0_12 = arith.constant 0 : index
      %c0_13 = arith.constant 0 : index
      %13 = vector.load %arg5[%c0_12, %c0_13] : memref<1x16xf32, #tpu.memory_space<vmem>>, vector<1x16xf32>
      %14 = vector.broadcast %13 : vector<1x16xf32> to vector<2x16xf32>
      %15 = arith.addf %12, %14 : vector<2x16xf32>
      %c0_14 = arith.constant 0 : index
      %c0_15 = arith.constant 0 : index
      %16 = vector.load %arg6[%c0_14, %c0_15] : memref<2x16xf32, #tpu.memory_space<vmem>>, vector<2x16xf32>
      tpu.vector_store %arg6[%c0_14, %c0_15], %15 {strides = array<i32>} : memref<2x16xf32, #tpu.memory_space<vmem>>, vector<2x16xf32>,
    } else {
    }
    return
  }
  func.func @transform_0(%arg0: i32, %arg1: i32, %arg2: i32) -> (i32, i32) {
    %c0_i32 = arith.constant 0 : i32
    return %arg0, %arg2 : i32, i32
  }
  func.func @transform_1(%arg0: i32, %arg1: i32, %arg2: i32) -> (i32, i32) {
    %c0_i32 = arith.constant 0 : i32
    return %arg2, %arg1 : i32, i32
  }
  func.func @transform_2(%arg0: i32, %arg1: i32, %arg2: i32) -> (i32, i32) {
    %c0_i32 = arith.constant 0 : i32
    %c0_i32_0 = arith.constant 0 : i32
    return %c0_i32, %arg1 : i32, i32
  }
  func.func @transform_3(%arg0: i32, %arg1: i32, %arg2: i32) -> (i32, i32) {
    %c0_i32 = arith.constant 0 : i32
    return %arg0, %arg1 : i32, i32
  }
}

module attributes {stable_mosaic.version = 11 : i64} {
  func.func @_linear_kernel(%arg0: i32, %arg1: i32, %arg2: i32, %arg3: memref<2x256xf32, #tpu.memory_space<vmem>>, %arg4: memref<256x16xf32, #tpu.memory_space<vmem>>, %arg5: memref<1x16xf32, #tpu.memory_space<vmem>>, %arg6: memref<2x16xf32, #tpu.memory_space<vmem>>, %arg7: memref<2x16xf32, #tpu.memory_space<vmem>>) attributes {dimension_semantics = [#tpu.dimension_semantics<parallel>, #tpu.dimension_semantics<parallel>, #tpu.dimension_semantics<arbitrary>], iteration_bounds = array<i64: 1, 1, 1>, scalar_prefetch = 0 : i64, scratch_operands = 1 : i64, tpu.core_type = #tpu.core_type<tc>, window_params = [{transform_indices = @transform_0, window_bounds = array<i64: 2, 256>}, {transform_indices = @transform_1, window_bounds = array<i64: 256, 16>}, {transform_indices = @transform_2, window_bounds = array<i64: 1, 16>}, {transform_indices = @transform_3, window_bounds = array<i64: 2, 16>}]} {
    %c0_i32 = arith.constant 0 : i32
    %0 = arith.cmpi eq, %arg2, %c0_i32 : i32
    %1 = arith.extui %0 : i1 to i32
    %c0_i32_0 = arith.constant 0 : i32
    %2 = arith.cmpi ne, %1, %c0_i32_0 : i32
    scf.if %2 {
      %cst_10 = arith.constant 0.000000e+00 : f32
      %12 = vector.broadcast %cst_10 : f32 to vector<2x16xf32>
      %c0_11 = arith.constant 0 : index
      %c0_12 = arith.constant 0 : index
      %13 = vector.load %arg7[%c0_11, %c0_12] : memref<2x16xf32, #tpu.memory_space<vmem>>, vector<2x16xf32>
      tpu.vector_store %arg7[%c0_11, %c0_12], %12 {strides = array<i32>} : memref<2x16xf32, #tpu.memory_space<vmem>>, vector<2x16xf32>,
    } else {
    }
    %c0 = arith.constant 0 : index
    %c0_1 = arith.constant 0 : index
    %3 = vector.load %arg7[%c0, %c0_1] : memref<2x16xf32, #tpu.memory_space<vmem>>, vector<2x16xf32>
    %c0_2 = arith.constant 0 : index
    %c0_3 = arith.constant 0 : index
    %4 = vector.load %arg3[%c0_2, %c0_3] : memref<2x256xf32, #tpu.memory_space<vmem>>, vector<2x256xf32>
    %c0_4 = arith.constant 0 : index
    %c0_5 = arith.constant 0 : index
    %5 = vector.load %arg4[%c0_4, %c0_5] : memref<256x16xf32, #tpu.memory_space<vmem>>, vector<256x16xf32>
    %cst = arith.constant dense<0.000000e+00> : vector<2x16xf32>
    %6 = tpu.matmul %4, %5, %cst {dimension_numbers = #tpu.dot_dimension_numbers<[1], [0], [0], [1], [0, 0, 1, 1], [], []>} : vector<2x256xf32>, vector<256x16xf32>, vector<2x16xf32> -> vector<2x16xf32>
    %7 = arith.addf %3, %6 : vector<2x16xf32>
    %c0_6 = arith.constant 0 : index
    %c0_7 = arith.constant 0 : index
    %8 = vector.load %arg7[%c0_6, %c0_7] : memref<2x16xf32, #tpu.memory_space<vmem>>, vector<2x16xf32>
    tpu.vector_store %arg7[%c0_6, %c0_7], %7 {strides = array<i32>} : memref<2x16xf32, #tpu.memory_space<vmem>>, vector<2x16xf32>,
    %c0_i32_8 = arith.constant 0 : i32
    %9 = arith.cmpi eq, %arg2, %c0_i32_8 : i32
    %10 = arith.extui %9 : i1 to i32
    %c0_i32_9 = arith.constant 0 : i32
    %11 = arith.cmpi ne, %10, %c0_i32_9 : i32
    scf.if %11 {
      %c0_10 = arith.constant 0 : index
      %c0_11 = arith.constant 0 : index
      %12 = vector.load %arg7[%c0_10, %c0_11] : memref<2x16xf32, #tpu.memory_space<vmem>>, vector<2x16xf32>
      %c0_12 = arith.constant 0 : index
      %c0_13 = arith.constant 0 : index
      %13 = vector.load %arg5[%c0_12, %c0_13] : memref<1x16xf32, #tpu.memory_space<vmem>>, vector<1x16xf32>
      %14 = vector.broadcast %13 : vector<1x16xf32> to vector<2x16xf32>
      %15 = arith.addf %12, %14 : vector<2x16xf32>
      %c0_14 = arith.constant 0 : index
      %c0_15 = arith.constant 0 : index
      %16 = vector.load %arg6[%c0_14, %c0_15] : memref<2x16xf32, #tpu.memory_space<vmem>>, vector<2x16xf32>
      tpu.vector_store %arg6[%c0_14, %c0_15], %15 {strides = array<i32>} : memref<2x16xf32, #tpu.memory_space<vmem>>, vector<2x16xf32>,
    } else {
    }
    return
  }
  func.func @transform_0(%arg0: i32, %arg1: i32, %arg2: i32) -> (i32, i32) {
    %c0_i32 = arith.constant 0 : i32
    return %arg0, %arg2 : i32, i32
  }
  func.func @transform_1(%arg0: i32, %arg1: i32, %arg2: i32) -> (i32, i32) {
    %c0_i32 = arith.constant 0 : i32
    return %arg2, %arg1 : i32, i32
  }
  func.func @transform_2(%arg0: i32, %arg1: i32, %arg2: i32) -> (i32, i32) {
    %c0_i32 = arith.constant 0 : i32
    %c0_i32_0 = arith.constant 0 : i32
    return %c0_i32, %arg1 : i32, i32
  }
  func.func @transform_3(%arg0: i32, %arg1: i32, %arg2: i32) -> (i32, i32) {
    %c0_i32 = arith.constant 0 : i32
    return %arg0, %arg1 : i32, i32
  }
}

module attributes {stable_mosaic.version = 11 : i64} {
  func.func @_linear_kernel(%arg0: i32, %arg1: i32, %arg2: i32, %arg3: memref<2x16xf32, #tpu.memory_space<vmem>>, %arg4: memref<16x32xf32, #tpu.memory_space<vmem>>, %arg5: memref<1x32xf32, #tpu.memory_space<vmem>>, %arg6: memref<2x32xf32, #tpu.memory_space<vmem>>, %arg7: memref<2x32xf32, #tpu.memory_space<vmem>>) attributes {dimension_semantics = [#tpu.dimension_semantics<parallel>, #tpu.dimension_semantics<parallel>, #tpu.dimension_semantics<arbitrary>], iteration_bounds = array<i64: 1, 1, 1>, scalar_prefetch = 0 : i64, scratch_operands = 1 : i64, tpu.core_type = #tpu.core_type<tc>, window_params = [{transform_indices = @transform_0, window_bounds = array<i64: 2, 16>}, {transform_indices = @transform_1, window_bounds = array<i64: 16, 32>}, {transform_indices = @transform_2, window_bounds = array<i64: 1, 32>}, {transform_indices = @transform_3, window_bounds = array<i64: 2, 32>}]} {
    %c0_i32 = arith.constant 0 : i32
    %0 = arith.cmpi eq, %arg2, %c0_i32 : i32
    %1 = arith.extui %0 : i1 to i32
    %c0_i32_0 = arith.constant 0 : i32
    %2 = arith.cmpi ne, %1, %c0_i32_0 : i32
    scf.if %2 {
      %cst_10 = arith.constant 0.000000e+00 : f32
      %12 = vector.broadcast %cst_10 : f32 to vector<2x32xf32>
      %c0_11 = arith.constant 0 : index
      %c0_12 = arith.constant 0 : index
      %13 = vector.load %arg7[%c0_11, %c0_12] : memref<2x32xf32, #tpu.memory_space<vmem>>, vector<2x32xf32>
      tpu.vector_store %arg7[%c0_11, %c0_12], %12 {strides = array<i32>} : memref<2x32xf32, #tpu.memory_space<vmem>>, vector<2x32xf32>,
    } else {
    }
    %c0 = arith.constant 0 : index
    %c0_1 = arith.constant 0 : index
    %3 = vector.load %arg7[%c0, %c0_1] : memref<2x32xf32, #tpu.memory_space<vmem>>, vector<2x32xf32>
    %c0_2 = arith.constant 0 : index
    %c0_3 = arith.constant 0 : index
    %4 = vector.load %arg3[%c0_2, %c0_3] : memref<2x16xf32, #tpu.memory_space<vmem>>, vector<2x16xf32>
    %c0_4 = arith.constant 0 : index
    %c0_5 = arith.constant 0 : index
    %5 = vector.load %arg4[%c0_4, %c0_5] : memref<16x32xf32, #tpu.memory_space<vmem>>, vector<16x32xf32>
    %cst = arith.constant dense<0.000000e+00> : vector<2x32xf32>
    %6 = tpu.matmul %4, %5, %cst {dimension_numbers = #tpu.dot_dimension_numbers<[1], [0], [0], [1], [0, 0, 1, 1], [], []>} : vector<2x16xf32>, vector<16x32xf32>, vector<2x32xf32> -> vector<2x32xf32>
    %7 = arith.addf %3, %6 : vector<2x32xf32>
    %c0_6 = arith.constant 0 : index
    %c0_7 = arith.constant 0 : index
    %8 = vector.load %arg7[%c0_6, %c0_7] : memref<2x32xf32, #tpu.memory_space<vmem>>, vector<2x32xf32>
    tpu.vector_store %arg7[%c0_6, %c0_7], %7 {strides = array<i32>} : memref<2x32xf32, #tpu.memory_space<vmem>>, vector<2x32xf32>,
    %c0_i32_8 = arith.constant 0 : i32
    %9 = arith.cmpi eq, %arg2, %c0_i32_8 : i32
    %10 = arith.extui %9 : i1 to i32
    %c0_i32_9 = arith.constant 0 : i32
    %11 = arith.cmpi ne, %10, %c0_i32_9 : i32
    scf.if %11 {
      %c0_10 = arith.constant 0 : index
      %c0_11 = arith.constant 0 : index
      %12 = vector.load %arg7[%c0_10, %c0_11] : memref<2x32xf32, #tpu.memory_space<vmem>>, vector<2x32xf32>
      %c0_12 = arith.constant 0 : index
      %c0_13 = arith.constant 0 : index
      %13 = vector.load %arg5[%c0_12, %c0_13] : memref<1x32xf32, #tpu.memory_space<vmem>>, vector<1x32xf32>
      %14 = vector.broadcast %13 : vector<1x32xf32> to vector<2x32xf32>
      %15 = arith.addf %12, %14 : vector<2x32xf32>
      %c0_14 = arith.constant 0 : index
      %c0_15 = arith.constant 0 : index
      %16 = vector.load %arg6[%c0_14, %c0_15] : memref<2x32xf32, #tpu.memory_space<vmem>>, vector<2x32xf32>
      tpu.vector_store %arg6[%c0_14, %c0_15], %15 {strides = array<i32>} : memref<2x32xf32, #tpu.memory_space<vmem>>, vector<2x32xf32>,
    } else {
    }
    return
  }
  func.func @transform_0(%arg0: i32, %arg1: i32, %arg2: i32) -> (i32, i32) {
    %c0_i32 = arith.constant 0 : i32
    return %arg0, %arg2 : i32, i32
  }
  func.func @transform_1(%arg0: i32, %arg1: i32, %arg2: i32) -> (i32, i32) {
    %c0_i32 = arith.constant 0 : i32
    return %arg2, %arg1 : i32, i32
  }
  func.func @transform_2(%arg0: i32, %arg1: i32, %arg2: i32) -> (i32, i32) {
    %c0_i32 = arith.constant 0 : i32
    %c0_i32_0 = arith.constant 0 : i32
    return %c0_i32, %arg1 : i32, i32
  }
  func.func @transform_3(%arg0: i32, %arg1: i32, %arg2: i32) -> (i32, i32) {
    %c0_i32 = arith.constant 0 : i32
    return %arg0, %arg1 : i32, i32
  }
}

module attributes {stable_mosaic.version = 11 : i64} {
  func.func @_linear_kernel(%arg0: i32, %arg1: i32, %arg2: i32, %arg3: memref<16x32xf32, #tpu.memory_space<vmem>>, %arg4: memref<32x96xf32, #tpu.memory_space<vmem>>, %arg5: memref<1x96xf32, #tpu.memory_space<vmem>>, %arg6: memref<16x96xf32, #tpu.memory_space<vmem>>, %arg7: memref<16x96xf32, #tpu.memory_space<vmem>>) attributes {dimension_semantics = [#tpu.dimension_semantics<parallel>, #tpu.dimension_semantics<parallel>, #tpu.dimension_semantics<arbitrary>], iteration_bounds = array<i64: 1, 1, 1>, scalar_prefetch = 0 : i64, scratch_operands = 1 : i64, tpu.core_type = #tpu.core_type<tc>, window_params = [{transform_indices = @transform_0, window_bounds = array<i64: 16, 32>}, {transform_indices = @transform_1, window_bounds = array<i64: 32, 96>}, {transform_indices = @transform_2, window_bounds = array<i64: 1, 96>}, {transform_indices = @transform_3, window_bounds = array<i64: 16, 96>}]} {
    %c0_i32 = arith.constant 0 : i32
    %0 = arith.cmpi eq, %arg2, %c0_i32 : i32
    %1 = arith.extui %0 : i1 to i32
    %c0_i32_0 = arith.constant 0 : i32
    %2 = arith.cmpi ne, %1, %c0_i32_0 : i32
    scf.if %2 {
      %cst_10 = arith.constant 0.000000e+00 : f32
      %12 = vector.broadcast %cst_10 : f32 to vector<16x96xf32>
      %c0_11 = arith.constant 0 : index
      %c0_12 = arith.constant 0 : index
      %13 = vector.load %arg7[%c0_11, %c0_12] : memref<16x96xf32, #tpu.memory_space<vmem>>, vector<16x96xf32>
      tpu.vector_store %arg7[%c0_11, %c0_12], %12 {strides = array<i32>} : memref<16x96xf32, #tpu.memory_space<vmem>>, vector<16x96xf32>,
    } else {
    }
    %c0 = arith.constant 0 : index
    %c0_1 = arith.constant 0 : index
    %3 = vector.load %arg7[%c0, %c0_1] : memref<16x96xf32, #tpu.memory_space<vmem>>, vector<16x96xf32>
    %c0_2 = arith.constant 0 : index
    %c0_3 = arith.constant 0 : index
    %4 = vector.load %arg3[%c0_2, %c0_3] : memref<16x32xf32, #tpu.memory_space<vmem>>, vector<16x32xf32>
    %c0_4 = arith.constant 0 : index
    %c0_5 = arith.constant 0 : index
    %5 = vector.load %arg4[%c0_4, %c0_5] : memref<32x96xf32, #tpu.memory_space<vmem>>, vector<32x96xf32>
    %cst = arith.constant dense<0.000000e+00> : vector<16x96xf32>
    %6 = tpu.matmul %4, %5, %cst {dimension_numbers = #tpu.dot_dimension_numbers<[1], [0], [0], [1], [0, 0, 1, 1], [], []>} : vector<16x32xf32>, vector<32x96xf32>, vector<16x96xf32> -> vector<16x96xf32>
    %7 = arith.addf %3, %6 : vector<16x96xf32>
    %c0_6 = arith.constant 0 : index
    %c0_7 = arith.constant 0 : index
    %8 = vector.load %arg7[%c0_6, %c0_7] : memref<16x96xf32, #tpu.memory_space<vmem>>, vector<16x96xf32>
    tpu.vector_store %arg7[%c0_6, %c0_7], %7 {strides = array<i32>} : memref<16x96xf32, #tpu.memory_space<vmem>>, vector<16x96xf32>,
    %c0_i32_8 = arith.constant 0 : i32
    %9 = arith.cmpi eq, %arg2, %c0_i32_8 : i32
    %10 = arith.extui %9 : i1 to i32
    %c0_i32_9 = arith.constant 0 : i32
    %11 = arith.cmpi ne, %10, %c0_i32_9 : i32
    scf.if %11 {
      %c0_10 = arith.constant 0 : index
      %c0_11 = arith.constant 0 : index
      %12 = vector.load %arg7[%c0_10, %c0_11] : memref<16x96xf32, #tpu.memory_space<vmem>>, vector<16x96xf32>
      %c0_12 = arith.constant 0 : index
      %c0_13 = arith.constant 0 : index
      %13 = vector.load %arg5[%c0_12, %c0_13] : memref<1x96xf32, #tpu.memory_space<vmem>>, vector<1x96xf32>
      %14 = vector.broadcast %13 : vector<1x96xf32> to vector<16x96xf32>
      %15 = arith.addf %12, %14 : vector<16x96xf32>
      %c0_14 = arith.constant 0 : index
      %c0_15 = arith.constant 0 : index
      %16 = vector.load %arg6[%c0_14, %c0_15] : memref<16x96xf32, #tpu.memory_space<vmem>>, vector<16x96xf32>
      tpu.vector_store %arg6[%c0_14, %c0_15], %15 {strides = array<i32>} : memref<16x96xf32, #tpu.memory_space<vmem>>, vector<16x96xf32>,
    } else {
    }
    return
  }
  func.func @transform_0(%arg0: i32, %arg1: i32, %arg2: i32) -> (i32, i32) {
    %c0_i32 = arith.constant 0 : i32
    return %arg0, %arg2 : i32, i32
  }
  func.func @transform_1(%arg0: i32, %arg1: i32, %arg2: i32) -> (i32, i32) {
    %c0_i32 = arith.constant 0 : i32
    return %arg2, %arg1 : i32, i32
  }
  func.func @transform_2(%arg0: i32, %arg1: i32, %arg2: i32) -> (i32, i32) {
    %c0_i32 = arith.constant 0 : i32
    %c0_i32_0 = arith.constant 0 : i32
    return %c0_i32, %arg1 : i32, i32
  }
  func.func @transform_3(%arg0: i32, %arg1: i32, %arg2: i32) -> (i32, i32) {
    %c0_i32 = arith.constant 0 : i32
    return %arg0, %arg1 : i32, i32
  }
}

module attributes {stable_mosaic.version = 11 : i64} {
  func.func @_add_layernorm_kernel(%arg0: i32, %arg1: memref<16x32xf32, #tpu.memory_space<vmem>>, %arg2: memref<16x32xf32, #tpu.memory_space<vmem>>, %arg3: memref<1x32xf32, #tpu.memory_space<vmem>>, %arg4: memref<1x32xf32, #tpu.memory_space<vmem>>, %arg5: memref<16x32xf32, #tpu.memory_space<vmem>>) attributes {dimension_semantics = [#tpu.dimension_semantics<parallel>], iteration_bounds = array<i64: 1>, scalar_prefetch = 0 : i64, scratch_operands = 0 : i64, tpu.core_type = #tpu.core_type<tc>, window_params = [{transform_indices = @transform_0, window_bounds = array<i64: 16, 32>}, {transform_indices = @transform_1, window_bounds = array<i64: 16, 32>}, {pipeline_mode = #tpu.pipeline_mode<synchronous>, transform_indices = @transform_2, window_bounds = array<i64: 1, 32>}, {pipeline_mode = #tpu.pipeline_mode<synchronous>, transform_indices = @transform_3, window_bounds = array<i64: 1, 32>}, {transform_indices = @transform_4, window_bounds = array<i64: 16, 32>}]} {
    %c0 = arith.constant 0 : index
    %c0_0 = arith.constant 0 : index
    %0 = vector.load %arg1[%c0, %c0_0] : memref<16x32xf32, #tpu.memory_space<vmem>>, vector<16x32xf32>
    %c0_1 = arith.constant 0 : index
    %c0_2 = arith.constant 0 : index
    %1 = vector.load %arg2[%c0_1, %c0_2] : memref<16x32xf32, #tpu.memory_space<vmem>>, vector<16x32xf32>
    %2 = arith.addf %0, %1 : vector<16x32xf32>
    %cst = arith.constant dense<0.000000e+00> : vector<16xf32>
    %3 = vector.multi_reduction <add>, %2, %cst [1] : vector<16x32xf32> to vector<16xf32>
    %4 = vector.shape_cast %3 : vector<16xf32> to vector<16x1xf32>
    %cst_3 = arith.constant 3.200000e+01 : f32
    %5 = vector.broadcast %cst_3 : f32 to vector<16x1xf32>
    %6 = arith.divf %4, %5 : vector<16x1xf32>
    %7 = vector.broadcast %6 : vector<16x1xf32> to vector<16x32xf32>
    %8 = arith.subf %2, %7 : vector<16x32xf32>
    %9 = arith.mulf %8, %8 : vector<16x32xf32>
    %cst_4 = arith.constant dense<0.000000e+00> : vector<16xf32>
    %10 = vector.multi_reduction <add>, %9, %cst_4 [1] : vector<16x32xf32> to vector<16xf32>
    %11 = vector.shape_cast %10 : vector<16xf32> to vector<16x1xf32>
    %cst_5 = arith.constant 3.200000e+01 : f32
    %12 = vector.broadcast %cst_5 : f32 to vector<16x1xf32>
    %13 = arith.divf %11, %12 : vector<16x1xf32>
    %cst_6 = arith.constant 9.99999974E-6 : f32
    %14 = vector.broadcast %cst_6 : f32 to vector<16x1xf32>
    %15 = arith.addf %13, %14 : vector<16x1xf32>
    %16 = math.rsqrt %15 : vector<16x1xf32>
    %17 = vector.broadcast %16 : vector<16x1xf32> to vector<16x32xf32>
    %18 = arith.mulf %8, %17 : vector<16x32xf32>
    %c0_7 = arith.constant 0 : index
    %c0_8 = arith.constant 0 : index
    %19 = vector.load %arg3[%c0_7, %c0_8] : memref<1x32xf32, #tpu.memory_space<vmem>>, vector<1x32xf32>
    %20 = vector.broadcast %19 : vector<1x32xf32> to vector<16x32xf32>
    %21 = arith.mulf %18, %20 : vector<16x32xf32>
    %c0_9 = arith.constant 0 : index
    %c0_10 = arith.constant 0 : index
    %22 = vector.load %arg4[%c0_9, %c0_10] : memref<1x32xf32, #tpu.memory_space<vmem>>, vector<1x32xf32>
    %23 = vector.broadcast %22 : vector<1x32xf32> to vector<16x32xf32>
    %24 = arith.addf %21, %23 : vector<16x32xf32>
    %c0_11 = arith.constant 0 : index
    %c0_12 = arith.constant 0 : index
    %25 = vector.load %arg5[%c0_11, %c0_12] : memref<16x32xf32, #tpu.memory_space<vmem>>, vector<16x32xf32>
    tpu.vector_store %arg5[%c0_11, %c0_12], %24 {strides = array<i32>} : memref<16x32xf32, #tpu.memory_space<vmem>>, vector<16x32xf32>,
    return
  }
  func.func @transform_0(%arg0: i32) -> (i32, i32) {
    %c0_i32 = arith.constant 0 : i32
    %c0_i32_0 = arith.constant 0 : i32
    return %arg0, %c0_i32 : i32, i32
  }
  func.func @transform_1(%arg0: i32) -> (i32, i32) {
    %c0_i32 = arith.constant 0 : i32
    %c0_i32_0 = arith.constant 0 : i32
    return %arg0, %c0_i32 : i32, i32
  }
  func.func @transform_2(%arg0: i32) -> (i32, i32) {
    %c0_i32 = arith.constant 0 : i32
    %c0_i32_0 = arith.constant 0 : i32
    %c0_i32_1 = arith.constant 0 : i32
    return %c0_i32, %c0_i32_0 : i32, i32
  }
  func.func @transform_3(%arg0: i32) -> (i32, i32) {
    %c0_i32 = arith.constant 0 : i32
    %c0_i32_0 = arith.constant 0 : i32
    %c0_i32_1 = arith.constant 0 : i32
    return %c0_i32, %c0_i32_0 : i32, i32
  }
  func.func @transform_4(%arg0: i32) -> (i32, i32) {
    %c0_i32 = arith.constant 0 : i32
    %c0_i32_0 = arith.constant 0 : i32
    return %arg0, %c0_i32 : i32, i32
  }
}

module attributes {stable_mosaic.version = 11 : i64} {
  func.func @_attention_kernel(%arg0: i32, %arg1: memref<1x8x32xf32, #tpu.memory_space<vmem>>, %arg2: memref<1x8x32xf32, #tpu.memory_space<vmem>>, %arg3: memref<1x8x32xf32, #tpu.memory_space<vmem>>, %arg4: memref<1x8x32xf32, #tpu.memory_space<vmem>>) attributes {dimension_semantics = [#tpu.dimension_semantics<parallel>], iteration_bounds = array<i64: 2>, scalar_prefetch = 0 : i64, scratch_operands = 0 : i64, tpu.core_type = #tpu.core_type<tc>, window_params = [{transform_indices = @transform_0, window_bounds = array<i64: 1, 8, 32>}, {transform_indices = @transform_1, window_bounds = array<i64: 1, 8, 32>}, {transform_indices = @transform_2, window_bounds = array<i64: 1, 8, 32>}, {transform_indices = @transform_3, window_bounds = array<i64: 1, 8, 32>}]} {
    %c0 = arith.constant 0 : index
    %c0_0 = arith.constant 0 : index
    %c0_1 = arith.constant 0 : index
    %0 = vector.load %arg1[%c0, %c0_0, %c0_1] : memref<1x8x32xf32, #tpu.memory_space<vmem>>, vector<1x8x32xf32>
    %1 = vector.shape_cast %0 : vector<1x8x32xf32> to vector<8x32xf32>
    %c0_2 = arith.constant 0 : index
    %c0_3 = arith.constant 0 : index
    %c0_4 = arith.constant 0 : index
    %2 = vector.load %arg2[%c0_2, %c0_3, %c0_4] : memref<1x8x32xf32, #tpu.memory_space<vmem>>, vector<1x8x32xf32>
    %3 = vector.shape_cast %2 : vector<1x8x32xf32> to vector<8x32xf32>
    %c0_5 = arith.constant 0 : index
    %c0_6 = arith.constant 0 : index
    %c0_7 = arith.constant 0 : index
    %4 = vector.load %arg3[%c0_5, %c0_6, %c0_7] : memref<1x8x32xf32, #tpu.memory_space<vmem>>, vector<1x8x32xf32>
    %5 = vector.shape_cast %4 : vector<1x8x32xf32> to vector<8x32xf32>
    %6 = tpu.iota {dimensions = array<i32: 1>} : vector<8x32xi32>
    %cst = arith.constant 0.000000e+00 : f32
    %7 = vector.broadcast %cst : f32 to vector<8x32xf32>
    %c0_i32 = arith.constant 0 : i32
    %8 = vector.broadcast %c0_i32 : i32 to vector<8x32xi32>
    %9 = arith.cmpi sge, %6, %8 : vector<8x32xi32>
    %c8_i32 = arith.constant 8 : i32
    %10 = vector.broadcast %c8_i32 : i32 to vector<8x32xi32>
    %11 = arith.cmpi slt, %6, %10 : vector<8x32xi32>
    %12 = arith.andi %9, %11 : vector<8x32xi1>
    %13 = arith.extui %12 : vector<8x32xi1> to vector<8x32xi32>
    %14 = arith.sitofp %13 : vector<8x32xi32> to vector<8x32xf32>
    %15 = arith.mulf %1, %14 : vector<8x32xf32>
    %16 = arith.mulf %3, %14 : vector<8x32xf32>
    %cst_8 = arith.constant dense<0.000000e+00> : vector<8x8xf32>
    %17 = tpu.matmul %15, %16, %cst_8 {dimension_numbers = #tpu.dot_dimension_numbers<[1], [1], [0], [0], [0, 0, 1, 0], [], []>} : vector<8x32xf32>, vector<8x32xf32>, vector<8x8xf32> -> vector<8x8xf32>
    %cst_9 = arith.constant 0.353553385 : f32
    %18 = vector.broadcast %cst_9 : f32 to vector<8x8xf32>
    %19 = arith.mulf %17, %18 : vector<8x8xf32>
    %cst_10 = arith.constant dense<0xFF800000> : vector<8xf32>
    %20 = vector.multi_reduction <maximumf>, %19, %cst_10 [1] : vector<8x8xf32> to vector<8xf32>
    %21 = vector.shape_cast %20 : vector<8xf32> to vector<8x1xf32>
    %22 = vector.broadcast %21 : vector<8x1xf32> to vector<8x8xf32>
    %23 = arith.subf %19, %22 : vector<8x8xf32>
    %24 = math.exp %23 : vector<8x8xf32>
    %cst_11 = arith.constant dense<0.000000e+00> : vector<8xf32>
    %25 = vector.multi_reduction <add>, %24, %cst_11 [1] : vector<8x8xf32> to vector<8xf32>
    %26 = vector.shape_cast %25 : vector<8xf32> to vector<8x1xf32>
    %27 = tpu.reciprocal %26 {approx = true} : vector<8x1xf32> -> vector<8x1xf32>
    %28 = vector.broadcast %27 : vector<8x1xf32> to vector<8x8xf32>
    %29 = arith.mulf %24, %28 : vector<8x8xf32>
    %30 = arith.mulf %5, %14 : vector<8x32xf32>
    %cst_12 = arith.constant dense<0.000000e+00> : vector<8x32xf32>
    %31 = tpu.matmul %29, %30, %cst_12 {dimension_numbers = #tpu.dot_dimension_numbers<[1], [0], [0], [1], [0, 0, 1, 1], [], []>} : vector<8x8xf32>, vector<8x32xf32>, vector<8x32xf32> -> vector<8x32xf32>
    %32 = arith.addf %7, %31 : vector<8x32xf32>
    %c8_i32_13 = arith.constant 8 : i32
    %33 = vector.broadcast %c8_i32_13 : i32 to vector<8x32xi32>
    %34 = arith.cmpi sge, %6, %33 : vector<8x32xi32>
    %c16_i32 = arith.constant 16 : i32
    %35 = vector.broadcast %c16_i32 : i32 to vector<8x32xi32>
    %36 = arith.cmpi slt, %6, %35 : vector<8x32xi32>
    %37 = arith.andi %34, %36 : vector<8x32xi1>
    %38 = arith.extui %37 : vector<8x32xi1> to vector<8x32xi32>
    %39 = arith.sitofp %38 : vector<8x32xi32> to vector<8x32xf32>
    %40 = arith.mulf %1, %39 : vector<8x32xf32>
    %41 = arith.mulf %3, %39 : vector<8x32xf32>
    %cst_14 = arith.constant dense<0.000000e+00> : vector<8x8xf32>
    %42 = tpu.matmul %40, %41, %cst_14 {dimension_numbers = #tpu.dot_dimension_numbers<[1], [1], [0], [0], [0, 0, 1, 0], [], []>} : vector<8x32xf32>, vector<8x32xf32>, vector<8x8xf32> -> vector<8x8xf32>
    %cst_15 = arith.constant 0.353553385 : f32
    %43 = vector.broadcast %cst_15 : f32 to vector<8x8xf32>
    %44 = arith.mulf %42, %43 : vector<8x8xf32>
    %cst_16 = arith.constant dense<0xFF800000> : vector<8xf32>
    %45 = vector.multi_reduction <maximumf>, %44, %cst_16 [1] : vector<8x8xf32> to vector<8xf32>
    %46 = vector.shape_cast %45 : vector<8xf32> to vector<8x1xf32>
    %47 = vector.broadcast %46 : vector<8x1xf32> to vector<8x8xf32>
    %48 = arith.subf %44, %47 : vector<8x8xf32>
    %49 = math.exp %48 : vector<8x8xf32>
    %cst_17 = arith.constant dense<0.000000e+00> : vector<8xf32>
    %50 = vector.multi_reduction <add>, %49, %cst_17 [1] : vector<8x8xf32> to vector<8xf32>
    %51 = vector.shape_cast %50 : vector<8xf32> to vector<8x1xf32>
    %52 = tpu.reciprocal %51 {approx = true} : vector<8x1xf32> -> vector<8x1xf32>
    %53 = vector.broadcast %52 : vector<8x1xf32> to vector<8x8xf32>
    %54 = arith.mulf %49, %53 : vector<8x8xf32>
    %55 = arith.mulf %5, %39 : vector<8x32xf32>
    %cst_18 = arith.constant dense<0.000000e+00> : vector<8x32xf32>
    %56 = tpu.matmul %54, %55, %cst_18 {dimension_numbers = #tpu.dot_dimension_numbers<[1], [0], [0], [1], [0, 0, 1, 1], [], []>} : vector<8x8xf32>, vector<8x32xf32>, vector<8x32xf32> -> vector<8x32xf32>
    %57 = arith.addf %32, %56 : vector<8x32xf32>
    %c16_i32_19 = arith.constant 16 : i32
    %58 = vector.broadcast %c16_i32_19 : i32 to vector<8x32xi32>
    %59 = arith.cmpi sge, %6, %58 : vector<8x32xi32>
    %c24_i32 = arith.constant 24 : i32
    %60 = vector.broadcast %c24_i32 : i32 to vector<8x32xi32>
    %61 = arith.cmpi slt, %6, %60 : vector<8x32xi32>
    %62 = arith.andi %59, %61 : vector<8x32xi1>
    %63 = arith.extui %62 : vector<8x32xi1> to vector<8x32xi32>
    %64 = arith.sitofp %63 : vector<8x32xi32> to vector<8x32xf32>
    %65 = arith.mulf %1, %64 : vector<8x32xf32>
    %66 = arith.mulf %3, %64 : vector<8x32xf32>
    %cst_20 = arith.constant dense<0.000000e+00> : vector<8x8xf32>
    %67 = tpu.matmul %65, %66, %cst_20 {dimension_numbers = #tpu.dot_dimension_numbers<[1], [1], [0], [0], [0, 0, 1, 0], [], []>} : vector<8x32xf32>, vector<8x32xf32>, vector<8x8xf32> -> vector<8x8xf32>
    %cst_21 = arith.constant 0.353553385 : f32
    %68 = vector.broadcast %cst_21 : f32 to vector<8x8xf32>
    %69 = arith.mulf %67, %68 : vector<8x8xf32>
    %cst_22 = arith.constant dense<0xFF800000> : vector<8xf32>
    %70 = vector.multi_reduction <maximumf>, %69, %cst_22 [1] : vector<8x8xf32> to vector<8xf32>
    %71 = vector.shape_cast %70 : vector<8xf32> to vector<8x1xf32>
    %72 = vector.broadcast %71 : vector<8x1xf32> to vector<8x8xf32>
    %73 = arith.subf %69, %72 : vector<8x8xf32>
    %74 = math.exp %73 : vector<8x8xf32>
    %cst_23 = arith.constant dense<0.000000e+00> : vector<8xf32>
    %75 = vector.multi_reduction <add>, %74, %cst_23 [1] : vector<8x8xf32> to vector<8xf32>
    %76 = vector.shape_cast %75 : vector<8xf32> to vector<8x1xf32>
    %77 = tpu.reciprocal %76 {approx = true} : vector<8x1xf32> -> vector<8x1xf32>
    %78 = vector.broadcast %77 : vector<8x1xf32> to vector<8x8xf32>
    %79 = arith.mulf %74, %78 : vector<8x8xf32>
    %80 = arith.mulf %5, %64 : vector<8x32xf32>
    %cst_24 = arith.constant dense<0.000000e+00> : vector<8x32xf32>
    %81 = tpu.matmul %79, %80, %cst_24 {dimension_numbers = #tpu.dot_dimension_numbers<[1], [0], [0], [1], [0, 0, 1, 1], [], []>} : vector<8x8xf32>, vector<8x32xf32>, vector<8x32xf32> -> vector<8x32xf32>
    %82 = arith.addf %57, %81 : vector<8x32xf32>
    %c24_i32_25 = arith.constant 24 : i32
    %83 = vector.broadcast %c24_i32_25 : i32 to vector<8x32xi32>
    %84 = arith.cmpi sge, %6, %83 : vector<8x32xi32>
    %c32_i32 = arith.constant 32 : i32
    %85 = vector.broadcast %c32_i32 : i32 to vector<8x32xi32>
    %86 = arith.cmpi slt, %6, %85 : vector<8x32xi32>
    %87 = arith.andi %84, %86 : vector<8x32xi1>
    %88 = arith.extui %87 : vector<8x32xi1> to vector<8x32xi32>
    %89 = arith.sitofp %88 : vector<8x32xi32> to vector<8x32xf32>
    %90 = arith.mulf %1, %89 : vector<8x32xf32>
    %91 = arith.mulf %3, %89 : vector<8x32xf32>
    %cst_26 = arith.constant dense<0.000000e+00> : vector<8x8xf32>
    %92 = tpu.matmul %90, %91, %cst_26 {dimension_numbers = #tpu.dot_dimension_numbers<[1], [1], [0], [0], [0, 0, 1, 0], [], []>} : vector<8x32xf32>, vector<8x32xf32>, vector<8x8xf32> -> vector<8x8xf32>
    %cst_27 = arith.constant 0.353553385 : f32
    %93 = vector.broadcast %cst_27 : f32 to vector<8x8xf32>
    %94 = arith.mulf %92, %93 : vector<8x8xf32>
    %cst_28 = arith.constant dense<0xFF800000> : vector<8xf32>
    %95 = vector.multi_reduction <maximumf>, %94, %cst_28 [1] : vector<8x8xf32> to vector<8xf32>
    %96 = vector.shape_cast %95 : vector<8xf32> to vector<8x1xf32>
    %97 = vector.broadcast %96 : vector<8x1xf32> to vector<8x8xf32>
    %98 = arith.subf %94, %97 : vector<8x8xf32>
    %99 = math.exp %98 : vector<8x8xf32>
    %cst_29 = arith.constant dense<0.000000e+00> : vector<8xf32>
    %100 = vector.multi_reduction <add>, %99, %cst_29 [1] : vector<8x8xf32> to vector<8xf32>
    %101 = vector.shape_cast %100 : vector<8xf32> to vector<8x1xf32>
    %102 = tpu.reciprocal %101 {approx = true} : vector<8x1xf32> -> vector<8x1xf32>
    %103 = vector.broadcast %102 : vector<8x1xf32> to vector<8x8xf32>
    %104 = arith.mulf %99, %103 : vector<8x8xf32>
    %105 = arith.mulf %5, %89 : vector<8x32xf32>
    %cst_30 = arith.constant dense<0.000000e+00> : vector<8x32xf32>
    %106 = tpu.matmul %104, %105, %cst_30 {dimension_numbers = #tpu.dot_dimension_numbers<[1], [0], [0], [1], [0, 0, 1, 1], [], []>} : vector<8x8xf32>, vector<8x32xf32>, vector<8x32xf32> -> vector<8x32xf32>
    %107 = arith.addf %82, %106 : vector<8x32xf32>
    %c0_31 = arith.constant 0 : index
    %c0_32 = arith.constant 0 : index
    %c0_33 = arith.constant 0 : index
    %108 = vector.load %arg4[%c0_31, %c0_32, %c0_33] : memref<1x8x32xf32, #tpu.memory_space<vmem>>, vector<1x8x32xf32>
    %109 = vector.shape_cast %108 : vector<1x8x32xf32> to vector<8x32xf32>
    %110 = vector.shape_cast %107 : vector<8x32xf32> to vector<1x8x32xf32>
    tpu.vector_store %arg4[%c0_31, %c0_32, %c0_33], %110 {strides = array<i32>} : memref<1x8x32xf32, #tpu.memory_space<vmem>>, vector<1x8x32xf32>,
    return
  }
  func.func @transform_0(%arg0: i32) -> (i32, i32, i32) {
    %c0_i32 = arith.constant 0 : i32
    %c0_i32_0 = arith.constant 0 : i32
    %c0_i32_1 = arith.constant 0 : i32
    return %arg0, %c0_i32, %c0_i32_0 : i32, i32, i32
  }
  func.func @transform_1(%arg0: i32) -> (i32, i32, i32) {
    %c0_i32 = arith.constant 0 : i32
    %c0_i32_0 = arith.constant 0 : i32
    %c0_i32_1 = arith.constant 0 : i32
    return %arg0, %c0_i32, %c0_i32_0 : i32, i32, i32
  }
  func.func @transform_2(%arg0: i32) -> (i32, i32, i32) {
    %c0_i32 = arith.constant 0 : i32
    %c0_i32_0 = arith.constant 0 : i32
    %c0_i32_1 = arith.constant 0 : i32
    return %arg0, %c0_i32, %c0_i32_0 : i32, i32, i32
  }
  func.func @transform_3(%arg0: i32) -> (i32, i32, i32) {
    %c0_i32 = arith.constant 0 : i32
    %c0_i32_0 = arith.constant 0 : i32
    %c0_i32_1 = arith.constant 0 : i32
    return %arg0, %c0_i32, %c0_i32_0 : i32, i32, i32
  }
}

module attributes {stable_mosaic.version = 11 : i64} {
  func.func @_linear_kernel(%arg0: i32, %arg1: i32, %arg2: i32, %arg3: memref<16x32xf32, #tpu.memory_space<vmem>>, %arg4: memref<32x32xf32, #tpu.memory_space<vmem>>, %arg5: memref<1x32xf32, #tpu.memory_space<vmem>>, %arg6: memref<16x32xf32, #tpu.memory_space<vmem>>, %arg7: memref<16x32xf32, #tpu.memory_space<vmem>>) attributes {dimension_semantics = [#tpu.dimension_semantics<parallel>, #tpu.dimension_semantics<parallel>, #tpu.dimension_semantics<arbitrary>], iteration_bounds = array<i64: 1, 1, 1>, scalar_prefetch = 0 : i64, scratch_operands = 1 : i64, tpu.core_type = #tpu.core_type<tc>, window_params = [{transform_indices = @transform_0, window_bounds = array<i64: 16, 32>}, {transform_indices = @transform_1, window_bounds = array<i64: 32, 32>}, {transform_indices = @transform_2, window_bounds = array<i64: 1, 32>}, {transform_indices = @transform_3, window_bounds = array<i64: 16, 32>}]} {
    %c0_i32 = arith.constant 0 : i32
    %0 = arith.cmpi eq, %arg2, %c0_i32 : i32
    %1 = arith.extui %0 : i1 to i32
    %c0_i32_0 = arith.constant 0 : i32
    %2 = arith.cmpi ne, %1, %c0_i32_0 : i32
    scf.if %2 {
      %cst_10 = arith.constant 0.000000e+00 : f32
      %12 = vector.broadcast %cst_10 : f32 to vector<16x32xf32>
      %c0_11 = arith.constant 0 : index
      %c0_12 = arith.constant 0 : index
      %13 = vector.load %arg7[%c0_11, %c0_12] : memref<16x32xf32, #tpu.memory_space<vmem>>, vector<16x32xf32>
      tpu.vector_store %arg7[%c0_11, %c0_12], %12 {strides = array<i32>} : memref<16x32xf32, #tpu.memory_space<vmem>>, vector<16x32xf32>,
    } else {
    }
    %c0 = arith.constant 0 : index
    %c0_1 = arith.constant 0 : index
    %3 = vector.load %arg7[%c0, %c0_1] : memref<16x32xf32, #tpu.memory_space<vmem>>, vector<16x32xf32>
    %c0_2 = arith.constant 0 : index
    %c0_3 = arith.constant 0 : index
    %4 = vector.load %arg3[%c0_2, %c0_3] : memref<16x32xf32, #tpu.memory_space<vmem>>, vector<16x32xf32>
    %c0_4 = arith.constant 0 : index
    %c0_5 = arith.constant 0 : index
    %5 = vector.load %arg4[%c0_4, %c0_5] : memref<32x32xf32, #tpu.memory_space<vmem>>, vector<32x32xf32>
    %cst = arith.constant dense<0.000000e+00> : vector<16x32xf32>
    %6 = tpu.matmul %4, %5, %cst {dimension_numbers = #tpu.dot_dimension_numbers<[1], [0], [0], [1], [0, 0, 1, 1], [], []>} : vector<16x32xf32>, vector<32x32xf32>, vector<16x32xf32> -> vector<16x32xf32>
    %7 = arith.addf %3, %6 : vector<16x32xf32>
    %c0_6 = arith.constant 0 : index
    %c0_7 = arith.constant 0 : index
    %8 = vector.load %arg7[%c0_6, %c0_7] : memref<16x32xf32, #tpu.memory_space<vmem>>, vector<16x32xf32>
    tpu.vector_store %arg7[%c0_6, %c0_7], %7 {strides = array<i32>} : memref<16x32xf32, #tpu.memory_space<vmem>>, vector<16x32xf32>,
    %c0_i32_8 = arith.constant 0 : i32
    %9 = arith.cmpi eq, %arg2, %c0_i32_8 : i32
    %10 = arith.extui %9 : i1 to i32
    %c0_i32_9 = arith.constant 0 : i32
    %11 = arith.cmpi ne, %10, %c0_i32_9 : i32
    scf.if %11 {
      %c0_10 = arith.constant 0 : index
      %c0_11 = arith.constant 0 : index
      %12 = vector.load %arg7[%c0_10, %c0_11] : memref<16x32xf32, #tpu.memory_space<vmem>>, vector<16x32xf32>
      %c0_12 = arith.constant 0 : index
      %c0_13 = arith.constant 0 : index
      %13 = vector.load %arg5[%c0_12, %c0_13] : memref<1x32xf32, #tpu.memory_space<vmem>>, vector<1x32xf32>
      %14 = vector.broadcast %13 : vector<1x32xf32> to vector<16x32xf32>
      %15 = arith.addf %12, %14 : vector<16x32xf32>
      %c0_14 = arith.constant 0 : index
      %c0_15 = arith.constant 0 : index
      %16 = vector.load %arg6[%c0_14, %c0_15] : memref<16x32xf32, #tpu.memory_space<vmem>>, vector<16x32xf32>
      tpu.vector_store %arg6[%c0_14, %c0_15], %15 {strides = array<i32>} : memref<16x32xf32, #tpu.memory_space<vmem>>, vector<16x32xf32>,
    } else {
    }
    return
  }
  func.func @transform_0(%arg0: i32, %arg1: i32, %arg2: i32) -> (i32, i32) {
    %c0_i32 = arith.constant 0 : i32
    return %arg0, %arg2 : i32, i32
  }
  func.func @transform_1(%arg0: i32, %arg1: i32, %arg2: i32) -> (i32, i32) {
    %c0_i32 = arith.constant 0 : i32
    return %arg2, %arg1 : i32, i32
  }
  func.func @transform_2(%arg0: i32, %arg1: i32, %arg2: i32) -> (i32, i32) {
    %c0_i32 = arith.constant 0 : i32
    %c0_i32_0 = arith.constant 0 : i32
    return %c0_i32, %arg1 : i32, i32
  }
  func.func @transform_3(%arg0: i32, %arg1: i32, %arg2: i32) -> (i32, i32) {
    %c0_i32 = arith.constant 0 : i32
    return %arg0, %arg1 : i32, i32
  }
}

module attributes {stable_mosaic.version = 11 : i64} {
  func.func @_linear_kernel(%arg0: i32, %arg1: i32, %arg2: i32, %arg3: memref<16x32xf32, #tpu.memory_space<vmem>>, %arg4: memref<32x64xf32, #tpu.memory_space<vmem>>, %arg5: memref<1x64xf32, #tpu.memory_space<vmem>>, %arg6: memref<16x64xf32, #tpu.memory_space<vmem>>, %arg7: memref<16x64xf32, #tpu.memory_space<vmem>>) attributes {dimension_semantics = [#tpu.dimension_semantics<parallel>, #tpu.dimension_semantics<parallel>, #tpu.dimension_semantics<arbitrary>], iteration_bounds = array<i64: 1, 1, 1>, scalar_prefetch = 0 : i64, scratch_operands = 1 : i64, tpu.core_type = #tpu.core_type<tc>, window_params = [{transform_indices = @transform_0, window_bounds = array<i64: 16, 32>}, {transform_indices = @transform_1, window_bounds = array<i64: 32, 64>}, {transform_indices = @transform_2, window_bounds = array<i64: 1, 64>}, {transform_indices = @transform_3, window_bounds = array<i64: 16, 64>}]} {
    %c0_i32 = arith.constant 0 : i32
    %0 = arith.cmpi eq, %arg2, %c0_i32 : i32
    %1 = arith.extui %0 : i1 to i32
    %c0_i32_0 = arith.constant 0 : i32
    %2 = arith.cmpi ne, %1, %c0_i32_0 : i32
    scf.if %2 {
      %cst_10 = arith.constant 0.000000e+00 : f32
      %12 = vector.broadcast %cst_10 : f32 to vector<16x64xf32>
      %c0_11 = arith.constant 0 : index
      %c0_12 = arith.constant 0 : index
      %13 = vector.load %arg7[%c0_11, %c0_12] : memref<16x64xf32, #tpu.memory_space<vmem>>, vector<16x64xf32>
      tpu.vector_store %arg7[%c0_11, %c0_12], %12 {strides = array<i32>} : memref<16x64xf32, #tpu.memory_space<vmem>>, vector<16x64xf32>,
    } else {
    }
    %c0 = arith.constant 0 : index
    %c0_1 = arith.constant 0 : index
    %3 = vector.load %arg7[%c0, %c0_1] : memref<16x64xf32, #tpu.memory_space<vmem>>, vector<16x64xf32>
    %c0_2 = arith.constant 0 : index
    %c0_3 = arith.constant 0 : index
    %4 = vector.load %arg3[%c0_2, %c0_3] : memref<16x32xf32, #tpu.memory_space<vmem>>, vector<16x32xf32>
    %c0_4 = arith.constant 0 : index
    %c0_5 = arith.constant 0 : index
    %5 = vector.load %arg4[%c0_4, %c0_5] : memref<32x64xf32, #tpu.memory_space<vmem>>, vector<32x64xf32>
    %cst = arith.constant dense<0.000000e+00> : vector<16x64xf32>
    %6 = tpu.matmul %4, %5, %cst {dimension_numbers = #tpu.dot_dimension_numbers<[1], [0], [0], [1], [0, 0, 1, 1], [], []>} : vector<16x32xf32>, vector<32x64xf32>, vector<16x64xf32> -> vector<16x64xf32>
    %7 = arith.addf %3, %6 : vector<16x64xf32>
    %c0_6 = arith.constant 0 : index
    %c0_7 = arith.constant 0 : index
    %8 = vector.load %arg7[%c0_6, %c0_7] : memref<16x64xf32, #tpu.memory_space<vmem>>, vector<16x64xf32>
    tpu.vector_store %arg7[%c0_6, %c0_7], %7 {strides = array<i32>} : memref<16x64xf32, #tpu.memory_space<vmem>>, vector<16x64xf32>,
    %c0_i32_8 = arith.constant 0 : i32
    %9 = arith.cmpi eq, %arg2, %c0_i32_8 : i32
    %10 = arith.extui %9 : i1 to i32
    %c0_i32_9 = arith.constant 0 : i32
    %11 = arith.cmpi ne, %10, %c0_i32_9 : i32
    scf.if %11 {
      %c0_10 = arith.constant 0 : index
      %c0_11 = arith.constant 0 : index
      %12 = vector.load %arg7[%c0_10, %c0_11] : memref<16x64xf32, #tpu.memory_space<vmem>>, vector<16x64xf32>
      %c0_12 = arith.constant 0 : index
      %c0_13 = arith.constant 0 : index
      %13 = vector.load %arg5[%c0_12, %c0_13] : memref<1x64xf32, #tpu.memory_space<vmem>>, vector<1x64xf32>
      %14 = vector.broadcast %13 : vector<1x64xf32> to vector<16x64xf32>
      %15 = arith.addf %12, %14 : vector<16x64xf32>
      %cst_14 = arith.constant 0.000000e+00 : f32
      %16 = vector.broadcast %cst_14 : f32 to vector<16x64xf32>
      %17 = arith.maximumf %15, %16 : vector<16x64xf32>
      %c0_15 = arith.constant 0 : index
      %c0_16 = arith.constant 0 : index
      %18 = vector.load %arg6[%c0_15, %c0_16] : memref<16x64xf32, #tpu.memory_space<vmem>>, vector<16x64xf32>
      tpu.vector_store %arg6[%c0_15, %c0_16], %17 {strides = array<i32>} : memref<16x64xf32, #tpu.memory_space<vmem>>, vector<16x64xf32>,
    } else {
    }
    return
  }
  func.func @transform_0(%arg0: i32, %arg1: i32, %arg2: i32) -> (i32, i32) {
    %c0_i32 = arith.constant 0 : i32
    return %arg0, %arg2 : i32, i32
  }
  func.func @transform_1(%arg0: i32, %arg1: i32, %arg2: i32) -> (i32, i32) {
    %c0_i32 = arith.constant 0 : i32
    return %arg2, %arg1 : i32, i32
  }
  func.func @transform_2(%arg0: i32, %arg1: i32, %arg2: i32) -> (i32, i32) {
    %c0_i32 = arith.constant 0 : i32
    %c0_i32_0 = arith.constant 0 : i32
    return %c0_i32, %arg1 : i32, i32
  }
  func.func @transform_3(%arg0: i32, %arg1: i32, %arg2: i32) -> (i32, i32) {
    %c0_i32 = arith.constant 0 : i32
    return %arg0, %arg1 : i32, i32
  }
}

module attributes {stable_mosaic.version = 11 : i64} {
  func.func @_linear_kernel(%arg0: i32, %arg1: i32, %arg2: i32, %arg3: memref<16x64xf32, #tpu.memory_space<vmem>>, %arg4: memref<64x32xf32, #tpu.memory_space<vmem>>, %arg5: memref<1x32xf32, #tpu.memory_space<vmem>>, %arg6: memref<16x32xf32, #tpu.memory_space<vmem>>, %arg7: memref<16x32xf32, #tpu.memory_space<vmem>>) attributes {dimension_semantics = [#tpu.dimension_semantics<parallel>, #tpu.dimension_semantics<parallel>, #tpu.dimension_semantics<arbitrary>], iteration_bounds = array<i64: 1, 1, 1>, scalar_prefetch = 0 : i64, scratch_operands = 1 : i64, tpu.core_type = #tpu.core_type<tc>, window_params = [{transform_indices = @transform_0, window_bounds = array<i64: 16, 64>}, {transform_indices = @transform_1, window_bounds = array<i64: 64, 32>}, {transform_indices = @transform_2, window_bounds = array<i64: 1, 32>}, {transform_indices = @transform_3, window_bounds = array<i64: 16, 32>}]} {
    %c0_i32 = arith.constant 0 : i32
    %0 = arith.cmpi eq, %arg2, %c0_i32 : i32
    %1 = arith.extui %0 : i1 to i32
    %c0_i32_0 = arith.constant 0 : i32
    %2 = arith.cmpi ne, %1, %c0_i32_0 : i32
    scf.if %2 {
      %cst_10 = arith.constant 0.000000e+00 : f32
      %12 = vector.broadcast %cst_10 : f32 to vector<16x32xf32>
      %c0_11 = arith.constant 0 : index
      %c0_12 = arith.constant 0 : index
      %13 = vector.load %arg7[%c0_11, %c0_12] : memref<16x32xf32, #tpu.memory_space<vmem>>, vector<16x32xf32>
      tpu.vector_store %arg7[%c0_11, %c0_12], %12 {strides = array<i32>} : memref<16x32xf32, #tpu.memory_space<vmem>>, vector<16x32xf32>,
    } else {
    }
    %c0 = arith.constant 0 : index
    %c0_1 = arith.constant 0 : index
    %3 = vector.load %arg7[%c0, %c0_1] : memref<16x32xf32, #tpu.memory_space<vmem>>, vector<16x32xf32>
    %c0_2 = arith.constant 0 : index
    %c0_3 = arith.constant 0 : index
    %4 = vector.load %arg3[%c0_2, %c0_3] : memref<16x64xf32, #tpu.memory_space<vmem>>, vector<16x64xf32>
    %c0_4 = arith.constant 0 : index
    %c0_5 = arith.constant 0 : index
    %5 = vector.load %arg4[%c0_4, %c0_5] : memref<64x32xf32, #tpu.memory_space<vmem>>, vector<64x32xf32>
    %cst = arith.constant dense<0.000000e+00> : vector<16x32xf32>
    %6 = tpu.matmul %4, %5, %cst {dimension_numbers = #tpu.dot_dimension_numbers<[1], [0], [0], [1], [0, 0, 1, 1], [], []>} : vector<16x64xf32>, vector<64x32xf32>, vector<16x32xf32> -> vector<16x32xf32>
    %7 = arith.addf %3, %6 : vector<16x32xf32>
    %c0_6 = arith.constant 0 : index
    %c0_7 = arith.constant 0 : index
    %8 = vector.load %arg7[%c0_6, %c0_7] : memref<16x32xf32, #tpu.memory_space<vmem>>, vector<16x32xf32>
    tpu.vector_store %arg7[%c0_6, %c0_7], %7 {strides = array<i32>} : memref<16x32xf32, #tpu.memory_space<vmem>>, vector<16x32xf32>,
    %c0_i32_8 = arith.constant 0 : i32
    %9 = arith.cmpi eq, %arg2, %c0_i32_8 : i32
    %10 = arith.extui %9 : i1 to i32
    %c0_i32_9 = arith.constant 0 : i32
    %11 = arith.cmpi ne, %10, %c0_i32_9 : i32
    scf.if %11 {
      %c0_10 = arith.constant 0 : index
      %c0_11 = arith.constant 0 : index
      %12 = vector.load %arg7[%c0_10, %c0_11] : memref<16x32xf32, #tpu.memory_space<vmem>>, vector<16x32xf32>
      %c0_12 = arith.constant 0 : index
      %c0_13 = arith.constant 0 : index
      %13 = vector.load %arg5[%c0_12, %c0_13] : memref<1x32xf32, #tpu.memory_space<vmem>>, vector<1x32xf32>
      %14 = vector.broadcast %13 : vector<1x32xf32> to vector<16x32xf32>
      %15 = arith.addf %12, %14 : vector<16x32xf32>
      %c0_14 = arith.constant 0 : index
      %c0_15 = arith.constant 0 : index
      %16 = vector.load %arg6[%c0_14, %c0_15] : memref<16x32xf32, #tpu.memory_space<vmem>>, vector<16x32xf32>
      tpu.vector_store %arg6[%c0_14, %c0_15], %15 {strides = array<i32>} : memref<16x32xf32, #tpu.memory_space<vmem>>, vector<16x32xf32>,
    } else {
    }
    return
  }
  func.func @transform_0(%arg0: i32, %arg1: i32, %arg2: i32) -> (i32, i32) {
    %c0_i32 = arith.constant 0 : i32
    return %arg0, %arg2 : i32, i32
  }
  func.func @transform_1(%arg0: i32, %arg1: i32, %arg2: i32) -> (i32, i32) {
    %c0_i32 = arith.constant 0 : i32
    return %arg2, %arg1 : i32, i32
  }
  func.func @transform_2(%arg0: i32, %arg1: i32, %arg2: i32) -> (i32, i32) {
    %c0_i32 = arith.constant 0 : i32
    %c0_i32_0 = arith.constant 0 : i32
    return %c0_i32, %arg1 : i32, i32
  }
  func.func @transform_3(%arg0: i32, %arg1: i32, %arg2: i32) -> (i32, i32) {
    %c0_i32 = arith.constant 0 : i32
    return %arg0, %arg1 : i32, i32
  }
}

module attributes {stable_mosaic.version = 11 : i64} {
  func.func @_linear_kernel(%arg0: i32, %arg1: i32, %arg2: i32, %arg3: memref<16x32xf32, #tpu.memory_space<vmem>>, %arg4: memref<32x1xf32, #tpu.memory_space<vmem>>, %arg5: memref<1x1xf32, #tpu.memory_space<vmem>>, %arg6: memref<16x1xf32, #tpu.memory_space<vmem>>, %arg7: memref<16x1xf32, #tpu.memory_space<vmem>>) attributes {dimension_semantics = [#tpu.dimension_semantics<parallel>, #tpu.dimension_semantics<parallel>, #tpu.dimension_semantics<arbitrary>], iteration_bounds = array<i64: 1, 1, 1>, scalar_prefetch = 0 : i64, scratch_operands = 1 : i64, tpu.core_type = #tpu.core_type<tc>, window_params = [{transform_indices = @transform_0, window_bounds = array<i64: 16, 32>}, {transform_indices = @transform_1, window_bounds = array<i64: 32, 1>}, {transform_indices = @transform_2, window_bounds = array<i64: 1, 1>}, {transform_indices = @transform_3, window_bounds = array<i64: 16, 1>}]} {
    %c0_i32 = arith.constant 0 : i32
    %0 = arith.cmpi eq, %arg2, %c0_i32 : i32
    %1 = arith.extui %0 : i1 to i32
    %c0_i32_0 = arith.constant 0 : i32
    %2 = arith.cmpi ne, %1, %c0_i32_0 : i32
    scf.if %2 {
      %cst_10 = arith.constant 0.000000e+00 : f32
      %12 = vector.broadcast %cst_10 : f32 to vector<16x1xf32>
      %c0_11 = arith.constant 0 : index
      %c0_12 = arith.constant 0 : index
      %13 = vector.load %arg7[%c0_11, %c0_12] : memref<16x1xf32, #tpu.memory_space<vmem>>, vector<16x1xf32>
      tpu.vector_store %arg7[%c0_11, %c0_12], %12 {strides = array<i32>} : memref<16x1xf32, #tpu.memory_space<vmem>>, vector<16x1xf32>,
    } else {
    }
    %c0 = arith.constant 0 : index
    %c0_1 = arith.constant 0 : index
    %3 = vector.load %arg7[%c0, %c0_1] : memref<16x1xf32, #tpu.memory_space<vmem>>, vector<16x1xf32>
    %c0_2 = arith.constant 0 : index
    %c0_3 = arith.constant 0 : index
    %4 = vector.load %arg3[%c0_2, %c0_3] : memref<16x32xf32, #tpu.memory_space<vmem>>, vector<16x32xf32>
    %c0_4 = arith.constant 0 : index
    %c0_5 = arith.constant 0 : index
    %5 = vector.load %arg4[%c0_4, %c0_5] : memref<32x1xf32, #tpu.memory_space<vmem>>, vector<32x1xf32>
    %cst = arith.constant dense<0.000000e+00> : vector<16x1xf32>
    %6 = tpu.matmul %4, %5, %cst {dimension_numbers = #tpu.dot_dimension_numbers<[1], [0], [0], [1], [0, 0, 1, 1], [], []>} : vector<16x32xf32>, vector<32x1xf32>, vector<16x1xf32> -> vector<16x1xf32>
    %7 = arith.addf %3, %6 : vector<16x1xf32>
    %c0_6 = arith.constant 0 : index
    %c0_7 = arith.constant 0 : index
    %8 = vector.load %arg7[%c0_6, %c0_7] : memref<16x1xf32, #tpu.memory_space<vmem>>, vector<16x1xf32>
    tpu.vector_store %arg7[%c0_6, %c0_7], %7 {strides = array<i32>} : memref<16x1xf32, #tpu.memory_space<vmem>>, vector<16x1xf32>,
    %c0_i32_8 = arith.constant 0 : i32
    %9 = arith.cmpi eq, %arg2, %c0_i32_8 : i32
    %10 = arith.extui %9 : i1 to i32
    %c0_i32_9 = arith.constant 0 : i32
    %11 = arith.cmpi ne, %10, %c0_i32_9 : i32
    scf.if %11 {
      %c0_10 = arith.constant 0 : index
      %c0_11 = arith.constant 0 : index
      %12 = vector.load %arg7[%c0_10, %c0_11] : memref<16x1xf32, #tpu.memory_space<vmem>>, vector<16x1xf32>
      %c0_12 = arith.constant 0 : index
      %c0_13 = arith.constant 0 : index
      %13 = vector.load %arg5[%c0_12, %c0_13] : memref<1x1xf32, #tpu.memory_space<vmem>>, vector<1x1xf32>
      %14 = vector.broadcast %13 : vector<1x1xf32> to vector<16x1xf32>
      %15 = arith.addf %12, %14 : vector<16x1xf32>
      %cst_14 = arith.constant 2.000000e+01 : f32
      %16 = vector.broadcast %cst_14 : f32 to vector<16x1xf32>
      %17 = arith.cmpf ogt, %15, %16 : vector<16x1xf32>
      %cst_15 = arith.constant 2.000000e+01 : f32
      %18 = vector.broadcast %cst_15 : f32 to vector<16x1xf32>
      %19 = arith.minimumf %15, %18 : vector<16x1xf32>
      %20 = math.exp %19 : vector<16x1xf32>
      %cst_16 = arith.constant 1.000000e+00 : f32
      %21 = vector.broadcast %cst_16 : f32 to vector<16x1xf32>
      %22 = arith.addf %21, %20 : vector<16x1xf32>
      %23 = math.log %22 : vector<16x1xf32>
      %24 = arith.select %17, %15, %23 : vector<16x1xi1>, vector<16x1xf32>
      %c0_17 = arith.constant 0 : index
      %c0_18 = arith.constant 0 : index
      %25 = vector.load %arg6[%c0_17, %c0_18] : memref<16x1xf32, #tpu.memory_space<vmem>>, vector<16x1xf32>
      tpu.vector_store %arg6[%c0_17, %c0_18], %24 {strides = array<i32>} : memref<16x1xf32, #tpu.memory_space<vmem>>, vector<16x1xf32>,
    } else {
    }
    return
  }
  func.func @transform_0(%arg0: i32, %arg1: i32, %arg2: i32) -> (i32, i32) {
    %c0_i32 = arith.constant 0 : i32
    return %arg0, %arg2 : i32, i32
  }
  func.func @transform_1(%arg0: i32, %arg1: i32, %arg2: i32) -> (i32, i32) {
    %c0_i32 = arith.constant 0 : i32
    return %arg2, %arg1 : i32, i32
  }
  func.func @transform_2(%arg0: i32, %arg1: i32, %arg2: i32) -> (i32, i32) {
    %c0_i32 = arith.constant 0 : i32
    %c0_i32_0 = arith.constant 0 : i32
    return %c0_i32, %arg1 : i32, i32
  }
  func.func @transform_3(%arg0: i32, %arg1: i32, %arg2: i32) -> (i32, i32) {
    %c0_i32 = arith.constant 0 : i32
    return %arg0, %arg1 : i32, i32
  }
}

</mosaic_0001>

<bundles_post_ra>
// kernel: _forward.52
= control target key start
LH: loop header
LB: loop body
LE: loop exit
PB: predicated region body
PF: predicated region fallthrough
CT: control target
= control target key end

     0   :  { %vm18_vm0 = vcmask 254976   ;;  %v133_v0 = vmov 0.0   ;;  %vm134_vm1 = vmmov 0   ;;  %vm24_vm2 = vcmask 130048   ;;  %s173_s1 = inlined_call_operand.vmem [shape: f32[16,32], index: 1, kind: input, shape index: {}]   ;;  %s174_s0 = inlined_call_operand.vmem [shape: f32[2,16], index: 0, kind: input, shape index: {}]   ;;  %s175_s2 = inlined_call_operand.vmem [shape: f32[1,32], index: 2, kind: input, shape index: {}]   ;;  %s176_s3 = inlined_call_operand.vmem [shape: f32[2,32], index: 3, kind: output, shape index: {}]  }
   0x1   :  { %19 = vst.msk [vmem:[#allocation2] sm:$0x3] %vm18_vm0, %v133_v0  ;;  %124 = vmatprep.subr.mxu0 %v133_v0  ;;  %v23_v1 = vld [vmem:[%s173_s1 + $0x8] sm:$0xff]  ;;  %v22_v2 = vld [vmem:[%s173_s1] sm:$0xff]  ;;  %128 = vmatprep.mubr.msk.f32.mxu0 %vm134_vm1, %v133_v0 }
   0x2   :  { %125 = vmatpush3.msra.mxu0 %v23_v1  ;;  %v21_v3 = vld [vmem:[%s174_s0] sm:$0x3] }
   0x3   :  { %126 = vmatprep.subr.mxu0 %v133_v0  ;;  %v120_v8 = vld [vmem:[%s175_s2] ss:$0 sm:$0xff] }
   0x4   :  { %127 = vmatpush3.msra.mxu0 %v22_v2 }
   0x5   :  { %129 = vmatmul.mubr.msk.f32.vlgmr.msra.gmra.mxu0 %vm24_vm2, %v21_v3 }
   0x8   :  { %v20_v4 = vld [vmem:[#allocation2] sm:$0x3] }
  0xc5   :  { %v94_v5 = vpop.f32.mrf.mxu0 }
  0xc6   :  { %v98_v6 = vadd.f32 %v94_v5, %v20_v4 }
  0xc7   :  { %v130_v7 = vpop.f32.mrf.mxu0 }
  0xc8   :  { %100 = vst.msk [vmem:[#allocation2] sm:$0x3] %vm18_vm0, %v98_v6 }
  0xcf   :  { %v104_v9 = vld [vmem:[#allocation2] sm:$0x3] }
  0xd0   :  { %v112_v10 = vadd.f32 %v120_v8, %v104_v9 }
  0xd2   :  { %v113_v11 = vmax.f32 %v112_v10, 0.0 }
  0xd4   :  { %114 = vst.msk [vmem:[%s176_s3] sm:$0x3] %vm18_vm0, %v113_v11 }

// kernel: _forward.51
= control target key start
LH: loop header
LB: loop body
LE: loop exit
PB: predicated region body
PF: predicated region fallthrough
CT: control target
= control target key end

     0   :  { %vm18_vm0 = vcmask 123904   ;;  %v133_v0 = vmov 0.0   ;;  %vm134_vm1 = vmmov 0   ;;  %vm24_vm2 = vcmask 130048   ;;  %s173_s1 = inlined_call_operand.vmem [shape: f32[16,16], index: 1, kind: input, shape index: {}]   ;;  %s174_s0 = inlined_call_operand.vmem [shape: f32[2,16], index: 0, kind: input, shape index: {}]   ;;  %s175_s2 = inlined_call_operand.vmem [shape: f32[1,16], index: 2, kind: input, shape index: {}]   ;;  %s176_s3 = inlined_call_operand.vmem [shape: f32[2,16], index: 3, kind: output, shape index: {}]  }
   0x1   :  { %19 = vst.msk [vmem:[#allocation2] sm:$0x3] %vm18_vm0, %v133_v0  ;;  %124 = vmatprep.subr.mxu0 %v133_v0  ;;  %v23_v1 = vld [vmem:[%s173_s1 + $0x8] sm:$0xff]  ;;  %v22_v2 = vld [vmem:[%s173_s1] sm:$0xff]  ;;  %128 = vmatprep.mubr.msk.f32.mxu0 %vm134_vm1, %v133_v0 }
   0x2   :  { %125 = vmatpush3.msra.mxu0 %v23_v1  ;;  %v21_v3 = vld [vmem:[%s174_s0] sm:$0x3] }
   0x3   :  { %126 = vmatprep.subr.mxu0 %v133_v0  ;;  %v120_v8 = vld [vmem:[%s175_s2] ss:$0 sm:$0xff] }
   0x4   :  { %127 = vmatpush3.msra.mxu0 %v22_v2 }
   0x5   :  { %129 = vmatmul.mubr.msk.f32.vlgmr.msra.gmra.mxu0 %vm24_vm2, %v21_v3 }
   0x8   :  { %v20_v4 = vld [vmem:[#allocation2] sm:$0x3] }
  0xc5   :  { %v94_v5 = vpop.f32.mrf.mxu0 }
  0xc6   :  { %v98_v6 = vadd.f32 %v94_v5, %v20_v4 }
  0xc7   :  { %v130_v7 = vpop.f32.mrf.mxu0 }
  0xc8   :  { %100 = vst.msk [vmem:[#allocation2] sm:$0x3] %vm18_vm0, %v98_v6 }
  0xcf   :  { %v104_v9 = vld [vmem:[#allocation2] sm:$0x3] }
  0xd0   :  { %v112_v10 = vadd.f32 %v120_v8, %v104_v9 }
  0xd2   :  { %v113_v11 = vmax.f32 %v112_v10, 0.0 }
  0xd4   :  { %114 = vst.msk [vmem:[%s176_s3] sm:$0x3] %vm18_vm0, %v113_v11 }

// kernel: _forward.53
= control target key start
LH: loop header
LB: loop body
LE: loop exit
PB: predicated region body
PF: predicated region fallthrough
CT: control target
= control target key end

     0   :  { %vm18_vm0 = vcmask 779264   ;;  %v140_v0 = vmov 0.0   ;;  %vm141_vm1 = vmmov 0   ;;  %vm26_vm2 = vcmask 261120   ;;  %s186_s1 = inlined_call_operand.vmem [shape: f32[32,96], index: 1, kind: input, shape index: {}]   ;;  %s187_s0 = inlined_call_operand.vmem [shape: f32[2,32], index: 0, kind: input, shape index: {}]   ;;  %s188_s2 = inlined_call_operand.vmem [shape: f32[1,96], index: 2, kind: input, shape index: {}]   ;;  %s189_s3 = inlined_call_operand.vmem [shape: f32[2,96], index: 3, kind: output, shape index: {}]  }
   0x1   :  { %127 = vmatprep.subr.mxu0 %v140_v0  ;;  %v25_v1 = vld [vmem:[%s186_s1 + $0x18] sm:$0xff]  ;;  %v24_v2 = vld [vmem:[%s186_s1 + $0x10] sm:$0xff]  ;;  %135 = vmatprep.mubr.msk.f32.mxu0 %vm141_vm1, %v140_v0  ;;  %19 = vst.msk [vmem:[#allocation2] sm:$0x3] %vm18_vm0, %v140_v0  ;;  %v23_v3 = vld [vmem:[%s186_s1 + $0x8] sm:$0xff] }
   0x2   :  { %128 = vmatpush3.msra.mxu0 %v25_v1  ;;  %v22_v4 = vld [vmem:[%s186_s1] sm:$0xff] }
   0x3   :  { %129 = vmatprep.subr.mxu0 %v140_v0  ;;  %v21_v5 = vld [vmem:[%s187_s0] sm:$0x3] }
   0x4   :  { %130 = vmatpush3.msra.mxu0 %v24_v2  ;;  %v121_v10 = vld [vmem:[%s188_s2] ss:$0 sm:$0xff] }
   0x5   :  { %131 = vmatprep.subr.mxu0 %v140_v0 }
   0x6   :  { %132 = vmatpush3.msra.mxu0 %v23_v3 }
   0x7   :  { %133 = vmatprep.subr.mxu0 %v140_v0 }
   0x8   :  { %134 = vmatpush3.msra.mxu0 %v22_v4  ;;  %v20_v6 = vld [vmem:[#allocation2] sm:$0x3] }
   0x9   :  { %136 = vmatmul.mubr.msk.f32.vlgmr.msra.gmra.mxu0 %vm26_vm2, %v21_v5 }
  0xc9   :  { %v96_v7 = vpop.f32.mrf.mxu0 }
  0xca   :  { %v100_v8 = vadd.f32 %v96_v7, %v20_v6 }
  0xcb   :  { %v137_v9 = vpop.f32.mrf.mxu0 }
  0xcc   :  { %102 = vst.msk [vmem:[#allocation2] sm:$0x3] %vm18_vm0, %v100_v8 }
  0xd3   :  { %v106_v11 = vld [vmem:[#allocation2] sm:$0x3] }
  0xd4   :  { %v114_v12 = vadd.f32 %v121_v10, %v106_v11 }
  0xd6   :  { %115 = vst.msk [vmem:[%s189_s3] sm:$0x3] %vm18_vm0, %v114_v12 }

// kernel: _forward.54
= control target key start
LH: loop header
LB: loop body
LE: loop exit
PB: predicated region body
PF: predicated region fallthrough
CT: control target
= control target key end

     0   :  { %s745_s12 = smov 0   ;;  %s799_s0 = inlined_call_operand.vmem [shape: f32[2,1,32], index: 0, kind: input, shape index: {}]   ;;  %s800_s1 = inlined_call_operand.vmem [shape: f32[2,1,32], index: 1, kind: input, shape index: {}]   ;;  %s801_s2 = inlined_call_operand.vmem [shape: f32[2,1,32], index: 2, kind: input, shape index: {}]   ;;  %s802_s3 = inlined_call_operand.vmem [shape: f32[2,1,32], index: 3, kind: output, shape index: {}]  }
   0x1 LB: > { %s642_s13 = sadd.s32 4294967295, %s721_s12   ;;  %p646_p0 = scmp.ge.s32.totalorder %s721_s12, 1  ;;  %s721_s12 = sphi %s745_s12, %s13_s12  }
   0x2   : > { %p151_p1 = scmp.lt.s32.totalorder %s721_s12, 3 }
   0x4   : > { %p152_p2 = pnand %p646_p0, %p151_p1 }
   0x5   : > { %p177_p3 = scmp.lt.s32.totalorder (!%p152_p2), %s642_s13, 1 }
   0x6   : > { %155 = sbr.rel (%p152_p2) target bundleno = 402 (0x192), region = 32 }
   0xb   : > { %v192_v0 = vlaneseq  ;;  %v723_v1 = vmov 0.0   ;;  %s804_s13 = smov (!%p177_p3, %s642_s13), 1  ;;  %vm202_vm7 = vcmask 253952   ;;  %vm237_vm11 = vcmask 1040384  }
   0xc   : > { %669 = vmatprep.subr.mxu0 %v723_v1  ;;  %674 = vmatprep.subr.mxu1 %v723_v1  ;;  %s179_s16 = scalar_lea.vmem %s799_s0, %s804_s13  ;;  %s182_s19 = scalar_lea.vmem %s800_s1, %s804_s13  ;;  %vm724_vm12 = vmmov 0   ;;  %vm233_vm13 = vcmask 7168  }
   0xd   : > { %v193_v2 = vand.u32 127, %v192_v0  ;;  %v189_v3 = vld [vmem:[%s179_s16] sm:$0x1]  ;;  %s185_s22 = scalar_lea.vmem %s801_s2, %s804_s13  ;;  %671 = vmatprep.mubr.msk.f32.mxu0 %vm724_vm12, %v723_v1  ;;  %676 = vmatprep.mubr.msk.f32.mxu1 %vm724_vm12, %v723_v1  ;;  %s188_s25 = scalar_lea.vmem %s802_s3, %s804_s13 }
   0xe   : > { %v190_v4 = vld [vmem:[%s182_s19] sm:$0x1] }
   0xf   : > { %vm387_vm0 = vcmp.ge.s32.totalorder %v193_v2, 16  ;;  %vm388_vm1 = vcmp.lt.s32.totalorder %v193_v2, 24  ;;  %vm214_vm2 = vcmp.ge.s32.totalorder %v193_v2, 8  ;;  %vm215_vm3 = vcmp.lt.s32.totalorder %v193_v2, 16  ;;  %v191_v25 = vld [vmem:[%s185_s22] sm:$0x1] }
  0x10   : > { %vm389_vm4 = vmand %vm387_vm0, %vm388_vm1  ;;  %vm483_vm5 = vcmp.ge.s32.totalorder %v193_v2, 24  ;;  %vm484_vm6 = vcmp.lt.s32.totalorder %v193_v2, 32  ;;  %vm195_vm9 = vcmp.lt.s32.totalorder %v193_v2, 8 }
  0x11   : > { %v653_v5 = vsel %vm389_vm4, 1.0, %v723_v1  ;;  %vm216_vm8 = vmand %vm214_vm2, %vm215_vm3  ;;  %v647_v9 = vsel %vm195_vm9, 1.0, %v723_v1 }
  0x12   : > { %v392_v6 = vmul.f32 %v653_v5, %v189_v3  ;;  %v393_v7 = vmul.f32 %v653_v5, %v190_v4  ;;  %v648_v8 = vsel %vm216_vm8, 1.0, %v723_v1  ;;  %vm485_vm10 = vmand %vm483_vm5, %vm484_vm6  ;;  %v199_v13 = vmul.f32 %v647_v9, %v189_v3 }
  0x13   : > { %v219_v10 = vmul.f32 %v648_v8, %v189_v3  ;;  %v220_v11 = vmul.f32 %v648_v8, %v190_v4  ;;  %v656_v12 = vsel %vm485_vm10, 1.0, %v723_v1  ;;  %v200_v17 = vmul.f32 %v647_v9, %v190_v4 }
  0x14   : > { %v394_v14 = vmul.f32 %v393_v7, %v392_v6  ;;  %v488_v15 = vmul.f32 %v656_v12, %v189_v3  ;;  %v489_v16 = vmul.f32 %v656_v12, %v190_v4  ;;  %v232_v26 = vmul.f32 %v648_v8, %v191_v25 }
  0x15   : > { %v221_v18 = vmul.f32 %v220_v11, %v219_v10  ;;  %v201_v21 = vmul.f32 %v200_v17, %v199_v13  ;;  %v213_v27 = vmul.f32 %v647_v9, %v191_v25  ;;  %v405_v28 = vmul.f32 %v653_v5, %v191_v25 }
  0x16   : > { %v395_v19 = vsel %vm202_vm7, %v394_v14, 0.0  ;;  %v490_v20 = vmul.f32 %v489_v16, %v488_v15  ;;  %670 = vmatpush3.msk.msra.mxu0 %vm237_vm11, %v232_v26  ;;  %v501_v29 = vmul.f32 %v656_v12, %v191_v25 }
  0x17   : > { %396 = vadd.xlane.f32.xlu1 %v395_v19  ;;  %v222_v22 = vsel %vm202_vm7, %v221_v18, 0.0  ;;  %v203_v24 = vsel %vm202_vm7, %v201_v21, 0.0  ;;  %679 = vmatprep.subr.mxu0 %v723_v1 }
  0x18   : > { %223 = vadd.xlane.f32.xlu0 %v222_v22  ;;  %v491_v23 = vsel %vm202_vm7, %v490_v20, 0.0  ;;  %675 = vmatpush3.msk.msra.mxu1 %vm237_vm11, %v213_v27 }
  0x19   : > { %684 = vmatprep.subr.mxu1 %v723_v1 }
  0x1b   : > { %492 = vadd.xlane.f32.xlu1 %v491_v23 }
  0x1c   : > { %204 = vadd.xlane.f32.xlu0 %v203_v24 }
  0xa0   : > { %v397_v30 = vpop.xlane.xlu1 %396 }
  0xa1   : > { %v398_v31 = vmul.f32 0.35355338, %v397_v30  ;;  %v224_v32 = vpop.xlane.xlu0 %223 }
  0xa2   : > { %v225_v33 = vmul.f32 0.35355338, %v224_v32 }
  0xa3   : > { %v399_v34 = vsub.f32 %v398_v31, %v398_v31 }
  0xa4   : > { %v226_v35 = vsub.f32 %v225_v33, %v225_v33  ;;  %v493_v36 = vpop.xlane.xlu1 %492 }
  0xa5   : > { %v400_v37 = vmul.f32 1.442695, %v399_v34  ;;  %v494_v38 = vmul.f32 0.35355338, %v493_v36  ;;  %v205_v39 = vpop.xlane.xlu0 %204 }
  0xa6   : > { %v227_v40 = vmul.f32 1.442695, %v226_v35  ;;  %v206_v41 = vmul.f32 0.35355338, %v205_v39 }
  0xa7   : > { %699 = vpow2.f32 %v400_v37  ;;  %v495_v42 = vsub.f32 %v494_v38, %v494_v38 }
  0xa8   : > { %701 = vpow2.f32 %v227_v40  ;;  %v207_v43 = vsub.f32 %v206_v41, %v206_v41 }
  0xa9   : > { %v496_v44 = vmul.f32 1.442695, %v495_v42 }
  0xaa   : > { %v208_v45 = vmul.f32 1.442695, %v207_v43 }
  0xab   : > { %703 = vpow2.f32 %v496_v44 }
  0xac   : > { %705 = vpow2.f32 %v208_v45 }
  0xb4   : > { %v700_v46 = vpop.eup %699 }
  0xb5   : > { %v702_v47 = vpop.eup %701 }
  0xb6   : > { %707 = vrcp.f32 %v702_v47 }
  0xb7   : > { %709 = vrcp.f32 %v700_v46 }
  0xb8   : > { %v704_v48 = vpop.eup %703 }
  0xb9   : > { %v706_v49 = vpop.eup %705 }
  0xba   : > { %711 = vrcp.f32 %v706_v49 }
  0xbb   : > { %713 = vrcp.f32 %v704_v48 }
  0xc3   : > { %v708_v50 = vpop.eup %707 }
  0xc4   : > { %v231_v51 = vmul.f32 %v708_v50, %v702_v47  ;;  %v710_v52 = vpop.eup %709 }
  0xc5   : > { %v404_v55 = vmul.f32 %v710_v52, %v700_v46 }
  0xc6   : > { %672 = vmatmul.mubr.msk.f32.vlgmr.msra.gmra.mxu0 %vm233_vm13, %v231_v51 }
  0xc7   : > { %v712_v53 = vpop.eup %711  ;;  %680 = vmatpush3.msk.msra.mxu0 %vm237_vm11, %v405_v28  ;;  %681 = vmatprep.mubr.msk.f32.mxu0 %vm724_vm12, %v723_v1 }
  0xc8   : > { %v212_v54 = vmul.f32 %v712_v53, %v706_v49  ;;  %v714_v56 = vpop.eup %713 }
  0xc9   : > { %v500_v57 = vmul.f32 %v714_v56, %v704_v48 }
  0xca   : > { %677 = vmatmul.mubr.msk.f32.vlgmr.msra.gmra.mxu1 %vm233_vm13, %v212_v54  ;;  %682 = vmatmul.mubr.msk.f32.vlgmr.msra.gmra.mxu0 %vm233_vm13, %v404_v55 }
  0xcb   : > { %685 = vmatpush3.msk.msra.mxu1 %vm237_vm11, %v501_v29  ;;  %686 = vmatprep.mubr.msk.f32.mxu1 %vm724_vm12, %v723_v1 }
  0xce   : > { %687 = vmatmul.mubr.msk.f32.vlgmr.msra.gmra.mxu1 %vm233_vm13, %v500_v57 }
 0x186   : > { %v307_v58 = vpop.f32.mrf.mxu0 }
 0x188   : > { %v673_v59 = vpop.f32.mrf.mxu0 }
 0x18a   : > { %v383_v60 = vpop.f32.mrf.mxu1  ;;  %v478_v61 = vpop.f32.mrf.mxu0 }
 0x18b   : > { %v384_v62 = vadd.f32 %v383_v60, %v307_v58 }
 0x18c   : > { %v678_v63 = vpop.f32.mrf.mxu1  ;;  %v683_v0 = vpop.f32.mrf.mxu0 }
 0x18d   : > { %v482_v2 = vadd.f32 %v478_v61, %v384_v62 }
 0x18e   : > { %v574_v3 = vpop.f32.mrf.mxu1 }
 0x18f   : > { %v578_v4 = vadd.f32 %v574_v3, %v482_v2 }
 0x190   : > { %v688_v5 = vpop.f32.mrf.mxu1 }
 0x191   : > { %579 = vst.msk [vmem:[%s188_s25] sm:$0x1] %vm202_vm7, %v578_v4 }
 0x192 PF: > { %s13_s12 = sadd.s32 1, %s721_s12  }
 0x193   : > { %p10_p4 = scmp.ge.s32.totalorder %s13_s12, 4  }
 0x195   :  { %12 = sbr.rel (!%p10_p4) target bundleno = 1 (0x1), region = 68 }

// kernel: _forward.55
= control target key start
LH: loop header
LB: loop body
LE: loop exit
PB: predicated region body
PF: predicated region fallthrough
CT: control target
= control target key end

     0   :  { %vm18_vm0 = vcmask 254976   ;;  %v140_v0 = vmov 0.0   ;;  %vm141_vm1 = vmmov 0   ;;  %vm26_vm2 = vcmask 261120   ;;  %s186_s1 = inlined_call_operand.vmem [shape: f32[32,32], index: 1, kind: input, shape index: {}]   ;;  %s187_s0 = inlined_call_operand.vmem [shape: f32[2,32], index: 0, kind: input, shape index: {}]   ;;  %s188_s2 = inlined_call_operand.vmem [shape: f32[1,32], index: 2, kind: input, shape index: {}]   ;;  %s189_s3 = inlined_call_operand.vmem [shape: f32[2,32], index: 3, kind: output, shape index: {}]  }
   0x1   :  { %127 = vmatprep.subr.mxu0 %v140_v0  ;;  %v25_v1 = vld [vmem:[%s186_s1 + $0x18] sm:$0xff]  ;;  %v24_v2 = vld [vmem:[%s186_s1 + $0x10] sm:$0xff]  ;;  %135 = vmatprep.mubr.msk.f32.mxu0 %vm141_vm1, %v140_v0  ;;  %19 = vst.msk [vmem:[#allocation2] sm:$0x3] %vm18_vm0, %v140_v0  ;;  %v23_v3 = vld [vmem:[%s186_s1 + $0x8] sm:$0xff] }
   0x2   :  { %128 = vmatpush3.msra.mxu0 %v25_v1  ;;  %v22_v4 = vld [vmem:[%s186_s1] sm:$0xff] }
   0x3   :  { %129 = vmatprep.subr.mxu0 %v140_v0  ;;  %v21_v5 = vld [vmem:[%s187_s0] sm:$0x3] }
   0x4   :  { %130 = vmatpush3.msra.mxu0 %v24_v2  ;;  %v121_v10 = vld [vmem:[%s188_s2] ss:$0 sm:$0xff] }
   0x5   :  { %131 = vmatprep.subr.mxu0 %v140_v0 }
   0x6   :  { %132 = vmatpush3.msra.mxu0 %v23_v3 }
   0x7   :  { %133 = vmatprep.subr.mxu0 %v140_v0 }
   0x8   :  { %134 = vmatpush3.msra.mxu0 %v22_v4  ;;  %v20_v6 = vld [vmem:[#allocation2] sm:$0x3] }
   0x9   :  { %136 = vmatmul.mubr.msk.f32.vlgmr.msra.gmra.mxu0 %vm26_vm2, %v21_v5 }
  0xc9   :  { %v96_v7 = vpop.f32.mrf.mxu0 }
  0xca   :  { %v100_v8 = vadd.f32 %v96_v7, %v20_v6 }
  0xcb   :  { %v137_v9 = vpop.f32.mrf.mxu0 }
  0xcc   :  { %102 = vst.msk [vmem:[#allocation2] sm:$0x3] %vm18_vm0, %v100_v8 }
  0xd3   :  { %v106_v11 = vld [vmem:[#allocation2] sm:$0x3] }
  0xd4   :  { %v114_v12 = vadd.f32 %v121_v10, %v106_v11 }
  0xd6   :  { %115 = vst.msk [vmem:[%s189_s3] sm:$0x3] %vm18_vm0, %v114_v12 }

// kernel: _forward.58
= control target key start
LH: loop header
LB: loop body
LE: loop exit
PB: predicated region body
PF: predicated region fallthrough
CT: control target
= control target key end

     0   :  { %vm18_vm0 = vcmask 254976   ;;  %v156_v0 = vmov 0.0   ;;  %vm157_vm1 = vmmov 0   ;;  %vm30_vm2 = vcmask 523264   ;;  %s214_s1 = inlined_call_operand.vmem [shape: f32[64,32], index: 1, kind: input, shape index: {}]   ;;  %s215_s0 = inlined_call_operand.vmem [shape: f32[2,64], index: 0, kind: input, shape index: {}]   ;;  %s216_s2 = inlined_call_operand.vmem [shape: f32[1,32], index: 2, kind: input, shape index: {}]   ;;  %s217_s3 = inlined_call_operand.vmem [shape: f32[2,32], index: 3, kind: output, shape index: {}]  }
   0x1   :  { %135 = vmatprep.subr.mxu0 %v156_v0  ;;  %v29_v1 = vld [vmem:[%s214_s1 + $0x38] sm:$0xff]  ;;  %v28_v2 = vld [vmem:[%s214_s1 + $0x30] sm:$0xff]  ;;  %151 = vmatprep.mubr.msk.f32.mxu0 %vm157_vm1, %v156_v0  ;;  %19 = vst.msk [vmem:[#allocation2] sm:$0x3] %vm18_vm0, %v156_v0  ;;  %v27_v3 = vld [vmem:[%s214_s1 + $0x28] sm:$0xff] }
   0x2   :  { %136 = vmatpush3.msra.mxu0 %v29_v1  ;;  %v26_v4 = vld [vmem:[%s214_s1 + $0x20] sm:$0xff]  ;;  %v25_v5 = vld [vmem:[%s214_s1 + $0x18] sm:$0xff]  ;;  %v24_v6 = vld [vmem:[%s214_s1 + $0x10] sm:$0xff] }
   0x3   :  { %137 = vmatprep.subr.mxu0 %v156_v0  ;;  %v23_v7 = vld [vmem:[%s214_s1 + $0x8] sm:$0xff]  ;;  %v22_v8 = vld [vmem:[%s214_s1] sm:$0xff] }
   0x4   :  { %138 = vmatpush3.msra.mxu0 %v28_v2  ;;  %v21_v9 = vld [vmem:[%s215_s0] sm:$0x3] }
   0x5   :  { %139 = vmatprep.subr.mxu0 %v156_v0  ;;  %v125_v14 = vld [vmem:[%s216_s2] ss:$0 sm:$0xff] }
   0x6   :  { %140 = vmatpush3.msra.mxu0 %v27_v3 }
   0x7   :  { %141 = vmatprep.subr.mxu0 %v156_v0 }
   0x8   :  { %142 = vmatpush3.msra.mxu0 %v26_v4  ;;  %v20_v10 = vld [vmem:[#allocation2] sm:$0x3] }
   0x9   :  { %143 = vmatprep.subr.mxu0 %v156_v0 }
   0xa   :  { %144 = vmatpush3.msra.mxu0 %v25_v5 }
   0xb   :  { %145 = vmatprep.subr.mxu0 %v156_v0 }
   0xc   :  { %146 = vmatpush3.msra.mxu0 %v24_v6 }
   0xd   :  { %147 = vmatprep.subr.mxu0 %v156_v0 }
   0xe   :  { %148 = vmatpush3.msra.mxu0 %v23_v7 }
   0xf   :  { %149 = vmatprep.subr.mxu0 %v156_v0 }
  0x10   :  { %150 = vmatpush3.msra.mxu0 %v22_v8 }
  0x11   :  { %152 = vmatmul.mubr.msk.f32.vlgmr.msra.gmra.mxu0 %vm30_vm2, %v21_v9 }
  0xd1   :  { %v100_v11 = vpop.f32.mrf.mxu0 }
  0xd2   :  { %v104_v12 = vadd.f32 %v100_v11, %v20_v10 }
  0xd3   :  { %v153_v13 = vpop.f32.mrf.mxu0 }
  0xd4   :  { %106 = vst.msk [vmem:[#allocation2] sm:$0x3] %vm18_vm0, %v104_v12 }
  0xdb   :  { %v110_v15 = vld [vmem:[#allocation2] sm:$0x3] }
  0xdc   :  { %v118_v16 = vadd.f32 %v125_v14, %v110_v15 }
  0xde   :  { %119 = vst.msk [vmem:[%s217_s3] sm:$0x3] %vm18_vm0, %v118_v16 }

// kernel: _forward.69
= control target key start
LH: loop header
LB: loop body
LE: loop exit
PB: predicated region body
PF: predicated region fallthrough
CT: control target
= control target key end

     0   :  { %vm20_vm0 = vcmask 1024   ;;  %v152_v0 = vmov 0.0   ;;  %vm153_vm1 = vmmov 0   ;;  %vm28_vm2 = vcmask 261120   ;;  %s198_s1 = inlined_call_operand.vmem [shape: f32[32,1], index: 1, kind: input, shape index: {}]   ;;  %s199_s2 = inlined_call_operand.<no memory space> [shape: f32[1,1], index: 2, kind: input, shape index: {}]   ;;  %s200_s0 = inlined_call_operand.vmem [shape: f32[2,32], index: 0, kind: input, shape index: {}]   ;;  %s201_s3 = inlined_call_operand.vmem [shape: f32[2,1], index: 3, kind: output, shape index: {}]  }
   0x1   :  { %135 = vmatprep.subr.mxu0 %v152_v0  ;;  %v27_v1 = vld [vmem:[%s198_s1 + $0x18] sm:$0xff]  ;;  %v26_v2 = vld [vmem:[%s198_s1 + $0x10] sm:$0xff]  ;;  %143 = vmatprep.mubr.msk.f32.mxu0 %vm153_vm1, %v152_v0  ;;  %v8_v3 = vstv %s199_s2  ;;  %21 = vst.msk [vmem:[#allocation2] sm:$0x3] %vm20_vm0, %v152_v0  ;;  %v25_v4 = vld [vmem:[%s198_s1 + $0x8] sm:$0xff] }
   0x2   :  { %136 = vmatpush3.msra.mxu0 %v27_v1  ;;  %9 = vst [vmem:[#allocation3] sm:$0x1] %v8_v3  ;;  %v24_v5 = vld [vmem:[%s198_s1] sm:$0xff] }
   0x3   :  { %137 = vmatprep.subr.mxu0 %v152_v0  ;;  %v23_v6 = vld [vmem:[%s200_s0] sm:$0x3] }
   0x4   :  { %138 = vmatpush3.msra.mxu0 %v26_v2 }
   0x5   :  { %139 = vmatprep.subr.mxu0 %v152_v0 }
   0x6   :  { %140 = vmatpush3.msra.mxu0 %v25_v4 }
   0x7   :  { %141 = vmatprep.subr.mxu0 %v152_v0 }
   0x8   :  { %142 = vmatpush3.msra.mxu0 %v24_v5  ;;  %v22_v7 = vld [vmem:[#allocation2] sm:$0x3] }
   0x9   :  { %144 = vmatmul.mubr.msk.f32.vlgmr.msra.gmra.mxu0 %vm28_vm2, %v23_v6  ;;  %v129_v11 = vld [vmem:[#allocation3] ss:$0 sm:$0xff] }
  0xc9   :  { %v98_v8 = vpop.f32.mrf.mxu0 }
  0xca   :  { %v102_v9 = vadd.f32 %v98_v8, %v22_v7 }
  0xcb   :  { %v145_v10 = vpop.f32.mrf.mxu0 }
  0xcc   :  { %104 = vst.msk [vmem:[#allocation2] sm:$0x3] %vm20_vm0, %v102_v9 }
  0xd3   :  { %v108_v12 = vld [vmem:[#allocation2] sm:$0x3] }
  0xd4   :  { %v116_v13 = vadd.f32 %v129_v11, %v108_v12 }
  0xd6   :  { %v117_v14 = vsub.f32 0.0, %v116_v13 }
  0xd8   :  { %v118_v15 = vmul.f32 1.442695, %v117_v14 }
  0xda   :  { %148 = vpow2.f32 %v118_v15 }
  0xe7   :  { %v149_v16 = vpop.eup %148 }
  0xe8   :  { %v120_v17 = vadd.f32 1.0, %v149_v16 }
  0xea   :  { %150 = vrcp.f32 %v120_v17 }
  0xf7   :  { %v151_v18 = vpop.eup %150 }
  0xf8   :  { %123 = vst.msk [vmem:[%s201_s3] sm:$0x3] %vm20_vm0, %v151_v18 }

// kernel: _forward.56
= control target key start
LH: loop header
LB: loop body
LE: loop exit
PB: predicated region body
PF: predicated region fallthrough
CT: control target
= control target key end

     0   :  { %vm20_vm0 = vcmask 254976   ;;  %s103_s0 = inlined_call_operand.vmem [shape: f32[2,32], index: 0, kind: input, shape index: {}]   ;;  %s104_s1 = inlined_call_operand.vmem [shape: f32[2,32], index: 1, kind: input, shape index: {}]   ;;  %s105_s2 = inlined_call_operand.vmem [shape: f32[1,32], index: 2, kind: input, shape index: {}]   ;;  %s106_s3 = inlined_call_operand.vmem [shape: f32[1,32], index: 3, kind: input, shape index: {}]   ;;  %s107_s4 = inlined_call_operand.vmem [shape: f32[2,32], index: 4, kind: output, shape index: {}]  }
   0x1   :  { %v17_v0 = vld [vmem:[%s103_s0] sm:$0x3] }
   0x2   :  { %v18_v1 = vld [vmem:[%s104_s1] sm:$0x3] }
   0x3   :  { %v19_v2 = vadd.f32 %v18_v1, %v17_v0  ;;  %v56_v13 = vld [vmem:[%s105_s2] ss:$0 sm:$0xff] }
   0x4   :  { %v57_v15 = vld [vmem:[%s106_s3] ss:$0 sm:$0xff] }
   0x5   :  { %v21_v3 = vsel %vm20_vm0, %v19_v2, 0.0 }
   0x6   :  { %22 = vadd.xlane.f32.xlu0 %v21_v3 }
  0x8f   :  { %v23_v4 = vpop.xlane.xlu0 %22 }
  0x90   :  { %v25_v5 = vmul.f32 0.03125, %v23_v4 }
  0x92   :  { %v26_v6 = vsub.f32 %v19_v2, %v25_v5 }
  0x94   :  { %v27_v7 = vmul.f32 %v26_v6, %v26_v6 }
  0x96   :  { %v28_v8 = vsel %vm20_vm0, %v27_v7, 0.0 }
  0x97   :  { %29 = vadd.xlane.f32.xlu0 %v28_v8 }
 0x120   :  { %v30_v9 = vpop.xlane.xlu0 %29 }
 0x121   :  { %v31_v10 = vmul.f32 0.03125, %v30_v9 }
 0x123   :  { %v32_v11 = vadd.f32 1e-05, %v31_v10 }
 0x125   :  { %58 = vrsqrt.f32 %v32_v11 }
 0x132   :  { %v59_v12 = vpop.eup %58 }
 0x133   :  { %v34_v14 = vmul.f32 %v59_v12, %v26_v6 }
 0x135   :  { %v42_v16 = vmul.f32 %v56_v13, %v34_v14 }
 0x137   :  { %v50_v17 = vadd.f32 %v57_v15, %v42_v16 }
 0x139   :  { %51 = vst.msk [vmem:[%s107_s4] sm:$0x3] %vm20_vm0, %v50_v17 }

// kernel: _forward.67
= control target key start
LH: loop header
LB: loop body
LE: loop exit
PB: predicated region body
PF: predicated region fallthrough
CT: control target
= control target key end

     0   :  { %v174_v1 = vmov 0.0   ;;  %vm175_vm0 = vmmov 0   ;;  %vm19_vm1 = vcmask 123904   ;;  %s221_s0 = inlined_call_operand.vmem [shape: f32[2,32], index: 0, kind: input, shape index: {}]   ;;  %s222_s1 = inlined_call_operand.vmem [shape: f32[32,16], index: 1, kind: input, shape index: {}]   ;;  %s223_s2 = inlined_call_operand.vmem [shape: f32[1,16], index: 2, kind: input, shape index: {}]   ;;  %s224_s3 = inlined_call_operand.hbm [shape: f32[2,16], index: 3, kind: output, shape index: {}]  }
   0x1   :  { %v26_v0 = vld [vmem:[%s222_s1 + $0x18] sm:$0xff]  ;;  %138 = vmatprep.subr.mxu0 %v174_v1  ;;  %v25_v2 = vld [vmem:[%s222_s1 + $0x10] sm:$0xff]  ;;  %146 = vmatprep.mubr.msk.f32.mxu0 %vm175_vm0, %v174_v1 }
   0x2   :  { %8 = vsyncpa [#allocation4], 0  ;;  %139 = vmatpush3.msra.mxu0 %v26_v0  ;;  %20 = vst.msk [vmem:[#allocation2] sm:$0x3] %vm19_vm1, %v174_v1  ;;  %v24_v3 = vld [vmem:[%s222_s1 + $0x8] sm:$0xff]  ;;  %v23_v4 = vld [vmem:[%s222_s1] sm:$0xff] }
   0x3   :  { %140 = vmatprep.subr.mxu0 %v174_v1  ;;  %v22_v5 = vld [vmem:[%s221_s0] sm:$0x3]  ;;  %vm27_vm2 = vcmask 261120   ;;  %s176_s1 = smov [#allocation3]  }
   0x4   :  { %141 = vmatpush3.msra.mxu0 %v25_v2  ;;  %v132_v10 = vld [vmem:[%s223_s2] ss:$0 sm:$0xff]  ;;  %s123_s24 = sshll.u32 %s176_s1, 4  ;;  %s124_s24 = int_to_ptr.vmem [resolvable:$true] %s123_s24 }
   0x5   :  { %142 = vmatprep.subr.mxu0 %v174_v1  ;;  %s152_s0 = scalar_lea.vmem %s124_s24, 32  ;;  %p157_p1 = scmp.lt.s32.totalorder %s124_s24, %s124_s24 }
   0x6   :  { %143 = vmatpush3.msra.mxu0 %v24_v3  ;;  %p153_p0 = scmp.ne.s32.totalorder %s124_s24, %s152_s0  ;;  %p158_p2 = scmp.lt.s32.totalorder %s152_s0, %s152_s0 }
   0x7   :  { %144 = vmatprep.subr.mxu0 %v174_v1 }
   0x8   :  { %145 = vmatpush3.msra.mxu0 %v23_v4  ;;  %p159_p3 = por %p158_p2, %p157_p1 }
   0x9   :  { %147 = vmatmul.mubr.msk.f32.vlgmr.msra.gmra.mxu0 %vm27_vm2, %v22_v5  ;;  %v21_v6 = vld [vmem:[#allocation2] sm:$0x3] }
   0xa   :  { %p160_p4 = pnand %p159_p3, %p153_p0 }
  0xc9   :  { %v97_v7 = vpop.f32.mrf.mxu0 }
  0xca   :  { %v101_v8 = vadd.f32 %v97_v7, %v21_v6 }
  0xcb   :  { %v148_v9 = vpop.f32.mrf.mxu0 }
  0xcc   :  { %103 = vst.msk [vmem:[#allocation2] sm:$0x3] %vm19_vm1, %v101_v8 }
  0xd3   :  { %v107_v11 = vld [vmem:[#allocation2] sm:$0x3] }
  0xd4   :  { %v115_v12 = vadd.f32 %v132_v10, %v107_v11 }
  0xd6   :  { %116 = vst.msk [vmem:[#allocation3] sm:$0x3] %vm19_vm1, %v115_v12 }
  0xd7   :  { %163 = shalt.err (!%p160_p4)
}
  0xd8   :  { %126 = dma.vmem_to_hbm [thread:$0]  %s124_s24, 32, %s224_s3, [#allocation4]  }
  0xd9   :  { %172 = dma.done.wait [#allocation4], 32  }
  0xda   :  { %173 = vsyncadd [#allocation4], 4294967264 }
  0xdb   :  { %130 = vsyncpa [#allocation4], 1 }

// kernel: _forward.57
= control target key start
LH: loop header
LB: loop body
LE: loop exit
PB: predicated region body
PF: predicated region fallthrough
CT: control target
= control target key end

     0   :  { %vm18_vm0 = vcmask 517120   ;;  %v141_v0 = vmov 0.0   ;;  %vm142_vm1 = vmmov 0   ;;  %vm26_vm2 = vcmask 261120   ;;  %s187_s1 = inlined_call_operand.vmem [shape: f32[32,64], index: 1, kind: input, shape index: {}]   ;;  %s188_s0 = inlined_call_operand.vmem [shape: f32[2,32], index: 0, kind: input, shape index: {}]   ;;  %s189_s2 = inlined_call_operand.vmem [shape: f32[1,64], index: 2, kind: input, shape index: {}]   ;;  %s190_s3 = inlined_call_operand.vmem [shape: f32[2,64], index: 3, kind: output, shape index: {}]  }
   0x1   :  { %128 = vmatprep.subr.mxu0 %v141_v0  ;;  %v25_v1 = vld [vmem:[%s187_s1 + $0x18] sm:$0xff]  ;;  %v24_v2 = vld [vmem:[%s187_s1 + $0x10] sm:$0xff]  ;;  %136 = vmatprep.mubr.msk.f32.mxu0 %vm142_vm1, %v141_v0  ;;  %19 = vst.msk [vmem:[#allocation2] sm:$0x3] %vm18_vm0, %v141_v0  ;;  %v23_v3 = vld [vmem:[%s187_s1 + $0x8] sm:$0xff] }
   0x2   :  { %129 = vmatpush3.msra.mxu0 %v25_v1  ;;  %v22_v4 = vld [vmem:[%s187_s1] sm:$0xff] }
   0x3   :  { %130 = vmatprep.subr.mxu0 %v141_v0  ;;  %v21_v5 = vld [vmem:[%s188_s0] sm:$0x3] }
   0x4   :  { %131 = vmatpush3.msra.mxu0 %v24_v2  ;;  %v122_v10 = vld [vmem:[%s189_s2] ss:$0 sm:$0xff] }
   0x5   :  { %132 = vmatprep.subr.mxu0 %v141_v0 }
   0x6   :  { %133 = vmatpush3.msra.mxu0 %v23_v3 }
   0x7   :  { %134 = vmatprep.subr.mxu0 %v141_v0 }
   0x8   :  { %135 = vmatpush3.msra.mxu0 %v22_v4  ;;  %v20_v6 = vld [vmem:[#allocation2] sm:$0x3] }
   0x9   :  { %137 = vmatmul.mubr.msk.f32.vlgmr.msra.gmra.mxu0 %vm26_vm2, %v21_v5 }
  0xc9   :  { %v96_v7 = vpop.f32.mrf.mxu0 }
  0xca   :  { %v100_v8 = vadd.f32 %v96_v7, %v20_v6 }
  0xcb   :  { %v138_v9 = vpop.f32.mrf.mxu0 }
  0xcc   :  { %102 = vst.msk [vmem:[#allocation2] sm:$0x3] %vm18_vm0, %v100_v8 }
  0xd3   :  { %v106_v11 = vld [vmem:[#allocation2] sm:$0x3] }
  0xd4   :  { %v114_v12 = vadd.f32 %v122_v10, %v106_v11 }
  0xd6   :  { %v115_v13 = vmax.f32 %v114_v12, 0.0 }
  0xd8   :  { %116 = vst.msk [vmem:[%s190_s3] sm:$0x3] %vm18_vm0, %v115_v13 }

// kernel: _forward.35
= control target key start
LH: loop header
LB: loop body
LE: loop exit
PB: predicated region body
PF: predicated region fallthrough
CT: control target
= control target key end

     0   :  { %vm18_vm0 = vcmask 123904   ;;  %v193_v34 = vmov 0.0   ;;  %s319_s1 = inlined_call_operand.vmem [shape: f32[256,16], index: 1, kind: input, shape index: {}]   ;;  %s320_s0 = inlined_call_operand.vmem [shape: f32[2,256], index: 0, kind: input, shape index: {}]   ;;  %s321_s2 = inlined_call_operand.vmem [shape: f32[1,16], index: 2, kind: input, shape index: {}]   ;;  %s322_s3 = inlined_call_operand.vmem [shape: f32[2,16], index: 3, kind: output, shape index: {}]  }
   0x1   :  { %v53_v0 = vld [vmem:[%s319_s1 + $0xf8] sm:$0xff]  ;;  %v52_v2 = vld [vmem:[%s319_s1 + $0xf0] sm:$0xff]  ;;  %v51_v4 = vld [vmem:[%s319_s1 + $0xe8] sm:$0xff]  ;;  %19 = vst.msk [vmem:[#allocation2] sm:$0x3] %vm18_vm0, %v193_v34 }
   0x2   :  { %v37_v1 = vld [vmem:[%s319_s1 + $0x78] sm:$0xff]  ;;  %157 = vmatprep.subr.mxu0 %v53_v0  ;;  %v36_v3 = vld [vmem:[%s319_s1 + $0x70] sm:$0xff]  ;;  %v35_v5 = vld [vmem:[%s319_s1 + $0x68] sm:$0xff] }
   0x3   :  { %158 = vmatpush3.msra.mxu0 %v37_v1  ;;  %v50_v6 = vld [vmem:[%s319_s1 + $0xe0] sm:$0xff]  ;;  %v49_v8 = vld [vmem:[%s319_s1 + $0xd8] sm:$0xff]  ;;  %v48_v10 = vld [vmem:[%s319_s1 + $0xd0] sm:$0xff] }
   0x4   :  { %159 = vmatprep.subr.mxu0 %v52_v2  ;;  %v34_v7 = vld [vmem:[%s319_s1 + $0x60] sm:$0xff]  ;;  %v33_v9 = vld [vmem:[%s319_s1 + $0x58] sm:$0xff]  ;;  %v32_v11 = vld [vmem:[%s319_s1 + $0x50] sm:$0xff] }
   0x5   :  { %160 = vmatpush3.msra.mxu0 %v36_v3  ;;  %v47_v12 = vld [vmem:[%s319_s1 + $0xc8] sm:$0xff]  ;;  %v155_v13 = vld.sshfl [vmem:[%s320_s0] sm:$0x33 pattern:$0x76325410]  ;;  %v45_v18 = vld [vmem:[%s319_s1 + $0xb8] sm:$0xff] }
   0x6   :  { %161 = vmatprep.subr.mxu0 %v51_v4  ;;  %v31_v14 = vld [vmem:[%s319_s1 + $0x48] sm:$0xff]  ;;  %v62_v15 = vcombine.high %v155_v13, %v155_v13  ;;  %v46_v16 = vld [vmem:[%s319_s1 + $0xc0] sm:$0xff]  ;;  %v29_v19 = vld [vmem:[%s319_s1 + $0x38] sm:$0xff] }
   0x7   :  { %162 = vmatpush3.msra.mxu0 %v35_v5  ;;  %v30_v17 = vld [vmem:[%s319_s1 + $0x40] sm:$0xff]  ;;  %v44_v20 = vld [vmem:[%s319_s1 + $0xb0] sm:$0xff]  ;;  %v43_v22 = vld [vmem:[%s319_s1 + $0xa8] sm:$0xff] }
   0x8   :  { %163 = vmatprep.subr.mxu0 %v50_v6  ;;  %129 = vmatprep.mubr.f32.mxu0 %v62_v15  ;;  %v28_v21 = vld [vmem:[%s319_s1 + $0x30] sm:$0xff]  ;;  %v27_v23 = vld [vmem:[%s319_s1 + $0x28] sm:$0xff]  ;;  %v42_v24 = vld [vmem:[%s319_s1 + $0xa0] sm:$0xff] }
   0x9   :  { %164 = vmatpush3.msra.mxu0 %v34_v7  ;;  %v26_v25 = vld [vmem:[%s319_s1 + $0x20] sm:$0xff]  ;;  %v41_v26 = vld [vmem:[%s319_s1 + $0x98] sm:$0xff]  ;;  %v40_v28 = vld [vmem:[%s319_s1 + $0x90] sm:$0xff] }
   0xa   :  { %165 = vmatprep.subr.mxu0 %v49_v8  ;;  %v25_v27 = vld [vmem:[%s319_s1 + $0x18] sm:$0xff]  ;;  %v24_v29 = vld [vmem:[%s319_s1 + $0x10] sm:$0xff]  ;;  %v39_v30 = vld [vmem:[%s319_s1 + $0x88] sm:$0xff] }
   0xb   :  { %166 = vmatpush3.msra.mxu0 %v33_v9  ;;  %v23_v31 = vld [vmem:[%s319_s1 + $0x8] sm:$0xff]  ;;  %v38_v32 = vld [vmem:[%s319_s1 + $0x80] sm:$0xff] }
   0xc   :  { %167 = vmatprep.subr.mxu0 %v48_v10  ;;  %v22_v33 = vld [vmem:[%s319_s1] sm:$0xff] }
   0xd   :  { %168 = vmatpush3.msra.mxu0 %v32_v11  ;;  %v20_v36 = vld [vmem:[#allocation2] sm:$0x3] }
   0xe   :  { %169 = vmatprep.subr.mxu0 %v47_v12  ;;  %v156_v40 = vld [vmem:[%s321_s2] ss:$0 sm:$0xff] }
   0xf   :  { %170 = vmatpush3.msra.mxu0 %v31_v14 }
  0x10   :  { %171 = vmatprep.subr.mxu0 %v46_v16 }
  0x11   :  { %172 = vmatpush3.msra.mxu0 %v30_v17 }
  0x12   :  { %173 = vmatprep.subr.mxu0 %v45_v18 }
  0x13   :  { %174 = vmatpush3.msra.mxu0 %v29_v19 }
  0x14   :  { %175 = vmatprep.subr.mxu0 %v44_v20 }
  0x15   :  { %176 = vmatpush3.msra.mxu0 %v28_v21 }
  0x16   :  { %177 = vmatprep.subr.mxu0 %v43_v22 }
  0x17   :  { %178 = vmatpush3.msra.mxu0 %v27_v23 }
  0x18   :  { %179 = vmatprep.subr.mxu0 %v42_v24 }
  0x19   :  { %180 = vmatpush3.msra.mxu0 %v26_v25 }
  0x1a   :  { %181 = vmatprep.subr.mxu0 %v41_v26 }
  0x1b   :  { %182 = vmatpush3.msra.mxu0 %v25_v27 }
  0x1c   :  { %183 = vmatprep.subr.mxu0 %v40_v28 }
  0x1d   :  { %184 = vmatpush3.msra.mxu0 %v24_v29 }
  0x1e   :  { %185 = vmatprep.subr.mxu0 %v39_v30 }
  0x1f   :  { %186 = vmatpush3.msra.mxu0 %v23_v31 }
  0x20   :  { %187 = vmatprep.subr.mxu0 %v38_v32 }
  0x21   :  { %188 = vmatpush3.msra.mxu0 %v22_v33 }
  0x22   :  { %130 = vmatmul.mubr.f32.vlgmr.msra.gmra.mxu0 %v155_v13 }
  0xe2   :  { %v189_v35 = vpop.f32.mrf.mxu0 }
  0xe4   :  { %v190_v37 = vpop.f32.mrf.mxu0 }
  0xe5   :  { %v191_v38 = vadd.f32 %v190_v37, %v189_v35 }
  0xe7   :  { %v135_v39 = vadd.f32 %v191_v38, %v20_v36 }
  0xe9   :  { %137 = vst.msk [vmem:[#allocation2] sm:$0x3] %vm18_vm0, %v135_v39 }
  0xf0   :  { %v141_v41 = vld [vmem:[#allocation2] sm:$0x3] }
  0xf1   :  { %v149_v42 = vadd.f32 %v156_v40, %v141_v41 }
  0xf3   :  { %150 = vst.msk [vmem:[%s322_s3] sm:$0x3] %vm18_vm0, %v149_v42 }

// kernel: _forward.36
= control target key start
LH: loop header
LB: loop body
LE: loop exit
PB: predicated region body
PF: predicated region fallthrough
CT: control target
= control target key end

     0   :  { %vm18_vm0 = vcmask 254976   ;;  %v132_v0 = vmov 0.0   ;;  %vm133_vm1 = vmmov 0   ;;  %vm24_vm2 = vcmask 130048   ;;  %s172_s1 = inlined_call_operand.vmem [shape: f32[16,32], index: 1, kind: input, shape index: {}]   ;;  %s173_s0 = inlined_call_operand.vmem [shape: f32[2,16], index: 0, kind: input, shape index: {}]   ;;  %s174_s2 = inlined_call_operand.vmem [shape: f32[1,32], index: 2, kind: input, shape index: {}]   ;;  %s175_s3 = inlined_call_operand.vmem [shape: f32[2,32], index: 3, kind: output, shape index: {}]  }
   0x1   :  { %19 = vst.msk [vmem:[#allocation2] sm:$0x3] %vm18_vm0, %v132_v0  ;;  %123 = vmatprep.subr.mxu0 %v132_v0  ;;  %v23_v1 = vld [vmem:[%s172_s1 + $0x8] sm:$0xff]  ;;  %v22_v2 = vld [vmem:[%s172_s1] sm:$0xff]  ;;  %127 = vmatprep.mubr.msk.f32.mxu0 %vm133_vm1, %v132_v0 }
   0x2   :  { %124 = vmatpush3.msra.mxu0 %v23_v1  ;;  %v21_v3 = vld [vmem:[%s173_s0] sm:$0x3] }
   0x3   :  { %125 = vmatprep.subr.mxu0 %v132_v0  ;;  %v119_v8 = vld [vmem:[%s174_s2] ss:$0 sm:$0xff] }
   0x4   :  { %126 = vmatpush3.msra.mxu0 %v22_v2 }
   0x5   :  { %128 = vmatmul.mubr.msk.f32.vlgmr.msra.gmra.mxu0 %vm24_vm2, %v21_v3 }
   0x8   :  { %v20_v4 = vld [vmem:[#allocation2] sm:$0x3] }
  0xc5   :  { %v94_v5 = vpop.f32.mrf.mxu0 }
  0xc6   :  { %v98_v6 = vadd.f32 %v94_v5, %v20_v4 }
  0xc7   :  { %v129_v7 = vpop.f32.mrf.mxu0 }
  0xc8   :  { %100 = vst.msk [vmem:[#allocation2] sm:$0x3] %vm18_vm0, %v98_v6 }
  0xcf   :  { %v104_v9 = vld [vmem:[#allocation2] sm:$0x3] }
  0xd0   :  { %v112_v10 = vadd.f32 %v119_v8, %v104_v9 }
  0xd2   :  { %113 = vst.msk [vmem:[%s175_s3] sm:$0x3] %vm18_vm0, %v112_v10 }

// kernel: _forward.37
= control target key start
LH: loop header
LB: loop body
LE: loop exit
PB: predicated region body
PF: predicated region fallthrough
CT: control target
= control target key end

     0   :  { %vm29_vm0 = vcmask 261120   ;;  %vm18_vm1 = vcmask 785408   ;;  %v157_v2 = vmov 0.0   ;;  %s213_s1 = inlined_call_operand.vmem [shape: f32[32,96], index: 1, kind: input, shape index: {}]   ;;  %s214_s0 = inlined_call_operand.vmem [shape: f32[16,32], index: 0, kind: input, shape index: {}]   ;;  %s215_s2 = inlined_call_operand.vmem [shape: f32[1,96], index: 2, kind: input, shape index: {}]   ;;  %s216_s3 = inlined_call_operand.vmem [shape: f32[16,96], index: 3, kind: output, shape index: {}]  }
   0x1   :  { %v28_v0 = vld [vmem:[%s213_s1 + $0x18] sm:$0xff]  ;;  %v27_v1 = vld [vmem:[%s213_s1 + $0x10] sm:$0xff]  ;;  %20 = vst.msk [vmem:[#allocation2 + $0x8] sm:$0xff] %vm18_vm1, %v157_v2  ;;  %19 = vst.msk [vmem:[#allocation2] sm:$0xff] %vm18_vm1, %v157_v2 }
   0x2   :  { %145 = vmatprep.subr.mxu0 %v28_v0  ;;  %v23_v3 = vld [vmem:[%s214_s0] sm:$0xff]  ;;  %v26_v4 = vld [vmem:[%s213_s1 + $0x8] sm:$0xff] }
   0x3   :  { %146 = vmatpush3.msra.mxu0 %v28_v0  ;;  %153 = vmatprep.mubr.msk.f32.mxu0 %vm29_vm0, %v23_v3  ;;  %v25_v5 = vld [vmem:[%s213_s1] sm:$0xff]  ;;  %v24_v6 = vld [vmem:[%s214_s0 + $0x8] sm:$0xff] }
   0x4   :  { %147 = vmatprep.subr.mxu0 %v27_v1  ;;  %v138_v13 = vld [vmem:[%s215_s2] ss:$0 sm:$0xff] }
   0x5   :  { %148 = vmatpush3.msra.mxu0 %v27_v1 }
   0x6   :  { %149 = vmatprep.subr.mxu0 %v26_v4 }
   0x7   :  { %150 = vmatpush3.msra.mxu0 %v26_v4 }
   0x8   :  { %151 = vmatprep.subr.mxu0 %v25_v5  ;;  %v22_v7 = vld [vmem:[#allocation2 + $0x8] sm:$0xff]  ;;  %v21_v9 = vld [vmem:[#allocation2] sm:$0xff] }
   0x9   :  { %152 = vmatpush3.msra.mxu0 %v25_v5 }
   0xa   :  { %154 = vmatmul.mubr.msk.f32.vlgmr.msra.gmra.mxu0 %vm29_vm0, %v24_v6 }
  0xca   :  { %v155_v8 = vpop.f32.mrf.mxu0 }
  0xcb   :  { %v112_v10 = vadd.f32 %v155_v8, %v22_v7 }
  0xcc   :  { %v102_v11 = vpop.f32.mrf.mxu0 }
  0xcd   :  { %115 = vst.msk [vmem:[#allocation2 + $0x8] sm:$0xff] %vm18_vm1, %v112_v10  ;;  %v111_v12 = vadd.f32 %v102_v11, %v21_v9 }
  0xcf   :  { %114 = vst.msk [vmem:[#allocation2] sm:$0xff] %vm18_vm1, %v111_v12 }
  0xd4   :  { %v120_v14 = vld [vmem:[#allocation2 + $0x8] sm:$0xff] }
  0xd5   :  { %v129_v15 = vadd.f32 %v138_v13, %v120_v14 }
  0xd6   :  { %v119_v16 = vld [vmem:[#allocation2] sm:$0xff] }
  0xd7   :  { %131 = vst.msk [vmem:[%s216_s3 + $0x8] sm:$0xff] %vm18_vm1, %v129_v15  ;;  %v128_v17 = vadd.f32 %v138_v13, %v119_v16 }
  0xd9   :  { %130 = vst.msk [vmem:[%s216_s3] sm:$0xff] %vm18_vm1, %v128_v17 }

// kernel: _forward.40
= control target key start
LH: loop header
LB: loop body
LE: loop exit
PB: predicated region body
PF: predicated region fallthrough
CT: control target
= control target key end

     0   :  { %vm23_vm0 = vcmask 261120   ;;  %s136_s0 = inlined_call_operand.vmem [shape: f32[16,32], index: 0, kind: input, shape index: {}]   ;;  %s137_s1 = inlined_call_operand.vmem [shape: f32[16,32], index: 1, kind: input, shape index: {}]   ;;  %s138_s2 = inlined_call_operand.vmem [shape: f32[1,32], index: 2, kind: input, shape index: {}]   ;;  %s139_s3 = inlined_call_operand.vmem [shape: f32[1,32], index: 3, kind: input, shape index: {}]   ;;  %s140_s4 = inlined_call_operand.vmem [shape: f32[16,32], index: 4, kind: output, shape index: {}]  }
   0x1   :  { %v17_v0 = vld [vmem:[%s136_s0] sm:$0xff]  ;;  %v18_v2 = vld [vmem:[%s136_s0 + $0x8] sm:$0xff] }
   0x2   :  { %v19_v1 = vld [vmem:[%s137_s1] sm:$0xff]  ;;  %v20_v4 = vld [vmem:[%s137_s1 + $0x8] sm:$0xff] }
   0x3   :  { %v21_v3 = vadd.f32 %v19_v1, %v17_v0  ;;  %v22_v5 = vadd.f32 %v20_v4, %v18_v2  ;;  %v75_v25 = vld [vmem:[%s138_s2] ss:$0 sm:$0xff] }
   0x4   :  { %v76_v27 = vld [vmem:[%s139_s3] ss:$0 sm:$0xff] }
   0x5   :  { %v24_v6 = vsel %vm23_vm0, %v21_v3, 0.0  ;;  %v27_v7 = vsel %vm23_vm0, %v22_v5, 0.0 }
   0x6   :  { %25 = vadd.xlane.f32.xlu0 %v24_v6 }
   0xa   :  { %28 = vadd.xlane.f32.xlu0 %v27_v7 }
  0x8f   :  { %v26_v8 = vpop.xlane.xlu0 %25 }
  0x90   :  { %v31_v9 = vmul.f32 0.03125, %v26_v8 }
  0x92   :  { %v33_v10 = vsub.f32 %v21_v3, %v31_v9 }
  0x93   :  { %v29_v11 = vpop.xlane.xlu0 %28 }
  0x94   :  { %v32_v12 = vmul.f32 0.03125, %v29_v11  ;;  %v35_v13 = vmul.f32 %v33_v10, %v33_v10 }
  0x96   :  { %v34_v14 = vsub.f32 %v22_v5, %v32_v12  ;;  %v37_v15 = vsel %vm23_vm0, %v35_v13, 0.0 }
  0x97   :  { %38 = vadd.xlane.f32.xlu1 %v37_v15 }
  0x98   :  { %v36_v16 = vmul.f32 %v34_v14, %v34_v14 }
  0x9a   :  { %v40_v17 = vsel %vm23_vm0, %v36_v16, 0.0 }
  0x9b   :  { %41 = vadd.xlane.f32.xlu1 %v40_v17 }
 0x120   :  { %v39_v18 = vpop.xlane.xlu1 %38 }
 0x121   :  { %v43_v19 = vmul.f32 0.03125, %v39_v18 }
 0x123   :  { %v45_v20 = vadd.f32 1e-05, %v43_v19 }
 0x124   :  { %v42_v21 = vpop.xlane.xlu1 %41 }
 0x125   :  { %77 = vrsqrt.f32 %v45_v20  ;;  %v44_v22 = vmul.f32 0.03125, %v42_v21 }
 0x127   :  { %v46_v23 = vadd.f32 1e-05, %v44_v22 }
 0x129   :  { %79 = vrsqrt.f32 %v46_v23 }
 0x132   :  { %v78_v24 = vpop.eup %77 }
 0x133   :  { %v49_v26 = vmul.f32 %v78_v24, %v33_v10 }
 0x135   :  { %v58_v28 = vmul.f32 %v75_v25, %v49_v26 }
 0x136   :  { %v80_v29 = vpop.eup %79 }
 0x137   :  { %v67_v30 = vadd.f32 %v76_v27, %v58_v28  ;;  %v50_v31 = vmul.f32 %v80_v29, %v34_v14 }
 0x139   :  { %69 = vst.msk [vmem:[%s140_s4] sm:$0xff] %vm23_vm0, %v67_v30  ;;  %v59_v32 = vmul.f32 %v75_v25, %v50_v31 }
 0x13b   :  { %v68_v33 = vadd.f32 %v76_v27, %v59_v32 }
 0x13d   :  { %70 = vst.msk [vmem:[%s140_s4 + $0x8] sm:$0xff] %vm23_vm0, %v68_v33 }

// kernel: _forward.39
= control target key start
LH: loop header
LB: loop body
LE: loop exit
PB: predicated region body
PF: predicated region fallthrough
CT: control target
= control target key end

     0   :  { %vm18_vm0 = vcmask 261120   ;;  %v156_v2 = vmov 0.0   ;;  %s212_s1 = inlined_call_operand.vmem [shape: f32[32,32], index: 1, kind: input, shape index: {}]   ;;  %s213_s0 = inlined_call_operand.vmem [shape: f32[16,32], index: 0, kind: input, shape index: {}]   ;;  %s214_s2 = inlined_call_operand.vmem [shape: f32[1,32], index: 2, kind: input, shape index: {}]   ;;  %s215_s3 = inlined_call_operand.vmem [shape: f32[16,32], index: 3, kind: output, shape index: {}]  }
   0x1   :  { %v28_v0 = vld [vmem:[%s212_s1 + $0x18] sm:$0xff]  ;;  %v27_v1 = vld [vmem:[%s212_s1 + $0x10] sm:$0xff]  ;;  %20 = vst.msk [vmem:[#allocation2 + $0x8] sm:$0xff] %vm18_vm0, %v156_v2  ;;  %19 = vst.msk [vmem:[#allocation2] sm:$0xff] %vm18_vm0, %v156_v2 }
   0x2   :  { %144 = vmatprep.subr.mxu0 %v28_v0  ;;  %v23_v3 = vld [vmem:[%s213_s0] sm:$0xff]  ;;  %v26_v4 = vld [vmem:[%s212_s1 + $0x8] sm:$0xff] }
   0x3   :  { %145 = vmatpush3.msra.mxu0 %v28_v0  ;;  %152 = vmatprep.mubr.msk.f32.mxu0 %vm18_vm0, %v23_v3  ;;  %v25_v5 = vld [vmem:[%s212_s1] sm:$0xff]  ;;  %v24_v6 = vld [vmem:[%s213_s0 + $0x8] sm:$0xff] }
   0x4   :  { %146 = vmatprep.subr.mxu0 %v27_v1  ;;  %v137_v13 = vld [vmem:[%s214_s2] ss:$0 sm:$0xff] }
   0x5   :  { %147 = vmatpush3.msra.mxu0 %v27_v1 }
   0x6   :  { %148 = vmatprep.subr.mxu0 %v26_v4 }
   0x7   :  { %149 = vmatpush3.msra.mxu0 %v26_v4 }
   0x8   :  { %150 = vmatprep.subr.mxu0 %v25_v5  ;;  %v22_v7 = vld [vmem:[#allocation2 + $0x8] sm:$0xff]  ;;  %v21_v9 = vld [vmem:[#allocation2] sm:$0xff] }
   0x9   :  { %151 = vmatpush3.msra.mxu0 %v25_v5 }
   0xa   :  { %153 = vmatmul.mubr.msk.f32.vlgmr.msra.gmra.mxu0 %vm18_vm0, %v24_v6 }
  0xca   :  { %v154_v8 = vpop.f32.mrf.mxu0 }
  0xcb   :  { %v112_v10 = vadd.f32 %v154_v8, %v22_v7 }
  0xcc   :  { %v102_v11 = vpop.f32.mrf.mxu0 }
  0xcd   :  { %114 = vst.msk [vmem:[#allocation2 + $0x8] sm:$0xff] %vm18_vm0, %v112_v10  ;;  %v111_v12 = vadd.f32 %v102_v11, %v21_v9 }
  0xcf   :  { %113 = vst.msk [vmem:[#allocation2] sm:$0xff] %vm18_vm0, %v111_v12 }
  0xd4   :  { %v119_v14 = vld [vmem:[#allocation2 + $0x8] sm:$0xff] }
  0xd5   :  { %v128_v15 = vadd.f32 %v137_v13, %v119_v14 }
  0xd6   :  { %v118_v16 = vld [vmem:[#allocation2] sm:$0xff] }
  0xd7   :  { %130 = vst.msk [vmem:[%s215_s3 + $0x8] sm:$0xff] %vm18_vm0, %v128_v15  ;;  %v127_v17 = vadd.f32 %v137_v13, %v118_v16 }
  0xd9   :  { %129 = vst.msk [vmem:[%s215_s3] sm:$0xff] %vm18_vm0, %v127_v17 }

// kernel: _forward.38
= control target key start
LH: loop header
LB: loop body
LE: loop exit
PB: predicated region body
PF: predicated region fallthrough
CT: control target
= control target key end

     0   :  { %s1102_s12 = smov 0   ;;  %s1191_s0 = inlined_call_operand.vmem [shape: f32[2,8,32], index: 0, kind: input, shape index: {}]   ;;  %s1192_s1 = inlined_call_operand.vmem [shape: f32[2,8,32], index: 1, kind: input, shape index: {}]   ;;  %s1193_s2 = inlined_call_operand.vmem [shape: f32[2,8,32], index: 2, kind: input, shape index: {}]   ;;  %s1194_s3 = inlined_call_operand.vmem [shape: f32[2,8,32], index: 3, kind: output, shape index: {}]  }
   0x1 LB: > { %s963_s13 = sadd.s32 4294967295, %s1078_s12   ;;  %p967_p0 = scmp.ge.s32.totalorder %s1078_s12, 1  ;;  %s1078_s12 = sphi %s1102_s12, %s13_s12  }
   0x2   : > { %p154_p1 = scmp.lt.s32.totalorder %s1078_s12, 3 }
   0x4   : > { %p155_p2 = pnand %p967_p0, %p154_p1 }
   0x5   : > { %p184_p3 = scmp.lt.s32.totalorder (!%p155_p2), %s963_s13, 1 }
   0x6   : > { %158 = sbr.rel (%p155_p2) target bundleno = 1241 (0x4d9), region = 32 }
   0xb   : > { %v203_v0 = vlaneseq  ;;  %v1080_v1 = vmov 0.0   ;;  %vm1081_vm0 = vmmov 0   ;;  %s1196_s13 = smov (!%p184_p3, %s963_s13), 1  ;;  %vm212_vm4 = vcmask 261120  }
   0xc   : > { %1011 = vmatprep.subr.mxu1 %v1080_v1  ;;  %1013 = vmatprep.mubr.msk.f32.mxu1 %vm1081_vm0, %v1080_v1  ;;  %s1116_s14 = sshll.u32 %s1196_s13, 3  ;;  %vm290_vm5 = vcmask 64512  }
   0xd   : > { %v204_v2 = vand.u32 127, %v203_v0  ;;  %1006 = vmatprep.subr.mxu0 %v1080_v1  ;;  %1008 = vmatprep.mubr.msk.f32.mxu0 %vm1081_vm0, %v1080_v1  ;;  %s191_s17 = scalar_lea.vmem %s1192_s1, %s1116_s14  ;;  %s187_s20 = scalar_lea.vmem %s1191_s0, %s1116_s14 }
   0xe   : > { %v201_v3 = vld [vmem:[%s191_s17] sm:$0xff]  ;;  %s195_s23 = scalar_lea.vmem %s1193_s2, %s1116_s14  ;;  %s199_s26 = scalar_lea.vmem %s1194_s3, %s1116_s14 }
   0xf   : > { %vm303_vm1 = vcmp.ge.s32.totalorder %v204_v2, 8  ;;  %vm304_vm2 = vcmp.lt.s32.totalorder %v204_v2, 16  ;;  %v200_v5 = vld [vmem:[%s187_s20] sm:$0xff]  ;;  %vm206_vm6 = vcmp.lt.s32.totalorder %v204_v2, 8  ;;  %vm545_vm7 = vcmp.ge.s32.totalorder %v204_v2, 16 }
  0x10   : > { %vm305_vm3 = vmand %vm303_vm1, %vm304_vm2  ;;  %v1134_v12 = vsel %vm206_vm6, 1.0, %v1080_v1  ;;  %v1148_v20 = vld [vmem:[%s195_s23] sm:$0xff]  ;;  %vm546_vm8 = vcmp.lt.s32.totalorder %v204_v2, 24  ;;  %vm715_vm10 = vcmp.ge.s32.totalorder %v204_v2, 24  ;;  %vm716_vm11 = vcmp.lt.s32.totalorder %v204_v2, 32 }
  0x11   : > { %v975_v4 = vsel %vm305_vm3, 1.0, %v1080_v1  ;;  %v211_v13 = vmul.f32 %v1134_v12, %v201_v3  ;;  %v210_v14 = vmul.f32 %v1134_v12, %v200_v5  ;;  %vm547_vm9 = vmand %vm545_vm7, %vm546_vm8  ;;  %v302_v50 = vmul.f32 %v1134_v12, %v1148_v20 }
  0x12   : > { %v309_v6 = vmul.f32 %v975_v4, %v201_v3  ;;  %v308_v7 = vmul.f32 %v975_v4, %v200_v5  ;;  %v398_v21 = vmul.f32 %v975_v4, %v1148_v20  ;;  %v980_v27 = vsel %vm547_vm9, 1.0, %v1080_v1  ;;  %vm717_vm12 = vmand %vm715_vm10, %vm716_vm11 }
  0x13   : > { %1007 = vmatpush3.xpose.msk.msra.mxu0 %vm212_vm4, %v211_v13  ;;  %v551_v29 = vmul.f32 %v980_v27, %v201_v3  ;;  %v984_v31 = vsel %vm717_vm12, 1.0, %v1080_v1  ;;  %v550_v32 = vmul.f32 %v980_v27, %v200_v5  ;;  %v640_v0 = vmul.f32 %v980_v27, %v1148_v20 }
  0x14   : > { %1012 = vmatpush3.xpose.msk.msra.mxu1 %vm212_vm4, %v309_v6  ;;  %1016 = vmatprep.subr.mxu0 %v1080_v1  ;;  %v721_v33 = vmul.f32 %v984_v31, %v201_v3  ;;  %v720_v34 = vmul.f32 %v984_v31, %v200_v5  ;;  %v810_v5 = vmul.f32 %v984_v31, %v1148_v20 }
  0x15   : > { %1021 = vmatprep.subr.mxu1 %v1080_v1 }
  0x16   : > { %1009 = vmatmul.mubr.msk.f32.vlgmr.msra.gmra.mxu0 %vm212_vm4, %v210_v14 }
  0x17   : > { %1014 = vmatmul.mubr.msk.f32.vlgmr.msra.gmra.mxu1 %vm212_vm4, %v308_v7  ;;  %1018 = vmatprep.mubr.msk.f32.mxu0 %vm1081_vm0, %v1080_v1 }
  0x18   : > { %1023 = vmatprep.mubr.msk.f32.mxu1 %vm1081_vm0, %v1080_v1  ;;  %1017 = vmatpush3.msra.mxu0 %v398_v21 }
  0x19   : > { %1026 = vmatprep.subr.mxu0 %v1080_v1  ;;  %1022 = vmatpush3.msra.mxu1 %v302_v50 }
  0x1a   : > { %1031 = vmatprep.subr.mxu1 %v1080_v1 }
  0xd6   : > { %v285_v22 = vpop.f32.mrf.mxu0 }
  0xd7   : > { %v382_v8 = vpop.f32.mrf.mxu1  ;;  %v289_v23 = vmul.f32 0.35355338, %v285_v22 }
  0xd8   : > { %v386_v9 = vmul.f32 0.35355338, %v382_v8  ;;  %v1010_v24 = vpop.f32.mrf.mxu0 }
  0xd9   : > { %v1015_v10 = vpop.f32.mrf.mxu1  ;;  %v291_v25 = vsel %vm290_vm5, %v289_v23, -inf }
  0xda   : > { %v387_v11 = vsel %vm290_vm5, %v386_v9, -inf  ;;  %292 = vmax.xlane.f32.xlu1 %v291_v25 }
  0xdb   : > { %388 = vmax.xlane.f32.xlu0 %v387_v11 }
 0x163   : > { %v293_v35 = vpop.xlane.xlu1 %292 }
 0x164   : > { %v389_v15 = vpop.xlane.xlu0 %388  ;;  %v294_v36 = vsub.f32 %v289_v23, %v293_v35 }
 0x165   : > { %v390_v16 = vsub.f32 %v386_v9, %v389_v15 }
 0x166   : > { %v295_v37 = vmul.f32 1.442695, %v294_v36 }
 0x167   : > { %v391_v17 = vmul.f32 1.442695, %v390_v16 }
 0x169   : > { %1056 = vpow2.f32 %v391_v17 }
 0x176   : > { %v1057_v18 = vpop.eup %1056 }
 0x177   : > { %v393_v19 = vsel %vm290_vm5, %v1057_v18, 0.0 }
 0x178   : > { %394 = vadd.xlane.f32.xlu0 %v393_v19 }
 0x201   : > { %v395_v26 = vpop.xlane.xlu0 %394 }
 0x202   : > { %1058 = vrcp.f32 %v395_v26 }
 0x203   : > { %1060 = vpow2.f32 %v295_v37 }
 0x20f   : > { %v1059_v28 = vpop.eup %1058 }
 0x210   : > { %v397_v30 = vmul.f32 %v1059_v28, %v1057_v18  ;;  %v1061_v42 = vpop.eup %1060 }
 0x211   : > { %v297_v47 = vsel %vm290_vm5, %v1061_v42, 0.0 }
 0x212   : > { %1019 = vmatmul.mubr.msk.f32.vlgmr.msra.gmra.mxu0 %vm290_vm5, %v397_v30 }
 0x213   : > { %1027 = vmatpush3.xpose.msk.msra.mxu0 %vm212_vm4, %v551_v29  ;;  %1028 = vmatprep.mubr.msk.f32.mxu0 %vm1081_vm0, %v1080_v1 }
 0x214   : > { %1036 = vmatprep.subr.mxu0 %v1080_v1 }
 0x216   : > { %1029 = vmatmul.mubr.msk.f32.vlgmr.msra.gmra.mxu0 %vm212_vm4, %v550_v32 }
 0x217   : > { %1037 = vmatpush3.xpose.msk.msra.mxu0 %vm212_vm4, %v721_v33  ;;  %1038 = vmatprep.mubr.msk.f32.mxu0 %vm1081_vm0, %v1080_v1 }
 0x21a   : > { %1039 = vmatmul.mubr.msk.f32.vlgmr.msra.gmra.mxu0 %vm212_vm4, %v720_v34 }
 0x2d2   : > { %v468_v38 = vpop.f32.mrf.mxu0 }
 0x2d4   : > { %v1020_v39 = vpop.f32.mrf.mxu0 }
 0x2d6   : > { %v624_v40 = vpop.f32.mrf.mxu0 }
 0x2d7   : > { %v628_v41 = vmul.f32 0.35355338, %v624_v40 }
 0x2d8   : > { %v1030_v43 = vpop.f32.mrf.mxu0 }
 0x2d9   : > { %v629_v44 = vsel %vm290_vm5, %v628_v41, -inf }
 0x2da   : > { %630 = vmax.xlane.f32.xlu1 %v629_v44  ;;  %v794_v45 = vpop.f32.mrf.mxu0 }
 0x2db   : > { %v798_v46 = vmul.f32 0.35355338, %v794_v45 }
 0x2dc   : > { %v1040_v48 = vpop.f32.mrf.mxu0 }
 0x2dd   : > { %v799_v49 = vsel %vm290_vm5, %v798_v46, -inf }
 0x2de   : > { %298 = vadd.xlane.f32.xlu1 %v297_v47  ;;  %800 = vmax.xlane.f32.xlu0 %v799_v49 }
 0x363   : > { %v631_v51 = vpop.xlane.xlu1 %630 }
 0x364   : > { %v632_v52 = vsub.f32 %v628_v41, %v631_v51 }
 0x366   : > { %v633_v53 = vmul.f32 1.442695, %v632_v52 }
 0x367   : > { %v299_v54 = vpop.xlane.xlu1 %298  ;;  %v801_v55 = vpop.xlane.xlu0 %800 }
 0x368   : > { %1062 = vpow2.f32 %v633_v53  ;;  %v802_v56 = vsub.f32 %v798_v46, %v801_v55 }
 0x369   : > { %1064 = vrcp.f32 %v299_v54 }
 0x36a   : > { %v803_v57 = vmul.f32 1.442695, %v802_v56 }
 0x36c   : > { %1066 = vpow2.f32 %v803_v57 }
 0x375   : > { %v1063_v58 = vpop.eup %1062 }
 0x376   : > { %v1065_v59 = vpop.eup %1064  ;;  %v635_v60 = vsel %vm290_vm5, %v1063_v58, 0.0 }
 0x377   : > { %636 = vadd.xlane.f32.xlu0 %v635_v60  ;;  %v301_v61 = vmul.f32 %v1065_v59, %v1061_v42 }
 0x379   : > { %v1067_v62 = vpop.eup %1066  ;;  %1024 = vmatmul.mubr.msk.f32.vlgmr.msra.gmra.mxu1 %vm290_vm5, %v301_v61 }
 0x37a   : > { %v805_v63 = vsel %vm290_vm5, %v1067_v62, 0.0  ;;  %1033 = vmatprep.mubr.msk.f32.mxu1 %vm1081_vm0, %v1080_v1  ;;  %1032 = vmatpush3.msra.mxu1 %v640_v0 }
 0x37b   : > { %806 = vadd.xlane.f32.xlu1 %v805_v63  ;;  %1041 = vmatprep.subr.mxu1 %v1080_v1 }
 0x400   : > { %v637_v2 = vpop.xlane.xlu0 %636 }
 0x401   : > { %1068 = vrcp.f32 %v637_v2 }
 0x404   : > { %v807_v3 = vpop.xlane.xlu1 %806 }
 0x405   : > { %1070 = vrcp.f32 %v807_v3 }
 0x40e   : > { %v1069_v4 = vpop.eup %1068 }
 0x40f   : > { %v639_v6 = vmul.f32 %v1069_v4, %v1063_v58 }
 0x411   : > { %1034 = vmatmul.mubr.msk.f32.vlgmr.msra.gmra.mxu1 %vm290_vm5, %v639_v6 }
 0x412   : > { %v1071_v7 = vpop.eup %1070  ;;  %1042 = vmatpush3.msra.mxu1 %v810_v5  ;;  %1043 = vmatprep.mubr.msk.f32.mxu1 %vm1081_vm0, %v1080_v1 }
 0x413   : > { %v809_v8 = vmul.f32 %v1071_v7, %v1067_v62 }
 0x415   : > { %1044 = vmatmul.mubr.msk.f32.vlgmr.msra.gmra.mxu1 %vm290_vm5, %v809_v8 }
 0x439   : > { %v541_v9 = vpop.f32.mrf.mxu1 }
 0x43a   : > { %v542_v12 = vadd.f32 %v541_v9, %v468_v38 }
 0x43b   : > { %v1025_v10 = vpop.f32.mrf.mxu1 }
 0x4d1   : > { %v710_v11 = vpop.f32.mrf.mxu1 }
 0x4d2   : > { %v714_v14 = vadd.f32 %v710_v11, %v542_v12 }
 0x4d3   : > { %v1035_v13 = vpop.f32.mrf.mxu1 }
 0x4d5   : > { %v880_v15 = vpop.f32.mrf.mxu1 }
 0x4d6   : > { %v884_v16 = vadd.f32 %v880_v15, %v714_v14 }
 0x4d7   : > { %v1045_v17 = vpop.f32.mrf.mxu1 }
 0x4d8   : > { %885 = vst.msk [vmem:[%s199_s26] sm:$0xff] %vm212_vm4, %v884_v16 }
 0x4d9 PF: > { %s13_s12 = sadd.s32 1, %s1078_s12  }
 0x4da   : > { %p10_p4 = scmp.ge.s32.totalorder %s13_s12, 4  }
 0x4dc   :  { %12 = sbr.rel (!%p10_p4) target bundleno = 1 (0x1), region = 68 }

// kernel: _forward.41
= control target key start
LH: loop header
LB: loop body
LE: loop exit
PB: predicated region body
PF: predicated region fallthrough
CT: control target
= control target key end

     0   :  { %vm29_vm0 = vcmask 261120   ;;  %vm18_vm1 = vcmask 523264   ;;  %v159_v2 = vmov 0.0   ;;  %s215_s1 = inlined_call_operand.vmem [shape: f32[32,64], index: 1, kind: input, shape index: {}]   ;;  %s216_s0 = inlined_call_operand.vmem [shape: f32[16,32], index: 0, kind: input, shape index: {}]   ;;  %s217_s2 = inlined_call_operand.vmem [shape: f32[1,64], index: 2, kind: input, shape index: {}]   ;;  %s218_s3 = inlined_call_operand.vmem [shape: f32[16,64], index: 3, kind: output, shape index: {}]  }
   0x1   :  { %v28_v0 = vld [vmem:[%s215_s1 + $0x18] sm:$0xff]  ;;  %v27_v1 = vld [vmem:[%s215_s1 + $0x10] sm:$0xff]  ;;  %20 = vst.msk [vmem:[#allocation2 + $0x8] sm:$0xff] %vm18_vm1, %v159_v2  ;;  %19 = vst.msk [vmem:[#allocation2] sm:$0xff] %vm18_vm1, %v159_v2 }
   0x2   :  { %147 = vmatprep.subr.mxu0 %v28_v0  ;;  %v23_v3 = vld [vmem:[%s216_s0] sm:$0xff]  ;;  %v26_v4 = vld [vmem:[%s215_s1 + $0x8] sm:$0xff] }
   0x3   :  { %148 = vmatpush3.msra.mxu0 %v28_v0  ;;  %155 = vmatprep.mubr.msk.f32.mxu0 %vm29_vm0, %v23_v3  ;;  %v25_v5 = vld [vmem:[%s215_s1] sm:$0xff]  ;;  %v24_v6 = vld [vmem:[%s216_s0 + $0x8] sm:$0xff] }
   0x4   :  { %149 = vmatprep.subr.mxu0 %v27_v1  ;;  %v140_v13 = vld [vmem:[%s217_s2] ss:$0 sm:$0xff] }
   0x5   :  { %150 = vmatpush3.msra.mxu0 %v27_v1 }
   0x6   :  { %151 = vmatprep.subr.mxu0 %v26_v4 }
   0x7   :  { %152 = vmatpush3.msra.mxu0 %v26_v4 }
   0x8   :  { %153 = vmatprep.subr.mxu0 %v25_v5  ;;  %v22_v7 = vld [vmem:[#allocation2 + $0x8] sm:$0xff]  ;;  %v21_v9 = vld [vmem:[#allocation2] sm:$0xff] }
   0x9   :  { %154 = vmatpush3.msra.mxu0 %v25_v5 }
   0xa   :  { %156 = vmatmul.mubr.msk.f32.vlgmr.msra.gmra.mxu0 %vm29_vm0, %v24_v6 }
  0xca   :  { %v157_v8 = vpop.f32.mrf.mxu0 }
  0xcb   :  { %v112_v10 = vadd.f32 %v157_v8, %v22_v7 }
  0xcc   :  { %v102_v11 = vpop.f32.mrf.mxu0 }
  0xcd   :  { %115 = vst.msk [vmem:[#allocation2 + $0x8] sm:$0xff] %vm18_vm1, %v112_v10  ;;  %v111_v12 = vadd.f32 %v102_v11, %v21_v9 }
  0xcf   :  { %114 = vst.msk [vmem:[#allocation2] sm:$0xff] %vm18_vm1, %v111_v12 }
  0xd4   :  { %v120_v14 = vld [vmem:[#allocation2 + $0x8] sm:$0xff] }
  0xd5   :  { %v129_v15 = vadd.f32 %v140_v13, %v120_v14 }
  0xd6   :  { %v119_v16 = vld [vmem:[#allocation2] sm:$0xff] }
  0xd7   :  { %v131_v17 = vmax.f32 %v129_v15, 0.0  ;;  %v128_v18 = vadd.f32 %v140_v13, %v119_v16 }
  0xd9   :  { %133 = vst.msk [vmem:[%s218_s3 + $0x8] sm:$0xff] %vm18_vm1, %v131_v17  ;;  %v130_v19 = vmax.f32 %v128_v18, 0.0 }
  0xdb   :  { %132 = vst.msk [vmem:[%s218_s3] sm:$0xff] %vm18_vm1, %v130_v19 }

// kernel: _forward.42
= control target key start
LH: loop header
LB: loop body
LE: loop exit
PB: predicated region body
PF: predicated region fallthrough
CT: control target
= control target key end

     0   :  { %vm18_vm0 = vcmask 261120   ;;  %vm33_vm1 = vcmask 523264   ;;  %v173_v2 = vmov 0.0   ;;  %s241_s1 = inlined_call_operand.vmem [shape: f32[64,32], index: 1, kind: input, shape index: {}]   ;;  %s242_s0 = inlined_call_operand.vmem [shape: f32[16,64], index: 0, kind: input, shape index: {}]   ;;  %s243_s2 = inlined_call_operand.vmem [shape: f32[1,32], index: 2, kind: input, shape index: {}]   ;;  %s244_s3 = inlined_call_operand.vmem [shape: f32[16,32], index: 3, kind: output, shape index: {}]  }
   0x1   :  { %v32_v0 = vld [vmem:[%s241_s1 + $0x38] sm:$0xff]  ;;  %v31_v1 = vld [vmem:[%s241_s1 + $0x30] sm:$0xff]  ;;  %20 = vst.msk [vmem:[#allocation2 + $0x8] sm:$0xff] %vm18_vm0, %v173_v2  ;;  %19 = vst.msk [vmem:[#allocation2] sm:$0xff] %vm18_vm0, %v173_v2 }
   0x2   :  { %153 = vmatprep.subr.mxu0 %v32_v0  ;;  %v30_v3 = vld [vmem:[%s241_s1 + $0x28] sm:$0xff]  ;;  %v23_v4 = vld [vmem:[%s242_s0] sm:$0xff]  ;;  %v28_v6 = vld [vmem:[%s241_s1 + $0x18] sm:$0xff] }
   0x3   :  { %154 = vmatpush3.msra.mxu0 %v32_v0  ;;  %169 = vmatprep.mubr.msk.f32.mxu0 %vm33_vm1, %v23_v4  ;;  %v29_v5 = vld [vmem:[%s241_s1 + $0x20] sm:$0xff]  ;;  %v27_v7 = vld [vmem:[%s241_s1 + $0x10] sm:$0xff]  ;;  %v26_v8 = vld [vmem:[%s241_s1 + $0x8] sm:$0xff] }
   0x4   :  { %155 = vmatprep.subr.mxu0 %v31_v1  ;;  %v25_v9 = vld [vmem:[%s241_s1] sm:$0xff]  ;;  %v24_v10 = vld [vmem:[%s242_s0 + $0x8] sm:$0xff] }
   0x5   :  { %156 = vmatpush3.msra.mxu0 %v31_v1  ;;  %v142_v17 = vld [vmem:[%s243_s2] ss:$0 sm:$0xff] }
   0x6   :  { %157 = vmatprep.subr.mxu0 %v30_v3 }
   0x7   :  { %158 = vmatpush3.msra.mxu0 %v30_v3 }
   0x8   :  { %159 = vmatprep.subr.mxu0 %v29_v5  ;;  %v22_v11 = vld [vmem:[#allocation2 + $0x8] sm:$0xff]  ;;  %v21_v13 = vld [vmem:[#allocation2] sm:$0xff] }
   0x9   :  { %160 = vmatpush3.msra.mxu0 %v29_v5 }
   0xa   :  { %161 = vmatprep.subr.mxu0 %v28_v6 }
   0xb   :  { %162 = vmatpush3.msra.mxu0 %v28_v6 }
   0xc   :  { %163 = vmatprep.subr.mxu0 %v27_v7 }
   0xd   :  { %164 = vmatpush3.msra.mxu0 %v27_v7 }
   0xe   :  { %165 = vmatprep.subr.mxu0 %v26_v8 }
   0xf   :  { %166 = vmatpush3.msra.mxu0 %v26_v8 }
  0x10   :  { %167 = vmatprep.subr.mxu0 %v25_v9 }
  0x11   :  { %168 = vmatpush3.msra.mxu0 %v25_v9 }
  0x12   :  { %170 = vmatmul.mubr.msk.f32.vlgmr.msra.gmra.mxu0 %vm33_vm1, %v24_v10 }
  0xd2   :  { %v171_v12 = vpop.f32.mrf.mxu0 }
  0xd3   :  { %v116_v14 = vadd.f32 %v171_v12, %v22_v11 }
  0xd4   :  { %v106_v15 = vpop.f32.mrf.mxu0 }
  0xd5   :  { %119 = vst.msk [vmem:[#allocation2 + $0x8] sm:$0xff] %vm18_vm0, %v116_v14  ;;  %v115_v16 = vadd.f32 %v106_v15, %v21_v13 }
  0xd7   :  { %118 = vst.msk [vmem:[#allocation2] sm:$0xff] %vm18_vm0, %v115_v16 }
  0xdc   :  { %v124_v18 = vld [vmem:[#allocation2 + $0x8] sm:$0xff] }
  0xdd   :  { %v133_v19 = vadd.f32 %v142_v17, %v124_v18 }
  0xde   :  { %v123_v20 = vld [vmem:[#allocation2] sm:$0xff] }
  0xdf   :  { %135 = vst.msk [vmem:[%s244_s3 + $0x8] sm:$0xff] %vm18_vm0, %v133_v19  ;;  %v132_v21 = vadd.f32 %v142_v17, %v123_v20 }
  0xe1   :  { %134 = vst.msk [vmem:[%s244_s3] sm:$0xff] %vm18_vm0, %v132_v21 }

// kernel: _forward.68
= control target key start
LH: loop header
LB: loop body
LE: loop exit
PB: predicated region body
PF: predicated region fallthrough
CT: control target
= control target key end

     0   :  { %vm31_vm0 = vcmask 261120   ;;  %vm20_vm1 = vcmask 7168   ;;  %v183_v3 = vmov 0.0   ;;  %s239_s1 = inlined_call_operand.vmem [shape: f32[32,1], index: 1, kind: input, shape index: {}]   ;;  %s240_s0 = inlined_call_operand.vmem [shape: f32[16,32], index: 0, kind: input, shape index: {}]   ;;  %s241_s2 = inlined_call_operand.<no memory space> [shape: f32[1,1], index: 2, kind: input, shape index: {}]   ;;  %s242_s3 = inlined_call_operand.vmem [shape: f32[16,1], index: 3, kind: output, shape index: {}]  }
   0x1   :  { %v30_v0 = vld [vmem:[%s239_s1 + $0x18] sm:$0xff]  ;;  %v29_v1 = vld [vmem:[%s239_s1 + $0x10] sm:$0xff]  ;;  %v8_v2 = vstv %s241_s2  ;;  %22 = vst.msk [vmem:[#allocation2 + $0x8] sm:$0xff] %vm20_vm1, %v183_v3  ;;  %21 = vst.msk [vmem:[#allocation2] sm:$0xff] %vm20_vm1, %v183_v3 }
   0x2   :  { %163 = vmatprep.subr.mxu0 %v30_v0  ;;  %v25_v4 = vld [vmem:[%s240_s0] sm:$0xff]  ;;  %9 = vst [vmem:[#allocation3] sm:$0x1] %v8_v2  ;;  %v28_v5 = vld [vmem:[%s239_s1 + $0x8] sm:$0xff] }
   0x3   :  { %164 = vmatpush3.msra.mxu0 %v30_v0  ;;  %171 = vmatprep.mubr.msk.f32.mxu0 %vm31_vm0, %v25_v4  ;;  %v27_v6 = vld [vmem:[%s239_s1] sm:$0xff]  ;;  %v26_v7 = vld [vmem:[%s240_s0 + $0x8] sm:$0xff] }
   0x4   :  { %165 = vmatprep.subr.mxu0 %v29_v1 }
   0x5   :  { %166 = vmatpush3.msra.mxu0 %v29_v1 }
   0x6   :  { %167 = vmatprep.subr.mxu0 %v28_v5 }
   0x7   :  { %168 = vmatpush3.msra.mxu0 %v28_v5 }
   0x8   :  { %169 = vmatprep.subr.mxu0 %v27_v6  ;;  %v24_v8 = vld [vmem:[#allocation2 + $0x8] sm:$0xff]  ;;  %v23_v10 = vld [vmem:[#allocation2] sm:$0xff] }
   0x9   :  { %170 = vmatpush3.msra.mxu0 %v27_v6  ;;  %v156_v14 = vld [vmem:[#allocation3] ss:$0 sm:$0xff] }
   0xa   :  { %172 = vmatmul.mubr.msk.f32.vlgmr.msra.gmra.mxu0 %vm31_vm0, %v26_v7 }
  0xca   :  { %v173_v9 = vpop.f32.mrf.mxu0 }
  0xcb   :  { %v114_v11 = vadd.f32 %v173_v9, %v24_v8 }
  0xcc   :  { %v104_v12 = vpop.f32.mrf.mxu0 }
  0xcd   :  { %117 = vst.msk [vmem:[#allocation2 + $0x8] sm:$0xff] %vm20_vm1, %v114_v11  ;;  %v113_v13 = vadd.f32 %v104_v12, %v23_v10 }
  0xcf   :  { %116 = vst.msk [vmem:[#allocation2] sm:$0xff] %vm20_vm1, %v113_v13 }
  0xd4   :  { %v122_v15 = vld [vmem:[#allocation2 + $0x8] sm:$0xff] }
  0xd5   :  { %v131_v16 = vadd.f32 %v156_v14, %v122_v15 }
  0xd6   :  { %v121_v17 = vld [vmem:[#allocation2] sm:$0xff] }
  0xd7   :  { %v135_v18 = vmin.f32 %v131_v16, 20.0  ;;  %v130_v19 = vadd.f32 %v156_v14, %v121_v17  ;;  %vm133_vm2 = vcmp.gt.f32.partialorder %v131_v16, 20.0 }
  0xd9   :  { %v138_v20 = vmul.f32 1.442695, %v135_v18  ;;  %v134_v21 = vmin.f32 %v130_v19, 20.0  ;;  %vm132_vm3 = vcmp.gt.f32.partialorder %v130_v19, 20.0 }
  0xdb   :  { %175 = vpow2.f32 %v138_v20  ;;  %v136_v22 = vmul.f32 1.442695, %v134_v21 }
  0xdd   :  { %177 = vpow2.f32 %v136_v22 }
  0xe8   :  { %v176_v23 = vpop.eup %175 }
  0xe9   :  { %v141_v24 = vadd.f32 1.0, %v176_v23 }
  0xea   :  { %v178_v25 = vpop.eup %177 }
  0xeb   :  { %179 = vlog2.f32 %v141_v24  ;;  %v140_v26 = vadd.f32 1.0, %v178_v25 }
  0xed   :  { %181 = vlog2.f32 %v140_v26 }
  0xf8   :  { %v180_v27 = vpop.eup %179 }
  0xf9   :  { %v145_v28 = vmul.f32 0.6931472, %v180_v27 }
  0xfa   :  { %v182_v29 = vpop.eup %181 }
  0xfb   :  { %v147_v30 = vsel %vm133_vm2, %v131_v16, %v145_v28  ;;  %v143_v31 = vmul.f32 0.6931472, %v182_v29 }
  0xfc   :  { %149 = vst.msk [vmem:[%s242_s3 + $0x8] sm:$0xff] %vm20_vm1, %v147_v30 }
  0xfd   :  { %v146_v32 = vsel %vm132_vm3, %v130_v19, %v143_v31 }
  0xfe   :  { %148 = vst.msk [vmem:[%s242_s3] sm:$0xff] %vm20_vm1, %v146_v32 }

</bundles_post_ra>
